<compile_context>
chip_gen: v6e
topology: v6e:2x2x1
jax: 0.10.0
libtpu: 0.0.40
codegen_flags: <defaults>
</compile_context>

<pallas_src>
import math
from functools import partial

import jax
import jax.numpy as jnp
from jax.experimental import pallas as pl
from jax.experimental.pallas import tpu as pltpu

_PAR = pltpu.CompilerParams(dimension_semantics=("parallel",))


# ----------------------------------------------------------------------------
# tiling helpers
# ----------------------------------------------------------------------------
def _pick_rows(m, target=512, row_mult=8):
    """Row tile <= target, multiple of row_mult, dividing m; prefers >=2 steps."""
    t = min(target, m)
    g = (t // row_mult) * row_mult
    cand = None
    while g >= row_mult:
        if m % g == 0:
            cand = g
            break
        g -= row_mult
    if cand is None:
        return m
    if m // cand < 2:                       # keep both v7x TensorCores busy
        g2 = cand - row_mult
        while g2 >= row_mult:
            if m % g2 == 0 and m // g2 >= 2:
                return g2
            g2 -= row_mult
    return cand


def _pick_group(n, target=8):
    """Joint-group tile <= target dividing n; prefers >=2 grid steps."""
    g = min(target, n)
    while g > 1:
        if n % g == 0 and n // g >= 2:
            return g
        g -= 1
    return 1 if n >= 2 else n


def _pick_rows_vq(m):
    """VQ row tile: == m or a multiple of 128 so (1, tm) idx/loss blocks are legal."""
    if m <= 1024:
        return m
    for t in (1024, 512, 384, 256, 128):
        if m % t == 0:
            return t
    return m


# ----------------------------------------------------------------------------
# Pallas kernels
# ----------------------------------------------------------------------------
def _linear_kernel(x_ref, w_ref, b_ref, o_ref):
    y = jnp.dot(x_ref[...].astype(jnp.bfloat16), w_ref[...],
                preferred_element_type=jnp.float32) + b_ref[...]
    o_ref[...] = y.astype(o_ref.dtype)


def _ln_linear_kernel(x_ref, g_ref, b_ref, w_ref, o_ref):
    x = x_ref[...].astype(jnp.float32)
    mu = jnp.mean(x, axis=-1, keepdims=True)
    var = jnp.mean(jnp.square(x - mu), axis=-1, keepdims=True)
    h = (x - mu) * jax.lax.rsqrt(var + 1e-5) * g_ref[...] + b_ref[...]
    y = jnp.dot(h.astype(jnp.bfloat16), w_ref[...],
                preferred_element_type=jnp.float32)
    o_ref[...] = y.astype(o_ref.dtype)


def _stblock_kernel(x_ref, kb_ref, g1_ref, b1_ref, wqkv_ref, bqkv_ref,
                    wo_ref, bo_ref, g2_ref, b2_ref, w1_ref, bm1_ref,
                    w2_ref, bm2_ref, o_ref, *, heads, scale):
    """Fully fused pre-LN transformer block on a [G, T, D] joint-group tile."""
    G, T, D = x_ref.shape
    hd = D // heads

    x = x_ref[...].astype(jnp.float32)                  # residual stream, f32 in VMEM

    # ---- LN1 + fused QKV projection (single K=D matmul) ----
    mu = jnp.mean(x, axis=-1, keepdims=True)
    var = jnp.mean(jnp.square(x - mu), axis=-1, keepdims=True)
    h = (x - mu) * jax.lax.rsqrt(var + 1e-5) * g1_ref[...] + b1_ref[...]
    qkv = jnp.dot(h.reshape(G * T, D).astype(jnp.bfloat16), wqkv_ref[...],
                  preferred_element_type=jnp.float32) + bqkv_ref[...]
    qkv = qkv.reshape(G, T, 3 * D)

    # ---- multi-head attention; one K=D output projection after the head loop ----
    kb = kb_ref[...]                                     # [G,1,T] additive key mask
    heads_out = []
    for hh in range(heads):
        q = (qkv[:, :, hh * hd:(hh + 1) * hd] * scale).astype(jnp.bfloat16)
        k = qkv[:, :, D + hh * hd:D + (hh + 1) * hd].astype(jnp.bfloat16)
        v = qkv[:, :, 2 * D + hh * hd:2 * D + (hh + 1) * hd].astype(jnp.bfloat16)
        s = jnp.einsum("bqd,bkd->bqk", q, k,
                       preferred_element_type=jnp.float32) + kb
        s = s - jnp.max(s, axis=-1, keepdims=True)
        p = jnp.exp(s)
        p = p * pl.reciprocal(jnp.sum(p, axis=-1, keepdims=True), approx=True)
        heads_out.append(jnp.einsum("bqk,bkd->bqd", p.astype(jnp.bfloat16), v,
                                    preferred_element_type=jnp.float32))
    oh = jnp.concatenate(heads_out, axis=-1)             # [G,T,D]
    attn = jnp.dot(oh.reshape(G * T, D).astype(jnp.bfloat16), wo_ref[...],
                   preferred_element_type=jnp.float32) + bo_ref[...]
    x = x + attn.reshape(G, T, D)                        # residual 1

    # ---- LN2 + MLP (gelu) ----
    mu = jnp.mean(x, axis=-1, keepdims=True)
    var = jnp.mean(jnp.square(x - mu), axis=-1, keepdims=True)
    h = (x - mu) * jax.lax.rsqrt(var + 1e-5) * g2_ref[...] + b2_ref[...]
    m = jnp.dot(h.reshape(G * T, D).astype(jnp.bfloat16), w1_ref[...],
                preferred_element_type=jnp.float32) + bm1_ref[...]
    m = jax.nn.gelu(m, approximate=True)
    y = jnp.dot(m.astype(jnp.bfloat16), w2_ref[...],
                preferred_element_type=jnp.float32) + bm2_ref[...]
    o_ref[...] = (x + y.reshape(G, T, D)).astype(o_ref.dtype)   # residual 2


def _mlp_kernel(x_ref, w1_ref, b1_ref, w2_ref, b2_ref, o_ref):
    x = x_ref[...].astype(jnp.bfloat16)
    m = jnp.dot(x, w1_ref[...], preferred_element_type=jnp.float32) + b1_ref[...]
    m = jnp.maximum(m, 0.0)
    y = jnp.dot(m.astype(jnp.bfloat16), w2_ref[...],
                preferred_element_type=jnp.float32) + b2_ref[...]
    o_ref[...] = y.astype(o_ref.dtype)


def _vq_kernel(z_ref, cb_ref, csq_ref, zq_ref, idx_ref, loss_ref, *, beta):
    z = z_ref[...]                                        # [tm,E] f32
    cb = cb_ref[...]                                      # [n_e,E] f32
    n_e, E = cb.shape
    # argmin ||z-c||^2 == argmin(-2 z.c + ||c||^2); per-row z^2 constant dropped
    zcb = jax.lax.dot_general(z, cb, (((1,), (1,)), ((), ())),
                              preferred_element_type=jnp.float32)   # [tm,n_e]
    d = csq_ref[...] - 2.0 * zcb
    dmin = jnp.min(d, axis=-1, keepdims=True)
    lane = jax.lax.broadcasted_iota(jnp.int32, d.shape, 1)
    idx_col = jnp.min(jnp.where(d <= dmin, lane, n_e), axis=-1, keepdims=True)
    onehot = (lane == idx_col).astype(jnp.float32)        # [tm,n_e]
    zq = jnp.dot(onehot, cb, preferred_element_type=jnp.float32)
    zq_ref[...] = zq
    # lane-dense (1, tm) idx / loss rows via MXU contractions (unmasked stores)
    iota_row = jax.lax.broadcasted_iota(jnp.int32, (1, n_e), 1).astype(jnp.float32)
    idx_row = jax.lax.dot_general(iota_row, onehot, (((1,), (1,)), ((), ())),
                                  preferred_element_type=jnp.float32)
    idx_ref[...] = idx_row.astype(jnp.int32)
    diff2 = jnp.square(zq - z)
    ones_row = jnp.ones((1, E), jnp.float32)
    mse_row = jax.lax.dot_general(ones_row, diff2, (((1,), (1,)), ((), ())),
                                  preferred_element_type=jnp.float32)
    loss_ref[...] = ((1.0 + beta) / E) * mse_row


# ----------------------------------------------------------------------------
# Pallas wrappers (row/group tiled, "parallel" grids)
# ----------------------------------------------------------------------------
def pallas_linear(x, w, b, out_dtype=jnp.float32):
    M, K = x.shape
    N = w.shape[1]
    row_mult = 16 if out_dtype == jnp.bfloat16 else 8
    tm = _pick_rows(M, target=512, row_mult=row_mult)
    return pl.pallas_call(
        _linear_kernel,
        grid=(M // tm,),
        in_specs=[pl.BlockSpec((tm, K), lambda i: (i, 0)),
                  pl.BlockSpec((K, N), lambda i: (0, 0)),
                  pl.BlockSpec((1, N), lambda i: (0, 0))],
        out_specs=pl.BlockSpec((tm, N), lambda i: (i, 0)),
        out_shape=jax.ShapeDtypeStruct((M, N), out_dtype),
        compiler_params=_PAR,
    )(x, w, b.reshape(1, N))


def pallas_ln_head(x, g, b, w, out_dtype=jnp.bfloat16):
    M, K = x.shape
    N = w.shape[1]
    row_mult = 16 if out_dtype == jnp.bfloat16 else 8
    tm = _pick_rows(M, target=512, row_mult=row_mult)
    return pl.pallas_call(
        _ln_linear_kernel,
        grid=(M // tm,),
        in_specs=[pl.BlockSpec((tm, K), lambda i: (i, 0)),
                  pl.BlockSpec((1, K), lambda i: (0, 0)),
                  pl.BlockSpec((1, K), lambda i: (0, 0)),
                  pl.BlockSpec((K, N), lambda i: (0, 0))],
        out_specs=pl.BlockSpec((tm, N), lambda i: (i, 0)),
        out_shape=jax.ShapeDtypeStruct((M, N), out_dtype),
        compiler_params=_PAR,
    )(x, g.reshape(1, K), b.reshape(1, K), w)


def pallas_stblock(p, x3, kbias, heads):
    BV, T, D = x3.shape
    G = _pick_group(BV)
    scale = 1.0 / math.sqrt(D // heads)
    return pl.pallas_call(
        partial(_stblock_kernel, heads=heads, scale=scale),
        grid=(BV // G,),
        in_specs=[
            pl.BlockSpec((G, T, D), lambda i: (i, 0, 0)),       # residual stream
            pl.BlockSpec((G, 1, T), lambda i: (i, 0, 0)),       # key-mask bias
            pl.BlockSpec((1, D), lambda i: (0, 0)),             # ln1 gamma
            pl.BlockSpec((1, D), lambda i: (0, 0)),             # ln1 beta
            pl.BlockSpec((D, 3 * D), lambda i: (0, 0)),         # wqkv
            pl.BlockSpec((1, 3 * D), lambda i: (0, 0)),         # bqkv
            pl.BlockSpec((D, D), lambda i: (0, 0)),             # wo
            pl.BlockSpec((1, D), lambda i: (0, 0)),             # bo
            pl.BlockSpec((1, D), lambda i: (0, 0)),             # ln2 gamma
            pl.BlockSpec((1, D), lambda i: (0, 0)),             # ln2 beta
            pl.BlockSpec((D, 4 * D), lambda i: (0, 0)),         # w1
            pl.BlockSpec((1, 4 * D), lambda i: (0, 0)),         # b1
            pl.BlockSpec((4 * D, D), lambda i: (0, 0)),         # w2
            pl.BlockSpec((1, D), lambda i: (0, 0)),             # b2
        ],
        out_specs=pl.BlockSpec((G, T, D), lambda i: (i, 0, 0)),
        out_shape=jax.ShapeDtypeStruct((BV, T, D), jnp.bfloat16),
        compiler_params=_PAR,
    )(x3, kbias,
      p["ln1_g"].reshape(1, D), p["ln1_b"].reshape(1, D),
      p["wqkv"], p["bqkv"].reshape(1, 3 * D),
      p["wo"], p["bo"].reshape(1, D),
      p["ln2_g"].reshape(1, D), p["ln2_b"].reshape(1, D),
      p["w1"], p["b1"].reshape(1, 4 * D),
      p["w2"], p["b2"].reshape(1, D))


def pallas_mlp(x, w1, b1, w2, b2, out_dtype=jnp.float32):
    M, D = x.shape
    H = w1.shape[1]
    N = w2.shape[1]
    tm = _pick_rows(M, target=256, row_mult=8)
    return pl.pallas_call(
        _mlp_kernel,
        grid=(M // tm,),
        in_specs=[pl.BlockSpec((tm, D), lambda i: (i, 0)),
                  pl.BlockSpec((D, H), lambda i: (0, 0)),
                  pl.BlockSpec((1, H), lambda i: (0, 0)),
                  pl.BlockSpec((H, N), lambda i: (0, 0)),
                  pl.BlockSpec((1, N), lambda i: (0, 0))],
        out_specs=pl.BlockSpec((tm, N), lambda i: (i, 0)),
        out_shape=jax.ShapeDtypeStruct((M, N), out_dtype),
        compiler_params=_PAR,
    )(x, w1, b1.reshape(1, H), w2, b2.reshape(1, N))


def pallas_vq(z, codebook, cb_sq, beta):
    M, E = z.shape
    n_e = codebook.shape[0]
    tm = _pick_rows_vq(M)
    zq, idx, loss = pl.pallas_call(
        partial(_vq_kernel, beta=beta),
        grid=(M // tm,),
        in_specs=[pl.BlockSpec((tm, E), lambda i: (i, 0)),
                  pl.BlockSpec((n_e, E), lambda i: (0, 0)),
                  pl.BlockSpec((1, n_e), lambda i: (0, 0))],
        out_specs=(pl.BlockSpec((tm, E), lambda i: (i, 0)),
                   pl.BlockSpec((1, tm), lambda i: (0, i)),
                   pl.BlockSpec((1, tm), lambda i: (0, i))),
        out_shape=(jax.ShapeDtypeStruct((M, E), jnp.float32),
                   jax.ShapeDtypeStruct((1, M), jnp.int32),
                   jax.ShapeDtypeStruct((1, M), jnp.float32)),
        compiler_params=_PAR,
    )(z, codebook, cb_sq)
    return zq, idx.reshape(M), loss.reshape(M)


# ----------------------------------------------------------------------------
# Model glue (layout plumbing only; residual stream is bf16 [B*V, T, D])
# ----------------------------------------------------------------------------
def stack_forward(p, x3, kbias, heads):
    for blk in p["blocks"]:
        x3 = pallas_stblock(blk, x3, kbias, heads)           # 1 fused call / block
    BV, T, D = x3.shape
    y = pallas_ln_head(x3.reshape(BV * T, D), p["lnf_g"], p["lnf_b"],
                       p["head_w"], out_dtype=jnp.bfloat16)   # LN_f + head (no bias)
    return y.reshape(BV, T, D)


def model_forward(params, x, valid, *, heads, beta, one_codebook_size):
    B, T, V, C = x.shape
    D = params["enc"]["lnf_g"].shape[0]
    e_dim = params["codebook"].shape[1]
    n_e = params["codebook"].shape[0]
    mask = valid.astype(jnp.float32)                          # [B, T]

    # x = self.emb(x)
    h = pallas_linear(x.reshape(B * T * V, C), params["emb_w"], params["emb_b"],
                      out_dtype=jnp.bfloat16)
    # joints-in-batch layout [B*V, T, D] (one bf16 transpose per stack boundary)
    x3 = h.reshape(B, T, V, D).transpose(0, 2, 1, 3).reshape(B * V, T, D)

    # additive key-mask bias shared by all joints / heads: [B*V, 1, T]
    kbias = (mask - 1.0) * 1e9
    kbias_bv = jnp.broadcast_to(kbias[:, None, None, :],
                                (B, V, 1, T)).reshape(B * V, 1, T)

    # encoder
    enc = stack_forward(params["enc"], x3, kbias_bv, heads)
    hid = enc.reshape(B, V, T, D).transpose(0, 2, 1, 3).reshape(B * T, V * D)

    # z = self.quant_emb(hid.view(B, T, -1))
    z = pallas_linear(hid, params["quant_emb_w"], params["quant_emb_b"],
                      out_dtype=jnp.float32)
    mask_long = valid.astype(jnp.int32)                       # mask_.float().long()

    # quantize
    cb_sq = jnp.sum(params["codebook"] * params["codebook"], axis=1).reshape(1, n_e)
    z_q, idx, loss_pp = pallas_vq(z, params["codebook"], cb_sq, beta)
    loss_pp = loss_pp.reshape(B, T)
    indices = idx.reshape(B, T, 1)                            # n_codebook == 1
    valid_f = mask_long.astype(jnp.float32)
    z_loss = jnp.sum(loss_pp * valid_f) / jnp.sum(valid_f)
    valid3 = mask_long[:, :, None]
    indices = indices * valid3 + (1 - valid3) * (-1)
    z_q = z_q.reshape(B, T, e_dim) * valid3.astype(jnp.float32)

    # hid = self.post_quant_emb(z_q)
    hid2 = pallas_linear(z_q.reshape(B * T, e_dim),
                         params["post_quant_w"], params["post_quant_b"],
                         out_dtype=jnp.bfloat16)
    x3d = hid2.reshape(B, T, V, D).transpose(0, 2, 1, 3).reshape(B * V, T, D)

    # decoder
    dec = stack_forward(params["dec"], x3d, kbias_bv, heads)
    y = dec.reshape(B, V, T, D).transpose(0, 2, 1, 3).reshape(B * T * V, D)

    # regressor: Linear -> ReLU -> Linear (fused)
    rotmat = pallas_mlp(y, params["reg_w1"], params["reg_b1"],
                        params["reg_w2"], params["reg_b2"]).reshape(B, T, V, C)

    kl = math.log(one_codebook_size) * jnp.ones_like(indices, dtype=jnp.float32)
    return ((rotmat,),
            {"quant_loss": z_loss, "kl": kl, "kl_valid": mask_long},
            indices)


# ----------------------------------------------------------------------------
# Deterministic parameter init (matmul weights stored bf16, stats/accum f32)
# ----------------------------------------------------------------------------
def _dense(key, shape):
    return (0.02 * jax.random.normal(key, shape, jnp.float32)).astype(jnp.bfloat16)


def init_block(key, D):
    k = jax.random.split(key, 4)
    return {
        "ln1_g": jnp.ones((D,), jnp.float32), "ln1_b": jnp.zeros((D,), jnp.float32),
        "wqkv": _dense(k[0], (D, 3 * D)), "bqkv": jnp.zeros((3 * D,), jnp.float32),
        "wo": _dense(k[1], (D, D)), "bo": jnp.zeros((D,), jnp.float32),
        "ln2_g": jnp.ones((D,), jnp.float32), "ln2_b": jnp.zeros((D,), jnp.float32),
        "w1": _dense(k[2], (D, 4 * D)), "b1": jnp.zeros((4 * D,), jnp.float32),
        "w2": _dense(k[3], (4 * D, D)), "b2": jnp.zeros((D,), jnp.float32),
    }


def init_stack(key, n_layer, D):
    keys = jax.random.split(key, n_layer + 1)
    return {
        "blocks": [init_block(keys[i], D) for i in range(n_layer)],
        "lnf_g": jnp.ones((D,), jnp.float32),
        "lnf_b": jnp.zeros((D,), jnp.float32),
        "head_w": _dense(keys[-1], (D, D)),
    }


def init_params(key, *, in_dim, n_embd, num_joints, e_dim, n_e,
                n_layers_enc, n_layers_dec):
    ks = jax.random.split(key, 8)
    return {
        "emb_w": _dense(ks[0], (in_dim, n_embd)),
        "emb_b": jnp.zeros((n_embd,), jnp.float32),
        "enc": init_stack(ks[1], n_layers_enc, n_embd),
        "dec": init_stack(ks[2], n_layers_dec, n_embd),
        "quant_emb_w": _dense(ks[3], (n_embd * num_joints, e_dim)),
        "quant_emb_b": jnp.zeros((e_dim,), jnp.float32),
        "post_quant_w": _dense(ks[4], (e_dim, n_embd * num_joints)),
        "post_quant_b": jnp.zeros((n_embd * num_joints,), jnp.float32),
        "codebook": jax.random.uniform(ks[5], (n_e, e_dim), jnp.float32,
                                       -1.0 / n_e, 1.0 / n_e),
        "reg_w1": _dense(ks[6], (n_embd, n_embd)),
        "reg_b1": jnp.zeros((n_embd,), jnp.float32),
        "reg_w2": _dense(ks[7], (n_embd, in_dim)),
        "reg_b2": jnp.zeros((in_dim,), jnp.float32),
    }


# ----------------------------------------------------------------------------
if __name__ == "__main__":
    # Small config consistent with TransformerVQVAE(n_layers=[0, 2], ...)
    B, T, V, C = 2, 8, 4, 6            # batch, seq_len, num_joints, in_dim
    D, heads = 32, 4                   # hid_dim, heads
    e_dim, n_e, n_codebook, beta = 16, 32, 1, 1.0
    one_codebook_size = n_e // n_codebook
    n_layers = [0, 2]

    key = jax.random.PRNGKey(0)
    kp, kx = jax.random.split(key)
    params = init_params(kp, in_dim=C, n_embd=D, num_joints=V, e_dim=e_dim,
                         n_e=n_e, n_layers_enc=n_layers[1],
                         n_layers_dec=n_layers[1])

    x = jax.random.normal(kx, (B, T, V, C), dtype=jnp.float32)
    valid = jnp.ones((B, T), dtype=jnp.int32)

    fwd = jax.jit(partial(model_forward, heads=heads, beta=beta,
                          one_codebook_size=one_codebook_size))
    out = fwd(params, x, valid)
    jax.block_until_ready(out)

    (rotmat,), aux, indices = out
    assert rotmat.shape == (B, T, V, C)
    assert indices.shape == (B, T, 1)
    assert aux["kl"].shape == (B, T, 1)
    print("KERNEL_OK")
</pallas_src>

<mosaic_0001>
module attributes {stable_mosaic.version = 11 : i64} {
  func.func @_linear_kernel(%arg0: i32, %arg1: memref<32x6xf32, #tpu.memory_space<vmem>>, %arg2: memref<6x32xbf16, #tpu.memory_space<vmem>>, %arg3: memref<1x32xf32, #tpu.memory_space<vmem>>, %arg4: memref<32x32xbf16, #tpu.memory_space<vmem>>) attributes {dimension_semantics = [#tpu.dimension_semantics<parallel>], iteration_bounds = array<i64: 2>, scalar_prefetch = 0 : i64, scratch_operands = 0 : i64, tpu.core_type = #tpu.core_type<tc>, window_params = [{transform_indices = @transform_0, window_bounds = array<i64: 32, 6>}, {pipeline_mode = #tpu.pipeline_mode<synchronous>, transform_indices = @transform_1, window_bounds = array<i64: 6, 32>}, {pipeline_mode = #tpu.pipeline_mode<synchronous>, transform_indices = @transform_2, window_bounds = array<i64: 1, 32>}, {transform_indices = @transform_3, window_bounds = array<i64: 32, 32>}]} {
    %c0 = arith.constant 0 : index
    %c0_0 = arith.constant 0 : index
    %0 = vector.load %arg1[%c0, %c0_0] : memref<32x6xf32, #tpu.memory_space<vmem>>, vector<32x6xf32>
    %1 = arith.truncf %0 : vector<32x6xf32> to vector<32x6xbf16>
    %c0_1 = arith.constant 0 : index
    %c0_2 = arith.constant 0 : index
    %2 = vector.load %arg2[%c0_1, %c0_2] : memref<6x32xbf16, #tpu.memory_space<vmem>>, vector<6x32xbf16>
    %cst = arith.constant dense<0.000000e+00> : vector<32x32xf32>
    %3 = tpu.matmul %1, %2, %cst {dimension_numbers = #tpu.dot_dimension_numbers<[1], [0], [0], [1], [0, 0, 1, 1], [], []>} : vector<32x6xbf16>, vector<6x32xbf16>, vector<32x32xf32> -> vector<32x32xf32>
    %c0_3 = arith.constant 0 : index
    %c0_4 = arith.constant 0 : index
    %4 = vector.load %arg3[%c0_3, %c0_4] : memref<1x32xf32, #tpu.memory_space<vmem>>, vector<1x32xf32>
    %5 = vector.broadcast %4 : vector<1x32xf32> to vector<32x32xf32>
    %6 = arith.addf %3, %5 : vector<32x32xf32>
    %7 = arith.truncf %6 : vector<32x32xf32> to vector<32x32xbf16>
    %c0_5 = arith.constant 0 : index
    %c0_6 = arith.constant 0 : index
    %8 = vector.load %arg4[%c0_5, %c0_6] : memref<32x32xbf16, #tpu.memory_space<vmem>>, vector<32x32xbf16>
    tpu.vector_store %arg4[%c0_5, %c0_6], %7 {strides = array<i32>} : memref<32x32xbf16, #tpu.memory_space<vmem>>, vector<32x32xbf16>,
    return
  }
  func.func @transform_0(%arg0: i32) -> (i32, i32) {
    %c0_i32 = arith.constant 0 : i32
    %c0_i32_0 = arith.constant 0 : i32
    return %arg0, %c0_i32 : i32, i32
  }
  func.func @transform_1(%arg0: i32) -> (i32, i32) {
    %c0_i32 = arith.constant 0 : i32
    %c0_i32_0 = arith.constant 0 : i32
    %c0_i32_1 = arith.constant 0 : i32
    return %c0_i32, %c0_i32_0 : i32, i32
  }
  func.func @transform_2(%arg0: i32) -> (i32, i32) {
    %c0_i32 = arith.constant 0 : i32
    %c0_i32_0 = arith.constant 0 : i32
    %c0_i32_1 = arith.constant 0 : i32
    return %c0_i32, %c0_i32_0 : i32, i32
  }
  func.func @transform_3(%arg0: i32) -> (i32, i32) {
    %c0_i32 = arith.constant 0 : i32
    %c0_i32_0 = arith.constant 0 : i32
    return %arg0, %c0_i32 : i32, i32
  }
}

module attributes {stable_mosaic.version = 11 : i64} {
  func.func @_ln_linear_kernel(%arg0: i32, %arg1: memref<32x32xbf16, #tpu.memory_space<vmem>>, %arg2: memref<1x32xf32, #tpu.memory_space<vmem>>, %arg3: memref<1x32xf32, #tpu.memory_space<vmem>>, %arg4: memref<32x32xbf16, #tpu.memory_space<vmem>>, %arg5: memref<32x32xbf16, #tpu.memory_space<vmem>>) attributes {dimension_semantics = [#tpu.dimension_semantics<parallel>], iteration_bounds = array<i64: 2>, scalar_prefetch = 0 : i64, scratch_operands = 0 : i64, tpu.core_type = #tpu.core_type<tc>, window_params = [{transform_indices = @transform_0, window_bounds = array<i64: 32, 32>}, {pipeline_mode = #tpu.pipeline_mode<synchronous>, transform_indices = @transform_1, window_bounds = array<i64: 1, 32>}, {pipeline_mode = #tpu.pipeline_mode<synchronous>, transform_indices = @transform_2, window_bounds = array<i64: 1, 32>}, {pipeline_mode = #tpu.pipeline_mode<synchronous>, transform_indices = @transform_3, window_bounds = array<i64: 32, 32>}, {transform_indices = @transform_4, window_bounds = array<i64: 32, 32>}]} {
    %c0 = arith.constant 0 : index
    %c0_0 = arith.constant 0 : index
    %0 = vector.load %arg1[%c0, %c0_0] : memref<32x32xbf16, #tpu.memory_space<vmem>>, vector<32x32xbf16>
    %1 = arith.extf %0 : vector<32x32xbf16> to vector<32x32xf32>
    %cst = arith.constant dense<0.000000e+00> : vector<32xf32>
    %2 = vector.multi_reduction <add>, %1, %cst [1] : vector<32x32xf32> to vector<32xf32>
    %3 = vector.shape_cast %2 : vector<32xf32> to vector<32x1xf32>
    %cst_1 = arith.constant 3.200000e+01 : f32
    %4 = vector.broadcast %cst_1 : f32 to vector<32x1xf32>
    %5 = arith.divf %3, %4 : vector<32x1xf32>
    %6 = vector.broadcast %5 : vector<32x1xf32> to vector<32x32xf32>
    %7 = arith.subf %1, %6 : vector<32x32xf32>
    %8 = arith.mulf %7, %7 : vector<32x32xf32>
    %cst_2 = arith.constant dense<0.000000e+00> : vector<32xf32>
    %9 = vector.multi_reduction <add>, %8, %cst_2 [1] : vector<32x32xf32> to vector<32xf32>
    %10 = vector.shape_cast %9 : vector<32xf32> to vector<32x1xf32>
    %cst_3 = arith.constant 3.200000e+01 : f32
    %11 = vector.broadcast %cst_3 : f32 to vector<32x1xf32>
    %12 = arith.divf %10, %11 : vector<32x1xf32>
    %13 = vector.broadcast %5 : vector<32x1xf32> to vector<32x32xf32>
    %14 = arith.subf %1, %13 : vector<32x32xf32>
    %cst_4 = arith.constant 9.99999974E-6 : f32
    %15 = vector.broadcast %cst_4 : f32 to vector<32x1xf32>
    %16 = arith.addf %12, %15 : vector<32x1xf32>
    %17 = math.rsqrt %16 : vector<32x1xf32>
    %18 = vector.broadcast %17 : vector<32x1xf32> to vector<32x32xf32>
    %19 = arith.mulf %14, %18 : vector<32x32xf32>
    %c0_5 = arith.constant 0 : index
    %c0_6 = arith.constant 0 : index
    %20 = vector.load %arg2[%c0_5, %c0_6] : memref<1x32xf32, #tpu.memory_space<vmem>>, vector<1x32xf32>
    %21 = vector.broadcast %20 : vector<1x32xf32> to vector<32x32xf32>
    %22 = arith.mulf %19, %21 : vector<32x32xf32>
    %c0_7 = arith.constant 0 : index
    %c0_8 = arith.constant 0 : index
    %23 = vector.load %arg3[%c0_7, %c0_8] : memref<1x32xf32, #tpu.memory_space<vmem>>, vector<1x32xf32>
    %24 = vector.broadcast %23 : vector<1x32xf32> to vector<32x32xf32>
    %25 = arith.addf %22, %24 : vector<32x32xf32>
    %26 = arith.truncf %25 : vector<32x32xf32> to vector<32x32xbf16>
    %c0_9 = arith.constant 0 : index
    %c0_10 = arith.constant 0 : index
    %27 = vector.load %arg4[%c0_9, %c0_10] : memref<32x32xbf16, #tpu.memory_space<vmem>>, vector<32x32xbf16>
    %cst_11 = arith.constant dense<0.000000e+00> : vector<32x32xf32>
    %28 = tpu.matmul %26, %27, %cst_11 {dimension_numbers = #tpu.dot_dimension_numbers<[1], [0], [0], [1], [0, 0, 1, 1], [], []>} : vector<32x32xbf16>, vector<32x32xbf16>, vector<32x32xf32> -> vector<32x32xf32>
    %29 = arith.truncf %28 : vector<32x32xf32> to vector<32x32xbf16>
    %c0_12 = arith.constant 0 : index
    %c0_13 = arith.constant 0 : index
    %30 = vector.load %arg5[%c0_12, %c0_13] : memref<32x32xbf16, #tpu.memory_space<vmem>>, vector<32x32xbf16>
    tpu.vector_store %arg5[%c0_12, %c0_13], %29 {strides = array<i32>} : memref<32x32xbf16, #tpu.memory_space<vmem>>, vector<32x32xbf16>,
    return
  }
  func.func @transform_0(%arg0: i32) -> (i32, i32) {
    %c0_i32 = arith.constant 0 : i32
    %c0_i32_0 = arith.constant 0 : i32
    return %arg0, %c0_i32 : i32, i32
  }
  func.func @transform_1(%arg0: i32) -> (i32, i32) {
    %c0_i32 = arith.constant 0 : i32
    %c0_i32_0 = arith.constant 0 : i32
    %c0_i32_1 = arith.constant 0 : i32
    return %c0_i32, %c0_i32_0 : i32, i32
  }
  func.func @transform_2(%arg0: i32) -> (i32, i32) {
    %c0_i32 = arith.constant 0 : i32
    %c0_i32_0 = arith.constant 0 : i32
    %c0_i32_1 = arith.constant 0 : i32
    return %c0_i32, %c0_i32_0 : i32, i32
  }
  func.func @transform_3(%arg0: i32) -> (i32, i32) {
    %c0_i32 = arith.constant 0 : i32
    %c0_i32_0 = arith.constant 0 : i32
    %c0_i32_1 = arith.constant 0 : i32
    return %c0_i32, %c0_i32_0 : i32, i32
  }
  func.func @transform_4(%arg0: i32) -> (i32, i32) {
    %c0_i32 = arith.constant 0 : i32
    %c0_i32_0 = arith.constant 0 : i32
    return %arg0, %c0_i32 : i32, i32
  }
}

module attributes {stable_mosaic.version = 11 : i64} {
  func.func @_stblock_kernel(%arg0: i32, %arg1: memref<4x8x32xbf16, #tpu.memory_space<vmem>>, %arg2: memref<4x1x8xf32, #tpu.memory_space<vmem>>, %arg3: memref<1x32xf32, #tpu.memory_space<vmem>>, %arg4: memref<1x32xf32, #tpu.memory_space<vmem>>, %arg5: memref<32x96xbf16, #tpu.memory_space<vmem>>, %arg6: memref<1x96xf32, #tpu.memory_space<vmem>>, %arg7: memref<32x32xbf16, #tpu.memory_space<vmem>>, %arg8: memref<1x32xf32, #tpu.memory_space<vmem>>, %arg9: memref<1x32xf32, #tpu.memory_space<vmem>>, %arg10: memref<1x32xf32, #tpu.memory_space<vmem>>, %arg11: memref<32x128xbf16, #tpu.memory_space<vmem>>, %arg12: memref<1x128xf32, #tpu.memory_space<vmem>>, %arg13: memref<128x32xbf16, #tpu.memory_space<vmem>>, %arg14: memref<1x32xf32, #tpu.memory_space<vmem>>, %arg15: memref<4x8x32xbf16, #tpu.memory_space<vmem>>) attributes {dimension_semantics = [#tpu.dimension_semantics<parallel>], iteration_bounds = array<i64: 2>, scalar_prefetch = 0 : i64, scratch_operands = 0 : i64, tpu.core_type = #tpu.core_type<tc>, window_params = [{transform_indices = @transform_0, window_bounds = array<i64: 4, 8, 32>}, {transform_indices = @transform_1, window_bounds = array<i64: 4, 1, 8>}, {pipeline_mode = #tpu.pipeline_mode<synchronous>, transform_indices = @transform_2, window_bounds = array<i64: 1, 32>}, {pipeline_mode = #tpu.pipeline_mode<synchronous>, transform_indices = @transform_3, window_bounds = array<i64: 1, 32>}, {pipeline_mode = #tpu.pipeline_mode<synchronous>, transform_indices = @transform_4, window_bounds = array<i64: 32, 96>}, {pipeline_mode = #tpu.pipeline_mode<synchronous>, transform_indices = @transform_5, window_bounds = array<i64: 1, 96>}, {pipeline_mode = #tpu.pipeline_mode<synchronous>, transform_indices = @transform_6, window_bounds = array<i64: 32, 32>}, {pipeline_mode = #tpu.pipeline_mode<synchronous>, transform_indices = @transform_7, window_bounds = array<i64: 1, 32>}, {pipeline_mode = #tpu.pipeline_mode<synchronous>, transform_indices = @transform_8, window_bounds = array<i64: 1, 32>}, {pipeline_mode = #tpu.pipeline_mode<synchronous>, transform_indices = @transform_9, window_bounds = array<i64: 1, 32>}, {pipeline_mode = #tpu.pipeline_mode<synchronous>, transform_indices = @transform_10, window_bounds = array<i64: 32, 128>}, {pipeline_mode = #tpu.pipeline_mode<synchronous>, transform_indices = @transform_11, window_bounds = array<i64: 1, 128>}, {pipeline_mode = #tpu.pipeline_mode<synchronous>, transform_indices = @transform_12, window_bounds = array<i64: 128, 32>}, {pipeline_mode = #tpu.pipeline_mode<synchronous>, transform_indices = @transform_13, window_bounds = array<i64: 1, 32>}, {transform_indices = @transform_14, window_bounds = array<i64: 4, 8, 32>}]} {
    %c0 = arith.constant 0 : index
    %c0_0 = arith.constant 0 : index
    %c0_1 = arith.constant 0 : index
    %0 = vector.load %arg1[%c0, %c0_0, %c0_1] : memref<4x8x32xbf16, #tpu.memory_space<vmem>>, vector<4x8x32xbf16>
    %1 = arith.extf %0 : vector<4x8x32xbf16> to vector<4x8x32xf32>
    %cst = arith.constant dense<0.000000e+00> : vector<4x8xf32>
    %2 = vector.multi_reduction <add>, %1, %cst [2] : vector<4x8x32xf32> to vector<4x8xf32>
    %3 = vector.shape_cast %2 : vector<4x8xf32> to vector<4x8x1xf32>
    %cst_2 = arith.constant 3.200000e+01 : f32
    %4 = vector.broadcast %cst_2 : f32 to vector<4x8x1xf32>
    %5 = arith.divf %3, %4 : vector<4x8x1xf32>
    %6 = vector.broadcast %5 : vector<4x8x1xf32> to vector<4x8x32xf32>
    %7 = arith.subf %1, %6 : vector<4x8x32xf32>
    %8 = arith.mulf %7, %7 : vector<4x8x32xf32>
    %cst_3 = arith.constant dense<0.000000e+00> : vector<4x8xf32>
    %9 = vector.multi_reduction <add>, %8, %cst_3 [2] : vector<4x8x32xf32> to vector<4x8xf32>
    %10 = vector.shape_cast %9 : vector<4x8xf32> to vector<4x8x1xf32>
    %cst_4 = arith.constant 3.200000e+01 : f32
    %11 = vector.broadcast %cst_4 : f32 to vector<4x8x1xf32>
    %12 = arith.divf %10, %11 : vector<4x8x1xf32>
    %13 = vector.broadcast %5 : vector<4x8x1xf32> to vector<4x8x32xf32>
    %14 = arith.subf %1, %13 : vector<4x8x32xf32>
    %cst_5 = arith.constant 9.99999974E-6 : f32
    %15 = vector.broadcast %cst_5 : f32 to vector<4x8x1xf32>
    %16 = arith.addf %12, %15 : vector<4x8x1xf32>
    %17 = math.rsqrt %16 : vector<4x8x1xf32>
    %18 = vector.broadcast %17 : vector<4x8x1xf32> to vector<4x8x32xf32>
    %19 = arith.mulf %14, %18 : vector<4x8x32xf32>
    %c0_6 = arith.constant 0 : index
    %c0_7 = arith.constant 0 : index
    %20 = vector.load %arg3[%c0_6, %c0_7] : memref<1x32xf32, #tpu.memory_space<vmem>>, vector<1x32xf32>
    %21 = vector.shape_cast %20 : vector<1x32xf32> to vector<1x1x32xf32>
    %22 = vector.broadcast %21 : vector<1x1x32xf32> to vector<4x8x32xf32>
    %23 = arith.mulf %19, %22 : vector<4x8x32xf32>
    %c0_8 = arith.constant 0 : index
    %c0_9 = arith.constant 0 : index
    %24 = vector.load %arg4[%c0_8, %c0_9] : memref<1x32xf32, #tpu.memory_space<vmem>>, vector<1x32xf32>
    %25 = vector.shape_cast %24 : vector<1x32xf32> to vector<1x1x32xf32>
    %26 = vector.broadcast %25 : vector<1x1x32xf32> to vector<4x8x32xf32>
    %27 = arith.addf %23, %26 : vector<4x8x32xf32>
    %28 = vector.shape_cast %27 : vector<4x8x32xf32> to vector<32x32xf32>
    %29 = arith.truncf %28 : vector<32x32xf32> to vector<32x32xbf16>
    %c0_10 = arith.constant 0 : index
    %c0_11 = arith.constant 0 : index
    %30 = vector.load %arg5[%c0_10, %c0_11] : memref<32x96xbf16, #tpu.memory_space<vmem>>, vector<32x96xbf16>
    %cst_12 = arith.constant dense<0.000000e+00> : vector<32x96xf32>
    %31 = tpu.matmul %29, %30, %cst_12 {dimension_numbers = #tpu.dot_dimension_numbers<[1], [0], [0], [1], [0, 0, 1, 1], [], []>} : vector<32x32xbf16>, vector<32x96xbf16>, vector<32x96xf32> -> vector<32x96xf32>
    %c0_13 = arith.constant 0 : index
    %c0_14 = arith.constant 0 : index
    %32 = vector.load %arg6[%c0_13, %c0_14] : memref<1x96xf32, #tpu.memory_space<vmem>>, vector<1x96xf32>
    %33 = vector.broadcast %32 : vector<1x96xf32> to vector<32x96xf32>
    %34 = arith.addf %31, %33 : vector<32x96xf32>
    %35 = vector.shape_cast %34 : vector<32x96xf32> to vector<4x8x96xf32>
    %c0_15 = arith.constant 0 : index
    %c0_16 = arith.constant 0 : index
    %c0_17 = arith.constant 0 : index
    %36 = vector.load %arg2[%c0_15, %c0_16, %c0_17] : memref<4x1x8xf32, #tpu.memory_space<vmem>>, vector<4x1x8xf32>
    %37 = vector.extract_strided_slice %35 {offsets = [0, 0, 0], sizes = [4, 8, 8], strides = [1, 1, 1]} : vector<4x8x96xf32> to vector<4x8x8xf32>
    %cst_18 = arith.constant 0.353553385 : f32
    %38 = vector.broadcast %cst_18 : f32 to vector<4x8x8xf32>
    %39 = arith.mulf %37, %38 : vector<4x8x8xf32>
    %40 = arith.truncf %39 : vector<4x8x8xf32> to vector<4x8x8xbf16>
    %41 = vector.extract_strided_slice %35 {offsets = [0, 0, 32], sizes = [4, 8, 8], strides = [1, 1, 1]} : vector<4x8x96xf32> to vector<4x8x8xf32>
    %42 = arith.truncf %41 : vector<4x8x8xf32> to vector<4x8x8xbf16>
    %43 = vector.extract_strided_slice %35 {offsets = [0, 0, 64], sizes = [4, 8, 8], strides = [1, 1, 1]} : vector<4x8x96xf32> to vector<4x8x8xf32>
    %44 = arith.truncf %43 : vector<4x8x8xf32> to vector<4x8x8xbf16>
    "tpu.trace_start"() <{level = 10 : i32, message = "bqd,bkd->bqk"}> : () -> ()
    %cst_19 = arith.constant dense<0.000000e+00> : vector<4x8x8xf32>
    %45 = tpu.matmul %40, %42, %cst_19 {dimension_numbers = #tpu.dot_dimension_numbers<[2], [2], [1], [1], [0, 0, 0, 1, 1, 1], [0], [0]>} : vector<4x8x8xbf16>, vector<4x8x8xbf16>, vector<4x8x8xf32> -> vector<4x8x8xf32>
    "tpu.trace_stop"() : () -> ()
    %46 = vector.broadcast %36 : vector<4x1x8xf32> to vector<4x8x8xf32>
    %47 = arith.addf %45, %46 : vector<4x8x8xf32>
    %cst_20 = arith.constant dense<0xFF800000> : vector<4x8xf32>
    %48 = vector.multi_reduction <maximumf>, %47, %cst_20 [2] : vector<4x8x8xf32> to vector<4x8xf32>
    %49 = vector.shape_cast %48 : vector<4x8xf32> to vector<4x8x1xf32>
    %50 = vector.broadcast %49 : vector<4x8x1xf32> to vector<4x8x8xf32>
    %51 = arith.subf %47, %50 : vector<4x8x8xf32>
    %52 = math.exp %51 : vector<4x8x8xf32>
    %cst_21 = arith.constant dense<0.000000e+00> : vector<4x8xf32>
    %53 = vector.multi_reduction <add>, %52, %cst_21 [2] : vector<4x8x8xf32> to vector<4x8xf32>
    %54 = vector.shape_cast %53 : vector<4x8xf32> to vector<4x8x1xf32>
    %55 = tpu.reciprocal %54 {approx = true} : vector<4x8x1xf32> -> vector<4x8x1xf32>
    %56 = vector.broadcast %55 : vector<4x8x1xf32> to vector<4x8x8xf32>
    %57 = arith.mulf %52, %56 : vector<4x8x8xf32>
    %58 = arith.truncf %57 : vector<4x8x8xf32> to vector<4x8x8xbf16>
    "tpu.trace_start"() <{level = 10 : i32, message = "bqk,bkd->bqd"}> : () -> ()
    %cst_22 = arith.constant dense<0.000000e+00> : vector<4x8x8xf32>
    %59 = tpu.matmul %58, %44, %cst_22 {dimension_numbers = #tpu.dot_dimension_numbers<[2], [1], [1], [2], [0, 0, 0, 1, 1, 2], [0], [0]>} : vector<4x8x8xbf16>, vector<4x8x8xbf16>, vector<4x8x8xf32> -> vector<4x8x8xf32>
    "tpu.trace_stop"() : () -> ()
    %60 = vector.extract_strided_slice %35 {offsets = [0, 0, 8], sizes = [4, 8, 8], strides = [1, 1, 1]} : vector<4x8x96xf32> to vector<4x8x8xf32>
    %cst_23 = arith.constant 0.353553385 : f32
    %61 = vector.broadcast %cst_23 : f32 to vector<4x8x8xf32>
    %62 = arith.mulf %60, %61 : vector<4x8x8xf32>
    %63 = arith.truncf %62 : vector<4x8x8xf32> to vector<4x8x8xbf16>
    %64 = vector.extract_strided_slice %35 {offsets = [0, 0, 40], sizes = [4, 8, 8], strides = [1, 1, 1]} : vector<4x8x96xf32> to vector<4x8x8xf32>
    %65 = arith.truncf %64 : vector<4x8x8xf32> to vector<4x8x8xbf16>
    %66 = vector.extract_strided_slice %35 {offsets = [0, 0, 72], sizes = [4, 8, 8], strides = [1, 1, 1]} : vector<4x8x96xf32> to vector<4x8x8xf32>
    %67 = arith.truncf %66 : vector<4x8x8xf32> to vector<4x8x8xbf16>
    "tpu.trace_start"() <{level = 10 : i32, message = "bqd,bkd->bqk"}> : () -> ()
    %cst_24 = arith.constant dense<0.000000e+00> : vector<4x8x8xf32>
    %68 = tpu.matmul %63, %65, %cst_24 {dimension_numbers = #tpu.dot_dimension_numbers<[2], [2], [1], [1], [0, 0, 0, 1, 1, 1], [0], [0]>} : vector<4x8x8xbf16>, vector<4x8x8xbf16>, vector<4x8x8xf32> -> vector<4x8x8xf32>
    "tpu.trace_stop"() : () -> ()
    %69 = vector.broadcast %36 : vector<4x1x8xf32> to vector<4x8x8xf32>
    %70 = arith.addf %68, %69 : vector<4x8x8xf32>
    %cst_25 = arith.constant dense<0xFF800000> : vector<4x8xf32>
    %71 = vector.multi_reduction <maximumf>, %70, %cst_25 [2] : vector<4x8x8xf32> to vector<4x8xf32>
    %72 = vector.shape_cast %71 : vector<4x8xf32> to vector<4x8x1xf32>
    %73 = vector.broadcast %72 : vector<4x8x1xf32> to vector<4x8x8xf32>
    %74 = arith.subf %70, %73 : vector<4x8x8xf32>
    %75 = math.exp %74 : vector<4x8x8xf32>
    %cst_26 = arith.constant dense<0.000000e+00> : vector<4x8xf32>
    %76 = vector.multi_reduction <add>, %75, %cst_26 [2] : vector<4x8x8xf32> to vector<4x8xf32>
    %77 = vector.shape_cast %76 : vector<4x8xf32> to vector<4x8x1xf32>
    %78 = tpu.reciprocal %77 {approx = true} : vector<4x8x1xf32> -> vector<4x8x1xf32>
    %79 = vector.broadcast %78 : vector<4x8x1xf32> to vector<4x8x8xf32>
    %80 = arith.mulf %75, %79 : vector<4x8x8xf32>
    %81 = arith.truncf %80 : vector<4x8x8xf32> to vector<4x8x8xbf16>
    "tpu.trace_start"() <{level = 10 : i32, message = "bqk,bkd->bqd"}> : () -> ()
    %cst_27 = arith.constant dense<0.000000e+00> : vector<4x8x8xf32>
    %82 = tpu.matmul %81, %67, %cst_27 {dimension_numbers = #tpu.dot_dimension_numbers<[2], [1], [1], [2], [0, 0, 0, 1, 1, 2], [0], [0]>} : vector<4x8x8xbf16>, vector<4x8x8xbf16>, vector<4x8x8xf32> -> vector<4x8x8xf32>
    "tpu.trace_stop"() : () -> ()
    %83 = vector.extract_strided_slice %35 {offsets = [0, 0, 16], sizes = [4, 8, 8], strides = [1, 1, 1]} : vector<4x8x96xf32> to vector<4x8x8xf32>
    %cst_28 = arith.constant 0.353553385 : f32
    %84 = vector.broadcast %cst_28 : f32 to vector<4x8x8xf32>
    %85 = arith.mulf %83, %84 : vector<4x8x8xf32>
    %86 = arith.truncf %85 : vector<4x8x8xf32> to vector<4x8x8xbf16>
    %87 = vector.extract_strided_slice %35 {offsets = [0, 0, 48], sizes = [4, 8, 8], strides = [1, 1, 1]} : vector<4x8x96xf32> to vector<4x8x8xf32>
    %88 = arith.truncf %87 : vector<4x8x8xf32> to vector<4x8x8xbf16>
    %89 = vector.extract_strided_slice %35 {offsets = [0, 0, 80], sizes = [4, 8, 8], strides = [1, 1, 1]} : vector<4x8x96xf32> to vector<4x8x8xf32>
    %90 = arith.truncf %89 : vector<4x8x8xf32> to vector<4x8x8xbf16>
    "tpu.trace_start"() <{level = 10 : i32, message = "bqd,bkd->bqk"}> : () -> ()
    %cst_29 = arith.constant dense<0.000000e+00> : vector<4x8x8xf32>
    %91 = tpu.matmul %86, %88, %cst_29 {dimension_numbers = #tpu.dot_dimension_numbers<[2], [2], [1], [1], [0, 0, 0, 1, 1, 1], [0], [0]>} : vector<4x8x8xbf16>, vector<4x8x8xbf16>, vector<4x8x8xf32> -> vector<4x8x8xf32>
    "tpu.trace_stop"() : () -> ()
    %92 = vector.broadcast %36 : vector<4x1x8xf32> to vector<4x8x8xf32>
    %93 = arith.addf %91, %92 : vector<4x8x8xf32>
    %cst_30 = arith.constant dense<0xFF800000> : vector<4x8xf32>
    %94 = vector.multi_reduction <maximumf>, %93, %cst_30 [2] : vector<4x8x8xf32> to vector<4x8xf32>
    %95 = vector.shape_cast %94 : vector<4x8xf32> to vector<4x8x1xf32>
    %96 = vector.broadcast %95 : vector<4x8x1xf32> to vector<4x8x8xf32>
    %97 = arith.subf %93, %96 : vector<4x8x8xf32>
    %98 = math.exp %97 : vector<4x8x8xf32>
    %cst_31 = arith.constant dense<0.000000e+00> : vector<4x8xf32>
    %99 = vector.multi_reduction <add>, %98, %cst_31 [2] : vector<4x8x8xf32> to vector<4x8xf32>
    %100 = vector.shape_cast %99 : vector<4x8xf32> to vector<4x8x1xf32>
    %101 = tpu.reciprocal %100 {approx = true} : vector<4x8x1xf32> -> vector<4x8x1xf32>
    %102 = vector.broadcast %101 : vector<4x8x1xf32> to vector<4x8x8xf32>
    %103 = arith.mulf %98, %102 : vector<4x8x8xf32>
    %104 = arith.truncf %103 : vector<4x8x8xf32> to vector<4x8x8xbf16>
    "tpu.trace_start"() <{level = 10 : i32, message = "bqk,bkd->bqd"}> : () -> ()
    %cst_32 = arith.constant dense<0.000000e+00> : vector<4x8x8xf32>
    %105 = tpu.matmul %104, %90, %cst_32 {dimension_numbers = #tpu.dot_dimension_numbers<[2], [1], [1], [2], [0, 0, 0, 1, 1, 2], [0], [0]>} : vector<4x8x8xbf16>, vector<4x8x8xbf16>, vector<4x8x8xf32> -> vector<4x8x8xf32>
    "tpu.trace_stop"() : () -> ()
    %106 = vector.extract_strided_slice %35 {offsets = [0, 0, 24], sizes = [4, 8, 8], strides = [1, 1, 1]} : vector<4x8x96xf32> to vector<4x8x8xf32>
    %cst_33 = arith.constant 0.353553385 : f32
    %107 = vector.broadcast %cst_33 : f32 to vector<4x8x8xf32>
    %108 = arith.mulf %106, %107 : vector<4x8x8xf32>
    %109 = arith.truncf %108 : vector<4x8x8xf32> to vector<4x8x8xbf16>
    %110 = vector.extract_strided_slice %35 {offsets = [0, 0, 56], sizes = [4, 8, 8], strides = [1, 1, 1]} : vector<4x8x96xf32> to vector<4x8x8xf32>
    %111 = arith.truncf %110 : vector<4x8x8xf32> to vector<4x8x8xbf16>
    %112 = vector.extract_strided_slice %35 {offsets = [0, 0, 88], sizes = [4, 8, 8], strides = [1, 1, 1]} : vector<4x8x96xf32> to vector<4x8x8xf32>
    %113 = arith.truncf %112 : vector<4x8x8xf32> to vector<4x8x8xbf16>
    "tpu.trace_start"() <{level = 10 : i32, message = "bqd,bkd->bqk"}> : () -> ()
    %cst_34 = arith.constant dense<0.000000e+00> : vector<4x8x8xf32>
    %114 = tpu.matmul %109, %111, %cst_34 {dimension_numbers = #tpu.dot_dimension_numbers<[2], [2], [1], [1], [0, 0, 0, 1, 1, 1], [0], [0]>} : vector<4x8x8xbf16>, vector<4x8x8xbf16>, vector<4x8x8xf32> -> vector<4x8x8xf32>
    "tpu.trace_stop"() : () -> ()
    %115 = vector.broadcast %36 : vector<4x1x8xf32> to vector<4x8x8xf32>
    %116 = arith.addf %114, %115 : vector<4x8x8xf32>
    %cst_35 = arith.constant dense<0xFF800000> : vector<4x8xf32>
    %117 = vector.multi_reduction <maximumf>, %116, %cst_35 [2] : vector<4x8x8xf32> to vector<4x8xf32>
    %118 = vector.shape_cast %117 : vector<4x8xf32> to vector<4x8x1xf32>
    %119 = vector.broadcast %118 : vector<4x8x1xf32> to vector<4x8x8xf32>
    %120 = arith.subf %116, %119 : vector<4x8x8xf32>
    %121 = math.exp %120 : vector<4x8x8xf32>
    %cst_36 = arith.constant dense<0.000000e+00> : vector<4x8xf32>
    %122 = vector.multi_reduction <add>, %121, %cst_36 [2] : vector<4x8x8xf32> to vector<4x8xf32>
    %123 = vector.shape_cast %122 : vector<4x8xf32> to vector<4x8x1xf32>
    %124 = tpu.reciprocal %123 {approx = true} : vector<4x8x1xf32> -> vector<4x8x1xf32>
    %125 = vector.broadcast %124 : vector<4x8x1xf32> to vector<4x8x8xf32>
    %126 = arith.mulf %121, %125 : vector<4x8x8xf32>
    %127 = arith.truncf %126 : vector<4x8x8xf32> to vector<4x8x8xbf16>
    "tpu.trace_start"() <{level = 10 : i32, message = "bqk,bkd->bqd"}> : () -> ()
    %cst_37 = arith.constant dense<0.000000e+00> : vector<4x8x8xf32>
    %128 = tpu.matmul %127, %113, %cst_37 {dimension_numbers = #tpu.dot_dimension_numbers<[2], [1], [1], [2], [0, 0, 0, 1, 1, 2], [0], [0]>} : vector<4x8x8xbf16>, vector<4x8x8xbf16>, vector<4x8x8xf32> -> vector<4x8x8xf32>
    "tpu.trace_stop"() : () -> ()
    %129 = tpu.concatenate %59, %82, %105, %128 in 2 : vector<4x8x8xf32>, vector<4x8x8xf32>, vector<4x8x8xf32>, vector<4x8x8xf32> -> vector<4x8x32xf32>
    %130 = vector.shape_cast %129 : vector<4x8x32xf32> to vector<32x32xf32>
    %131 = arith.truncf %130 : vector<32x32xf32> to vector<32x32xbf16>
    %c0_38 = arith.constant 0 : index
    %c0_39 = arith.constant 0 : index
    %132 = vector.load %arg7[%c0_38, %c0_39] : memref<32x32xbf16, #tpu.memory_space<vmem>>, vector<32x32xbf16>
    %cst_40 = arith.constant dense<0.000000e+00> : vector<32x32xf32>
    %133 = tpu.matmul %131, %132, %cst_40 {dimension_numbers = #tpu.dot_dimension_numbers<[1], [0], [0], [1], [0, 0, 1, 1], [], []>} : vector<32x32xbf16>, vector<32x32xbf16>, vector<32x32xf32> -> vector<32x32xf32>
    %c0_41 = arith.constant 0 : index
    %c0_42 = arith.constant 0 : index
    %134 = vector.load %arg8[%c0_41, %c0_42] : memref<1x32xf32, #tpu.memory_space<vmem>>, vector<1x32xf32>
    %135 = vector.broadcast %134 : vector<1x32xf32> to vector<32x32xf32>
    %136 = arith.addf %133, %135 : vector<32x32xf32>
    %137 = vector.shape_cast %136 : vector<32x32xf32> to vector<4x8x32xf32>
    %138 = arith.addf %1, %137 : vector<4x8x32xf32>
    %cst_43 = arith.constant dense<0.000000e+00> : vector<4x8xf32>
    %139 = vector.multi_reduction <add>, %138, %cst_43 [2] : vector<4x8x32xf32> to vector<4x8xf32>
    %140 = vector.shape_cast %139 : vector<4x8xf32> to vector<4x8x1xf32>
    %cst_44 = arith.constant 3.200000e+01 : f32
    %141 = vector.broadcast %cst_44 : f32 to vector<4x8x1xf32>
    %142 = arith.divf %140, %141 : vector<4x8x1xf32>
    %143 = vector.broadcast %142 : vector<4x8x1xf32> to vector<4x8x32xf32>
    %144 = arith.subf %138, %143 : vector<4x8x32xf32>
    %145 = arith.mulf %144, %144 : vector<4x8x32xf32>
    %cst_45 = arith.constant dense<0.000000e+00> : vector<4x8xf32>
    %146 = vector.multi_reduction <add>, %145, %cst_45 [2] : vector<4x8x32xf32> to vector<4x8xf32>
    %147 = vector.shape_cast %146 : vector<4x8xf32> to vector<4x8x1xf32>
    %cst_46 = arith.constant 3.200000e+01 : f32
    %148 = vector.broadcast %cst_46 : f32 to vector<4x8x1xf32>
    %149 = arith.divf %147, %148 : vector<4x8x1xf32>
    %150 = vector.broadcast %142 : vector<4x8x1xf32> to vector<4x8x32xf32>
    %151 = arith.subf %138, %150 : vector<4x8x32xf32>
    %cst_47 = arith.constant 9.99999974E-6 : f32
    %152 = vector.broadcast %cst_47 : f32 to vector<4x8x1xf32>
    %153 = arith.addf %149, %152 : vector<4x8x1xf32>
    %154 = math.rsqrt %153 : vector<4x8x1xf32>
    %155 = vector.broadcast %154 : vector<4x8x1xf32> to vector<4x8x32xf32>
    %156 = arith.mulf %151, %155 : vector<4x8x32xf32>
    %c0_48 = arith.constant 0 : index
    %c0_49 = arith.constant 0 : index
    %157 = vector.load %arg9[%c0_48, %c0_49] : memref<1x32xf32, #tpu.memory_space<vmem>>, vector<1x32xf32>
    %158 = vector.shape_cast %157 : vector<1x32xf32> to vector<1x1x32xf32>
    %159 = vector.broadcast %158 : vector<1x1x32xf32> to vector<4x8x32xf32>
    %160 = arith.mulf %156, %159 : vector<4x8x32xf32>
    %c0_50 = arith.constant 0 : index
    %c0_51 = arith.constant 0 : index
    %161 = vector.load %arg10[%c0_50, %c0_51] : memref<1x32xf32, #tpu.memory_space<vmem>>, vector<1x32xf32>
    %162 = vector.shape_cast %161 : vector<1x32xf32> to vector<1x1x32xf32>
    %163 = vector.broadcast %162 : vector<1x1x32xf32> to vector<4x8x32xf32>
    %164 = arith.addf %160, %163 : vector<4x8x32xf32>
    %165 = vector.shape_cast %164 : vector<4x8x32xf32> to vector<32x32xf32>
    %166 = arith.truncf %165 : vector<32x32xf32> to vector<32x32xbf16>
    %c0_52 = arith.constant 0 : index
    %c0_53 = arith.constant 0 : index
    %167 = vector.load %arg11[%c0_52, %c0_53] : memref<32x128xbf16, #tpu.memory_space<vmem>>, vector<32x128xbf16>
    %cst_54 = arith.constant dense<0.000000e+00> : vector<32x128xf32>
    %168 = tpu.matmul %166, %167, %cst_54 {dimension_numbers = #tpu.dot_dimension_numbers<[1], [0], [0], [1], [0, 0, 1, 1], [], []>} : vector<32x32xbf16>, vector<32x128xbf16>, vector<32x128xf32> -> vector<32x128xf32>
    %c0_55 = arith.constant 0 : index
    %c0_56 = arith.constant 0 : index
    %169 = vector.load %arg12[%c0_55, %c0_56] : memref<1x128xf32, #tpu.memory_space<vmem>>, vector<1x128xf32>
    %170 = vector.broadcast %169 : vector<1x128xf32> to vector<32x128xf32>
    %171 = arith.addf %168, %170 : vector<32x128xf32>
    %172 = arith.mulf %171, %171 : vector<32x128xf32>
    %173 = arith.mulf %171, %172 : vector<32x128xf32>
    %cst_57 = arith.constant 4.471500e-02 : f32
    %174 = vector.broadcast %cst_57 : f32 to vector<32x128xf32>
    %175 = arith.mulf %174, %173 : vector<32x128xf32>
    %176 = arith.addf %171, %175 : vector<32x128xf32>
    %cst_58 = arith.constant 0.797884583 : f32
    %177 = vector.broadcast %cst_58 : f32 to vector<32x128xf32>
    %178 = arith.mulf %177, %176 : vector<32x128xf32>
    %179 = math.tanh %178 : vector<32x128xf32>
    %cst_59 = arith.constant 1.000000e+00 : f32
    %180 = vector.broadcast %cst_59 : f32 to vector<32x128xf32>
    %181 = arith.addf %180, %179 : vector<32x128xf32>
    %cst_60 = arith.constant 5.000000e-01 : f32
    %182 = vector.broadcast %cst_60 : f32 to vector<32x128xf32>
    %183 = arith.mulf %182, %181 : vector<32x128xf32>
    %184 = arith.mulf %171, %183 : vector<32x128xf32>
    %185 = arith.truncf %184 : vector<32x128xf32> to vector<32x128xbf16>
    %c0_61 = arith.constant 0 : index
    %c0_62 = arith.constant 0 : index
    %186 = vector.load %arg13[%c0_61, %c0_62] : memref<128x32xbf16, #tpu.memory_space<vmem>>, vector<128x32xbf16>
    %cst_63 = arith.constant dense<0.000000e+00> : vector<32x32xf32>
    %187 = tpu.matmul %185, %186, %cst_63 {dimension_numbers = #tpu.dot_dimension_numbers<[1], [0], [0], [1], [0, 0, 1, 1], [], []>} : vector<32x128xbf16>, vector<128x32xbf16>, vector<32x32xf32> -> vector<32x32xf32>
    %c0_64 = arith.constant 0 : index
    %c0_65 = arith.constant 0 : index
    %188 = vector.load %arg14[%c0_64, %c0_65] : memref<1x32xf32, #tpu.memory_space<vmem>>, vector<1x32xf32>
    %189 = vector.broadcast %188 : vector<1x32xf32> to vector<32x32xf32>
    %190 = arith.addf %187, %189 : vector<32x32xf32>
    %191 = vector.shape_cast %190 : vector<32x32xf32> to vector<4x8x32xf32>
    %192 = arith.addf %138, %191 : vector<4x8x32xf32>
    %193 = arith.truncf %192 : vector<4x8x32xf32> to vector<4x8x32xbf16>
    %c0_66 = arith.constant 0 : index
    %c0_67 = arith.constant 0 : index
    %c0_68 = arith.constant 0 : index
    %194 = vector.load %arg15[%c0_66, %c0_67, %c0_68] : memref<4x8x32xbf16, #tpu.memory_space<vmem>>, vector<4x8x32xbf16>
    tpu.vector_store %arg15[%c0_66, %c0_67, %c0_68], %193 {strides = array<i32>} : memref<4x8x32xbf16, #tpu.memory_space<vmem>>, vector<4x8x32xbf16>,
    return
  }
  func.func @transform_0(%arg0: i32) -> (i32, i32, i32) {
    %c0_i32 = arith.constant 0 : i32
    %c0_i32_0 = arith.constant 0 : i32
    %c0_i32_1 = arith.constant 0 : i32
    return %arg0, %c0_i32, %c0_i32_0 : i32, i32, i32
  }
  func.func @transform_1(%arg0: i32) -> (i32, i32, i32) {
    %c0_i32 = arith.constant 0 : i32
    %c0_i32_0 = arith.constant 0 : i32
    %c0_i32_1 = arith.constant 0 : i32
    return %arg0, %c0_i32, %c0_i32_0 : i32, i32, i32
  }
  func.func @transform_2(%arg0: i32) -> (i32, i32) {
    %c0_i32 = arith.constant 0 : i32
    %c0_i32_0 = arith.constant 0 : i32
    %c0_i32_1 = arith.constant 0 : i32
    return %c0_i32, %c0_i32_0 : i32, i32
  }
  func.func @transform_3(%arg0: i32) -> (i32, i32) {
    %c0_i32 = arith.constant 0 : i32
    %c0_i32_0 = arith.constant 0 : i32
    %c0_i32_1 = arith.constant 0 : i32
    return %c0_i32, %c0_i32_0 : i32, i32
  }
  func.func @transform_4(%arg0: i32) -> (i32, i32) {
    %c0_i32 = arith.constant 0 : i32
    %c0_i32_0 = arith.constant 0 : i32
    %c0_i32_1 = arith.constant 0 : i32
    return %c0_i32, %c0_i32_0 : i32, i32
  }
  func.func @transform_5(%arg0: i32) -> (i32, i32) {
    %c0_i32 = arith.constant 0 : i32
    %c0_i32_0 = arith.constant 0 : i32
    %c0_i32_1 = arith.constant 0 : i32
    return %c0_i32, %c0_i32_0 : i32, i32
  }
  func.func @transform_6(%arg0: i32) -> (i32, i32) {
    %c0_i32 = arith.constant 0 : i32
    %c0_i32_0 = arith.constant 0 : i32
    %c0_i32_1 = arith.constant 0 : i32
    return %c0_i32, %c0_i32_0 : i32, i32
  }
  func.func @transform_7(%arg0: i32) -> (i32, i32) {
    %c0_i32 = arith.constant 0 : i32
    %c0_i32_0 = arith.constant 0 : i32
    %c0_i32_1 = arith.constant 0 : i32
    return %c0_i32, %c0_i32_0 : i32, i32
  }
  func.func @transform_8(%arg0: i32) -> (i32, i32) {
    %c0_i32 = arith.constant 0 : i32
    %c0_i32_0 = arith.constant 0 : i32
    %c0_i32_1 = arith.constant 0 : i32
    return %c0_i32, %c0_i32_0 : i32, i32
  }
  func.func @transform_9(%arg0: i32) -> (i32, i32) {
    %c0_i32 = arith.constant 0 : i32
    %c0_i32_0 = arith.constant 0 : i32
    %c0_i32_1 = arith.constant 0 : i32
    return %c0_i32, %c0_i32_0 : i32, i32
  }
  func.func @transform_10(%arg0: i32) -> (i32, i32) {
    %c0_i32 = arith.constant 0 : i32
    %c0_i32_0 = arith.constant 0 : i32
    %c0_i32_1 = arith.constant 0 : i32
    return %c0_i32, %c0_i32_0 : i32, i32
  }
  func.func @transform_11(%arg0: i32) -> (i32, i32) {
    %c0_i32 = arith.constant 0 : i32
    %c0_i32_0 = arith.constant 0 : i32
    %c0_i32_1 = arith.constant 0 : i32
    return %c0_i32, %c0_i32_0 : i32, i32
  }
  func.func @transform_12(%arg0: i32) -> (i32, i32) {
    %c0_i32 = arith.constant 0 : i32
    %c0_i32_0 = arith.constant 0 : i32
    %c0_i32_1 = arith.constant 0 : i32
    return %c0_i32, %c0_i32_0 : i32, i32
  }
  func.func @transform_13(%arg0: i32) -> (i32, i32) {
    %c0_i32 = arith.constant 0 : i32
    %c0_i32_0 = arith.constant 0 : i32
    %c0_i32_1 = arith.constant 0 : i32
    return %c0_i32, %c0_i32_0 : i32, i32
  }
  func.func @transform_14(%arg0: i32) -> (i32, i32, i32) {
    %c0_i32 = arith.constant 0 : i32
    %c0_i32_0 = arith.constant 0 : i32
    %c0_i32_1 = arith.constant 0 : i32
    return %arg0, %c0_i32, %c0_i32_0 : i32, i32, i32
  }
}

module attributes {stable_mosaic.version = 11 : i64} {
  func.func @_linear_kernel(%arg0: i32, %arg1: memref<8x128xbf16, #tpu.memory_space<vmem>>, %arg2: memref<128x16xbf16, #tpu.memory_space<vmem>>, %arg3: memref<1x16xf32, #tpu.memory_space<vmem>>, %arg4: memref<8x16xf32, #tpu.memory_space<vmem>>) attributes {dimension_semantics = [#tpu.dimension_semantics<parallel>], iteration_bounds = array<i64: 2>, scalar_prefetch = 0 : i64, scratch_operands = 0 : i64, tpu.core_type = #tpu.core_type<tc>, window_params = [{transform_indices = @transform_0, window_bounds = array<i64: 8, 128>}, {pipeline_mode = #tpu.pipeline_mode<synchronous>, transform_indices = @transform_1, window_bounds = array<i64: 128, 16>}, {pipeline_mode = #tpu.pipeline_mode<synchronous>, transform_indices = @transform_2, window_bounds = array<i64: 1, 16>}, {transform_indices = @transform_3, window_bounds = array<i64: 8, 16>}]} {
    %c0 = arith.constant 0 : index
    %c0_0 = arith.constant 0 : index
    %0 = vector.load %arg1[%c0, %c0_0] : memref<8x128xbf16, #tpu.memory_space<vmem>>, vector<8x128xbf16>
    %c0_1 = arith.constant 0 : index
    %c0_2 = arith.constant 0 : index
    %1 = vector.load %arg2[%c0_1, %c0_2] : memref<128x16xbf16, #tpu.memory_space<vmem>>, vector<128x16xbf16>
    %cst = arith.constant dense<0.000000e+00> : vector<8x16xf32>
    %2 = tpu.matmul %0, %1, %cst {dimension_numbers = #tpu.dot_dimension_numbers<[1], [0], [0], [1], [0, 0, 1, 1], [], []>} : vector<8x128xbf16>, vector<128x16xbf16>, vector<8x16xf32> -> vector<8x16xf32>
    %c0_3 = arith.constant 0 : index
    %c0_4 = arith.constant 0 : index
    %3 = vector.load %arg3[%c0_3, %c0_4] : memref<1x16xf32, #tpu.memory_space<vmem>>, vector<1x16xf32>
    %4 = vector.broadcast %3 : vector<1x16xf32> to vector<8x16xf32>
    %5 = arith.addf %2, %4 : vector<8x16xf32>
    %c0_5 = arith.constant 0 : index
    %c0_6 = arith.constant 0 : index
    %6 = vector.load %arg4[%c0_5, %c0_6] : memref<8x16xf32, #tpu.memory_space<vmem>>, vector<8x16xf32>
    tpu.vector_store %arg4[%c0_5, %c0_6], %5 {strides = array<i32>} : memref<8x16xf32, #tpu.memory_space<vmem>>, vector<8x16xf32>,
    return
  }
  func.func @transform_0(%arg0: i32) -> (i32, i32) {
    %c0_i32 = arith.constant 0 : i32
    %c0_i32_0 = arith.constant 0 : i32
    return %arg0, %c0_i32 : i32, i32
  }
  func.func @transform_1(%arg0: i32) -> (i32, i32) {
    %c0_i32 = arith.constant 0 : i32
    %c0_i32_0 = arith.constant 0 : i32
    %c0_i32_1 = arith.constant 0 : i32
    return %c0_i32, %c0_i32_0 : i32, i32
  }
  func.func @transform_2(%arg0: i32) -> (i32, i32) {
    %c0_i32 = arith.constant 0 : i32
    %c0_i32_0 = arith.constant 0 : i32
    %c0_i32_1 = arith.constant 0 : i32
    return %c0_i32, %c0_i32_0 : i32, i32
  }
  func.func @transform_3(%arg0: i32) -> (i32, i32) {
    %c0_i32 = arith.constant 0 : i32
    %c0_i32_0 = arith.constant 0 : i32
    return %arg0, %c0_i32 : i32, i32
  }
}

module attributes {stable_mosaic.version = 11 : i64} {
  func.func @_vq_kernel(%arg0: i32, %arg1: memref<16x16xf32, #tpu.memory_space<vmem>>, %arg2: memref<32x16xf32, #tpu.memory_space<vmem>>, %arg3: memref<1x32xf32, #tpu.memory_space<vmem>>, %arg4: memref<16x16xf32, #tpu.memory_space<vmem>>, %arg5: memref<1x16xi32, #tpu.memory_space<vmem>>, %arg6: memref<1x16xf32, #tpu.memory_space<vmem>>) attributes {dimension_semantics = [#tpu.dimension_semantics<parallel>], iteration_bounds = array<i64: 1>, scalar_prefetch = 0 : i64, scratch_operands = 0 : i64, tpu.core_type = #tpu.core_type<tc>, window_params = [{transform_indices = @transform_0, window_bounds = array<i64: 16, 16>}, {pipeline_mode = #tpu.pipeline_mode<synchronous>, transform_indices = @transform_1, window_bounds = array<i64: 32, 16>}, {pipeline_mode = #tpu.pipeline_mode<synchronous>, transform_indices = @transform_2, window_bounds = array<i64: 1, 32>}, {transform_indices = @transform_3, window_bounds = array<i64: 16, 16>}, {transform_indices = @transform_4, window_bounds = array<i64: 1, 16>}, {transform_indices = @transform_5, window_bounds = array<i64: 1, 16>}]} {
    %c0 = arith.constant 0 : index
    %c0_0 = arith.constant 0 : index
    %0 = vector.load %arg1[%c0, %c0_0] : memref<16x16xf32, #tpu.memory_space<vmem>>, vector<16x16xf32>
    %c0_1 = arith.constant 0 : index
    %c0_2 = arith.constant 0 : index
    %1 = vector.load %arg2[%c0_1, %c0_2] : memref<32x16xf32, #tpu.memory_space<vmem>>, vector<32x16xf32>
    %cst = arith.constant dense<0.000000e+00> : vector<16x32xf32>
    %2 = tpu.matmul %0, %1, %cst {dimension_numbers = #tpu.dot_dimension_numbers<[1], [1], [0], [0], [0, 0, 1, 0], [], []>} : vector<16x16xf32>, vector<32x16xf32>, vector<16x32xf32> -> vector<16x32xf32>
    %c0_3 = arith.constant 0 : index
    %c0_4 = arith.constant 0 : index
    %3 = vector.load %arg3[%c0_3, %c0_4] : memref<1x32xf32, #tpu.memory_space<vmem>>, vector<1x32xf32>
    %cst_5 = arith.constant 2.000000e+00 : f32
    %4 = vector.broadcast %cst_5 : f32 to vector<16x32xf32>
    %5 = arith.mulf %4, %2 : vector<16x32xf32>
    %6 = vector.broadcast %3 : vector<1x32xf32> to vector<16x32xf32>
    %7 = arith.subf %6, %5 : vector<16x32xf32>
    %cst_6 = arith.constant dense<0x7F800000> : vector<16xf32>
    %8 = vector.multi_reduction <minimumf>, %7, %cst_6 [1] : vector<16x32xf32> to vector<16xf32>
    %9 = vector.shape_cast %8 : vector<16xf32> to vector<16x1xf32>
    %10 = tpu.iota {dimensions = array<i32: 1>} : vector<16x32xi32>
    %11 = vector.broadcast %9 : vector<16x1xf32> to vector<16x32xf32>
    %12 = arith.cmpf ole, %7, %11 : vector<16x32xf32>
    %c32_i32 = arith.constant 32 : i32
    %13 = vector.broadcast %c32_i32 : i32 to vector<16x32xi32>
    %14 = arith.select %12, %10, %13 : vector<16x32xi1>, vector<16x32xi32>
    %cst_7 = arith.constant dense<2147483647> : vector<16xi32>
    %15 = vector.multi_reduction <minsi>, %14, %cst_7 [1] : vector<16x32xi32> to vector<16xi32>
    %16 = vector.shape_cast %15 : vector<16xi32> to vector<16x1xi32>
    %17 = vector.broadcast %16 : vector<16x1xi32> to vector<16x32xi32>
    %18 = arith.cmpi eq, %10, %17 : vector<16x32xi32>
    %19 = arith.extui %18 : vector<16x32xi1> to vector<16x32xi32>
    %20 = arith.sitofp %19 : vector<16x32xi32> to vector<16x32xf32>
    %cst_8 = arith.constant dense<0.000000e+00> : vector<16x16xf32>
    %21 = tpu.matmul %20, %1, %cst_8 {dimension_numbers = #tpu.dot_dimension_numbers<[1], [0], [0], [1], [0, 0, 1, 1], [], []>} : vector<16x32xf32>, vector<32x16xf32>, vector<16x16xf32> -> vector<16x16xf32>
    %c0_9 = arith.constant 0 : index
    %c0_10 = arith.constant 0 : index
    %22 = vector.load %arg4[%c0_9, %c0_10] : memref<16x16xf32, #tpu.memory_space<vmem>>, vector<16x16xf32>
    tpu.vector_store %arg4[%c0_9, %c0_10], %21 {strides = array<i32>} : memref<16x16xf32, #tpu.memory_space<vmem>>, vector<16x16xf32>,
    %23 = tpu.iota {dimensions = array<i32: 1>} : vector<1x32xi32>
    %24 = arith.sitofp %23 : vector<1x32xi32> to vector<1x32xf32>
    %cst_11 = arith.constant dense<0.000000e+00> : vector<1x16xf32>
    %25 = tpu.matmul %24, %20, %cst_11 {dimension_numbers = #tpu.dot_dimension_numbers<[1], [1], [0], [0], [0, 0, 1, 0], [], []>} : vector<1x32xf32>, vector<16x32xf32>, vector<1x16xf32> -> vector<1x16xf32>
    %26 = arith.fptosi %25 : vector<1x16xf32> to vector<1x16xi32>
    %c0_12 = arith.constant 0 : index
    %c0_13 = arith.constant 0 : index
    %27 = vector.load %arg5[%c0_12, %c0_13] : memref<1x16xi32, #tpu.memory_space<vmem>>, vector<1x16xi32>
    tpu.vector_store %arg5[%c0_12, %c0_13], %26 {strides = array<i32>} : memref<1x16xi32, #tpu.memory_space<vmem>>, vector<1x16xi32>,
    %28 = arith.subf %21, %0 : vector<16x16xf32>
    %29 = arith.mulf %28, %28 : vector<16x16xf32>
    %cst_14 = arith.constant 1.000000e+00 : f32
    %30 = vector.broadcast %cst_14 : f32 to vector<1x16xf32>
    %cst_15 = arith.constant dense<0.000000e+00> : vector<1x16xf32>
    %31 = tpu.matmul %30, %29, %cst_15 {dimension_numbers = #tpu.dot_dimension_numbers<[1], [1], [0], [0], [0, 0, 1, 0], [], []>} : vector<1x16xf32>, vector<16x16xf32>, vector<1x16xf32> -> vector<1x16xf32>
    %cst_16 = arith.constant 1.250000e-01 : f32
    %32 = vector.broadcast %cst_16 : f32 to vector<1x16xf32>
    %33 = arith.mulf %32, %31 : vector<1x16xf32>
    %c0_17 = arith.constant 0 : index
    %c0_18 = arith.constant 0 : index
    %34 = vector.load %arg6[%c0_17, %c0_18] : memref<1x16xf32, #tpu.memory_space<vmem>>, vector<1x16xf32>
    tpu.vector_store %arg6[%c0_17, %c0_18], %33 {strides = array<i32>} : memref<1x16xf32, #tpu.memory_space<vmem>>, vector<1x16xf32>,
    return
  }
  func.func @transform_0(%arg0: i32) -> (i32, i32) {
    %c0_i32 = arith.constant 0 : i32
    %c0_i32_0 = arith.constant 0 : i32
    return %arg0, %c0_i32 : i32, i32
  }
  func.func @transform_1(%arg0: i32) -> (i32, i32) {
    %c0_i32 = arith.constant 0 : i32
    %c0_i32_0 = arith.constant 0 : i32
    %c0_i32_1 = arith.constant 0 : i32
    return %c0_i32, %c0_i32_0 : i32, i32
  }
  func.func @transform_2(%arg0: i32) -> (i32, i32) {
    %c0_i32 = arith.constant 0 : i32
    %c0_i32_0 = arith.constant 0 : i32
    %c0_i32_1 = arith.constant 0 : i32
    return %c0_i32, %c0_i32_0 : i32, i32
  }
  func.func @transform_3(%arg0: i32) -> (i32, i32) {
    %c0_i32 = arith.constant 0 : i32
    %c0_i32_0 = arith.constant 0 : i32
    return %arg0, %c0_i32 : i32, i32
  }
  func.func @transform_4(%arg0: i32) -> (i32, i32) {
    %c0_i32 = arith.constant 0 : i32
    %c0_i32_0 = arith.constant 0 : i32
    return %c0_i32, %arg0 : i32, i32
  }
  func.func @transform_5(%arg0: i32) -> (i32, i32) {
    %c0_i32 = arith.constant 0 : i32
    %c0_i32_0 = arith.constant 0 : i32
    return %c0_i32, %arg0 : i32, i32
  }
}

module attributes {stable_mosaic.version = 11 : i64} {
  func.func @_linear_kernel(%arg0: i32, %arg1: memref<16x16xf32, #tpu.memory_space<vmem>>, %arg2: memref<16x128xbf16, #tpu.memory_space<vmem>>, %arg3: memref<1x128xf32, #tpu.memory_space<vmem>>, %arg4: memref<16x128xbf16, #tpu.memory_space<vmem>>) attributes {dimension_semantics = [#tpu.dimension_semantics<parallel>], iteration_bounds = array<i64: 1>, scalar_prefetch = 0 : i64, scratch_operands = 0 : i64, tpu.core_type = #tpu.core_type<tc>, window_params = [{transform_indices = @transform_0, window_bounds = array<i64: 16, 16>}, {pipeline_mode = #tpu.pipeline_mode<synchronous>, transform_indices = @transform_1, window_bounds = array<i64: 16, 128>}, {pipeline_mode = #tpu.pipeline_mode<synchronous>, transform_indices = @transform_2, window_bounds = array<i64: 1, 128>}, {transform_indices = @transform_3, window_bounds = array<i64: 16, 128>}]} {
    %c0 = arith.constant 0 : index
    %c0_0 = arith.constant 0 : index
    %0 = vector.load %arg1[%c0, %c0_0] : memref<16x16xf32, #tpu.memory_space<vmem>>, vector<16x16xf32>
    %1 = arith.truncf %0 : vector<16x16xf32> to vector<16x16xbf16>
    %c0_1 = arith.constant 0 : index
    %c0_2 = arith.constant 0 : index
    %2 = vector.load %arg2[%c0_1, %c0_2] : memref<16x128xbf16, #tpu.memory_space<vmem>>, vector<16x128xbf16>
    %cst = arith.constant dense<0.000000e+00> : vector<16x128xf32>
    %3 = tpu.matmul %1, %2, %cst {dimension_numbers = #tpu.dot_dimension_numbers<[1], [0], [0], [1], [0, 0, 1, 1], [], []>} : vector<16x16xbf16>, vector<16x128xbf16>, vector<16x128xf32> -> vector<16x128xf32>
    %c0_3 = arith.constant 0 : index
    %c0_4 = arith.constant 0 : index
    %4 = vector.load %arg3[%c0_3, %c0_4] : memref<1x128xf32, #tpu.memory_space<vmem>>, vector<1x128xf32>
    %5 = vector.broadcast %4 : vector<1x128xf32> to vector<16x128xf32>
    %6 = arith.addf %3, %5 : vector<16x128xf32>
    %7 = arith.truncf %6 : vector<16x128xf32> to vector<16x128xbf16>
    %c0_5 = arith.constant 0 : index
    %c0_6 = arith.constant 0 : index
    %8 = vector.load %arg4[%c0_5, %c0_6] : memref<16x128xbf16, #tpu.memory_space<vmem>>, vector<16x128xbf16>
    tpu.vector_store %arg4[%c0_5, %c0_6], %7 {strides = array<i32>} : memref<16x128xbf16, #tpu.memory_space<vmem>>, vector<16x128xbf16>,
    return
  }
  func.func @transform_0(%arg0: i32) -> (i32, i32) {
    %c0_i32 = arith.constant 0 : i32
    %c0_i32_0 = arith.constant 0 : i32
    return %arg0, %c0_i32 : i32, i32
  }
  func.func @transform_1(%arg0: i32) -> (i32, i32) {
    %c0_i32 = arith.constant 0 : i32
    %c0_i32_0 = arith.constant 0 : i32
    %c0_i32_1 = arith.constant 0 : i32
    return %c0_i32, %c0_i32_0 : i32, i32
  }
  func.func @transform_2(%arg0: i32) -> (i32, i32) {
    %c0_i32 = arith.constant 0 : i32
    %c0_i32_0 = arith.constant 0 : i32
    %c0_i32_1 = arith.constant 0 : i32
    return %c0_i32, %c0_i32_0 : i32, i32
  }
  func.func @transform_3(%arg0: i32) -> (i32, i32) {
    %c0_i32 = arith.constant 0 : i32
    %c0_i32_0 = arith.constant 0 : i32
    return %arg0, %c0_i32 : i32, i32
  }
}

module attributes {stable_mosaic.version = 11 : i64} {
  func.func @_mlp_kernel(%arg0: i32, %arg1: memref<32x32xbf16, #tpu.memory_space<vmem>>, %arg2: memref<32x32xbf16, #tpu.memory_space<vmem>>, %arg3: memref<1x32xf32, #tpu.memory_space<vmem>>, %arg4: memref<32x6xbf16, #tpu.memory_space<vmem>>, %arg5: memref<1x6xf32, #tpu.memory_space<vmem>>, %arg6: memref<32x6xf32, #tpu.memory_space<vmem>>) attributes {dimension_semantics = [#tpu.dimension_semantics<parallel>], iteration_bounds = array<i64: 2>, scalar_prefetch = 0 : i64, scratch_operands = 0 : i64, tpu.core_type = #tpu.core_type<tc>, window_params = [{transform_indices = @transform_0, window_bounds = array<i64: 32, 32>}, {pipeline_mode = #tpu.pipeline_mode<synchronous>, transform_indices = @transform_1, window_bounds = array<i64: 32, 32>}, {pipeline_mode = #tpu.pipeline_mode<synchronous>, transform_indices = @transform_2, window_bounds = array<i64: 1, 32>}, {pipeline_mode = #tpu.pipeline_mode<synchronous>, transform_indices = @transform_3, window_bounds = array<i64: 32, 6>}, {pipeline_mode = #tpu.pipeline_mode<synchronous>, transform_indices = @transform_4, window_bounds = array<i64: 1, 6>}, {transform_indices = @transform_5, window_bounds = array<i64: 32, 6>}]} {
    %c0 = arith.constant 0 : index
    %c0_0 = arith.constant 0 : index
    %0 = vector.load %arg1[%c0, %c0_0] : memref<32x32xbf16, #tpu.memory_space<vmem>>, vector<32x32xbf16>
    %c0_1 = arith.constant 0 : index
    %c0_2 = arith.constant 0 : index
    %1 = vector.load %arg2[%c0_1, %c0_2] : memref<32x32xbf16, #tpu.memory_space<vmem>>, vector<32x32xbf16>
    %cst = arith.constant dense<0.000000e+00> : vector<32x32xf32>
    %2 = tpu.matmul %0, %1, %cst {dimension_numbers = #tpu.dot_dimension_numbers<[1], [0], [0], [1], [0, 0, 1, 1], [], []>} : vector<32x32xbf16>, vector<32x32xbf16>, vector<32x32xf32> -> vector<32x32xf32>
    %c0_3 = arith.constant 0 : index
    %c0_4 = arith.constant 0 : index
    %3 = vector.load %arg3[%c0_3, %c0_4] : memref<1x32xf32, #tpu.memory_space<vmem>>, vector<1x32xf32>
    %4 = vector.broadcast %3 : vector<1x32xf32> to vector<32x32xf32>
    %5 = arith.addf %2, %4 : vector<32x32xf32>
    %cst_5 = arith.constant 0.000000e+00 : f32
    %6 = vector.broadcast %cst_5 : f32 to vector<32x32xf32>
    %7 = arith.maximumf %5, %6 : vector<32x32xf32>
    %8 = arith.truncf %7 : vector<32x32xf32> to vector<32x32xbf16>
    %c0_6 = arith.constant 0 : index
    %c0_7 = arith.constant 0 : index
    %9 = vector.load %arg4[%c0_6, %c0_7] : memref<32x6xbf16, #tpu.memory_space<vmem>>, vector<32x6xbf16>
    %cst_8 = arith.constant dense<0.000000e+00> : vector<32x6xf32>
    %10 = tpu.matmul %8, %9, %cst_8 {dimension_numbers = #tpu.dot_dimension_numbers<[1], [0], [0], [1], [0, 0, 1, 1], [], []>} : vector<32x32xbf16>, vector<32x6xbf16>, vector<32x6xf32> -> vector<32x6xf32>
    %c0_9 = arith.constant 0 : index
    %c0_10 = arith.constant 0 : index
    %11 = vector.load %arg5[%c0_9, %c0_10] : memref<1x6xf32, #tpu.memory_space<vmem>>, vector<1x6xf32>
    %12 = vector.broadcast %11 : vector<1x6xf32> to vector<32x6xf32>
    %13 = arith.addf %10, %12 : vector<32x6xf32>
    %c0_11 = arith.constant 0 : index
    %c0_12 = arith.constant 0 : index
    %14 = vector.load %arg6[%c0_11, %c0_12] : memref<32x6xf32, #tpu.memory_space<vmem>>, vector<32x6xf32>
    tpu.vector_store %arg6[%c0_11, %c0_12], %13 {strides = array<i32>} : memref<32x6xf32, #tpu.memory_space<vmem>>, vector<32x6xf32>,
    return
  }
  func.func @transform_0(%arg0: i32) -> (i32, i32) {
    %c0_i32 = arith.constant 0 : i32
    %c0_i32_0 = arith.constant 0 : i32
    return %arg0, %c0_i32 : i32, i32
  }
  func.func @transform_1(%arg0: i32) -> (i32, i32) {
    %c0_i32 = arith.constant 0 : i32
    %c0_i32_0 = arith.constant 0 : i32
    %c0_i32_1 = arith.constant 0 : i32
    return %c0_i32, %c0_i32_0 : i32, i32
  }
  func.func @transform_2(%arg0: i32) -> (i32, i32) {
    %c0_i32 = arith.constant 0 : i32
    %c0_i32_0 = arith.constant 0 : i32
    %c0_i32_1 = arith.constant 0 : i32
    return %c0_i32, %c0_i32_0 : i32, i32
  }
  func.func @transform_3(%arg0: i32) -> (i32, i32) {
    %c0_i32 = arith.constant 0 : i32
    %c0_i32_0 = arith.constant 0 : i32
    %c0_i32_1 = arith.constant 0 : i32
    return %c0_i32, %c0_i32_0 : i32, i32
  }
  func.func @transform_4(%arg0: i32) -> (i32, i32) {
    %c0_i32 = arith.constant 0 : i32
    %c0_i32_0 = arith.constant 0 : i32
    %c0_i32_1 = arith.constant 0 : i32
    return %c0_i32, %c0_i32_0 : i32, i32
  }
  func.func @transform_5(%arg0: i32) -> (i32, i32) {
    %c0_i32 = arith.constant 0 : i32
    %c0_i32_0 = arith.constant 0 : i32
    return %arg0, %c0_i32 : i32, i32
  }
}

</mosaic_0001>

<bundles_post_ra>
// kernel: model_forward.11
= control target key start
LH: loop header
LB: loop body
LE: loop exit
PB: predicated region body
PF: predicated region fallthrough
CT: control target
= control target key end

     0   :  { %s394_s12 = smov 0   ;;  %s417_s0 = inlined_call_operand.vmem [shape: f32[64,6], index: 0, kind: input, shape index: {}]   ;;  %s418_s1 = inlined_call_operand.vmem [shape: bf16[6,32], index: 1, kind: input, shape index: {}]   ;;  %s419_s2 = inlined_call_operand.vmem [shape: f32[1,32], index: 2, kind: input, shape index: {}]   ;;  %s420_s3 = inlined_call_operand.vmem [shape: bf16[64,32], index: 3, kind: output, shape index: {}]  }
   0x1 LB: > { %s326_s13 = sadd.s32 4294967295, %s372_s12   ;;  %p330_p0 = scmp.ge.s32.totalorder %s372_s12, 1  ;;  %s372_s12 = sphi %s394_s12, %s13_s12  }
   0x2   : > { %p138_p1 = scmp.lt.s32.totalorder %s372_s12, 3 }
   0x4   : > { %p139_p2 = pnand %p330_p0, %p138_p1 }
   0x5   : > { %s331_s16 = sshll.u32 (!%p139_p2), %s326_s13, 2 }
   0x6   : > { %142 = sbr.rel (%p139_p2) target bundleno = 222 (0xde), region = 32  ;;  %p163_p3 = scmp.lt.s32.totalorder (!%p139_p2), %s331_s16, 7 }
   0xb   : > { %v181_v0 = vld [vmem:[%s418_s1] sm:$0x7]  ;;  %vm196_vm0 = vcmask 1042432   ;;  %s422_s16 = smov (!%p163_p3, %s331_s16), 7  ;;  %vm189_vm1 = vcmask 48128   ;;  %vm265_vm2 = vcmask 257024  }
   0xc   : > { %357 = vmatprep.subr.msk.bf16.mxu0 %vm196_vm0, %v181_v0  ;;  %v198_v1 = vsel %vm196_vm0, %v181_v0, 0  ;;  %s332_s17 = sshll.u32 %s422_s16, 3  ;;  %s334_s21 = sshll.u32 %s422_s16, 2  ;;  %v335_v9 = vld [vmem:[%s419_s2] ss:$0 sm:$0xff] }
   0xd   : > { %352 = vmatpush3.bf16.msra.mxu0 %v198_v1  ;;  %s166_s20 = scalar_lea.vmem %s417_s0, %s332_s17  ;;  %s172_s26 = scalar_lea.vmem %s420_s3, %s334_s21 }
   0xe   : > { %v175_v2 = vld [vmem:[%s166_s20] sm:$0xff]  ;;  %v176_v3 = vld [vmem:[%s166_s20 + $0x8] sm:$0xff]  ;;  %v177_v4 = vld [vmem:[%s166_s20 + $0x10] sm:$0xff] }
   0xf   : > { %v179_v5 = vpack.c.bf16 %v176_v3, %v175_v2  ;;  %v178_v6 = vld [vmem:[%s166_s20 + $0x18] sm:$0xff] }
  0x10   : > { %v180_v7 = vpack.c.bf16 %v178_v6, %v177_v4 }
  0x11   : > { %353 = vmatprep.mubr.msk.bf16.mxu0 %vm189_vm1, %v179_v5 }
  0x12   : > { %354 = vmatmul.mubr.msk.bf16.vlgmr.msra.gmra.mxu0 %vm189_vm1, %v180_v7 }
  0xd2   : > { %v355_v8 = vpop.f32.mrf.mxu0 }
  0xd3   : > { %v243_v14 = vadd.f32 %v355_v8, %v335_v9 }
  0xd4   : > { %v234_v10 = vpop.f32.mrf.mxu0 }
  0xd5   : > { %v235_v11 = vadd.f32 %v335_v9, %v234_v10  ;;  %v346_v19 = vpack.c.bf16 %v243_v14, %v243_v14 }
  0xd6   : > { %v356_v12 = vpop.f32.mrf.mxu0 }
  0xd7   : > { %v344_v13 = vpack.c.bf16 %v235_v11, %v235_v11  ;;  %v246_v16 = vadd.f32 %v356_v12, %v335_v9  ;;  %268 = vst.msk [vmem:[%s172_s26 + $0x8] sm:$0xf] %vm265_vm2, %v346_v19 }
  0xd8   : > { %v237_v15 = vpop.f32.mrf.mxu0 }
  0xd9   : > { %266 = vst.msk [vmem:[%s172_s26] sm:$0xf] %vm265_vm2, %v344_v13  ;;  %v238_v17 = vadd.f32 %v335_v9, %v237_v15  ;;  %v347_v20 = vpack.c.bf16 %v246_v16, %v246_v16 }
  0xdb   : > { %v345_v18 = vpack.c.bf16 %v238_v17, %v238_v17  ;;  %269 = vst.msk [vmem:[%s172_s26 + $0xc] sm:$0xf] %vm265_vm2, %v347_v20 }
  0xdd   : > { %267 = vst.msk [vmem:[%s172_s26 + $0x4] sm:$0xf] %vm265_vm2, %v345_v18 }
  0xde PF: > { %s13_s12 = sadd.s32 1, %s372_s12  }
  0xdf   : > { %p10_p4 = scmp.ge.s32.totalorder %s13_s12, 4  }
  0xe1   :  { %12 = sbr.rel (!%p10_p4) target bundleno = 1 (0x1), region = 62 }

// kernel: model_forward.14
= control target key start
LH: loop header
LB: loop body
LE: loop exit
PB: predicated region body
PF: predicated region fallthrough
CT: control target
= control target key end

     0   :  { %s533_s15 = smov 0   ;;  %s579_s0 = inlined_call_operand.vmem [shape: bf16[64,32], index: 0, kind: input, shape index: {}]   ;;  %s580_s1 = inlined_call_operand.vmem [shape: f32[1,32], index: 1, kind: input, shape index: {}]   ;;  %s581_s2 = inlined_call_operand.vmem [shape: f32[1,32], index: 2, kind: input, shape index: {}]   ;;  %s582_s3 = inlined_call_operand.vmem [shape: bf16[32,32], index: 3, kind: input, shape index: {}]   ;;  %s583_s4 = inlined_call_operand.vmem [shape: bf16[64,32], index: 4, kind: output, shape index: {}]  }
   0x1 LB: > { %s436_s16 = sadd.s32 4294967295, %s506_s15   ;;  %p440_p0 = scmp.ge.s32.totalorder %s506_s15, 1  ;;  %s506_s15 = sphi %s533_s15, %s14_s15  }
   0x2   : > { %p163_p1 = scmp.lt.s32.totalorder %s506_s15, 3 }
   0x4   : > { %p164_p2 = pnand %p440_p0, %p163_p1 }
   0x5   : > { %s441_s17 = sshll.u32 (!%p164_p2), %s436_s16, 2 }
   0x6   : > { %167 = sbr.rel (%p164_p2) target bundleno = 537 (0x219), region = 36  ;;  %p190_p3 = scmp.lt.s32.totalorder (!%p164_p2), %s441_s17, 7 }
   0xb   : > { %s585_s17 = smov (!%p190_p3, %s441_s17), 7  ;;  %vm210_vm0 = vcmask 261120   ;;  %v490_v30 = vld [vmem:[%s582_s3 + $0x8] sm:$0xff]   ;;  %v491_v31 = vld [vmem:[%s582_s3] sm:$0xff]   ;;  %vm375_vm1 = vcmask 257024  }
   0xc   : > { %s442_s18 = sshll.u32 %s585_s17, 2  ;;  %474 = vmatprep.subr.bf16.mxu0 %v490_v30  ;;  %v445_v46 = vld [vmem:[%s580_s1] ss:$0 sm:$0xff] }
   0xd   : > { %s193_s21 = scalar_lea.vmem %s579_s0, %s442_s18  ;;  %475 = vmatpush3.bf16.msra.mxu0 %v490_v30  ;;  %v446_v51 = vld [vmem:[%s581_s2] ss:$0 sm:$0xff]  ;;  %s199_s6 = scalar_lea.vmem %s583_s4, %s442_s18 }
   0xe   : > { %v462_v0 = vld [vmem:[%s193_s21] sm:$0xff]   ;;  %v469_v1 = vld [vmem:[%s193_s21 + $0x8] sm:$0xff]   ;;  %476 = vmatprep.subr.bf16.mxu0 %v491_v31 }
   0xf   : > { %v463_v2 = vunpack.c.l.bf16 %v462_v0  ;;  %v467_v3 = vunpack.c.l.bf16 %v469_v1  ;;  %v464_v4 = vunpack.c.h.bf16 %v462_v0  ;;  %v468_v5 = vunpack.c.h.bf16 %v469_v1 }
  0x11   : > { %v211_v6 = vsel %vm210_vm0, %v463_v2, 0.0  ;;  %v217_v7 = vsel %vm210_vm0, %v467_v3, 0.0  ;;  %v214_v8 = vsel %vm210_vm0, %v464_v4, 0.0  ;;  %v220_v9 = vsel %vm210_vm0, %v468_v5, 0.0  ;;  %477 = vmatpush3.bf16.msra.mxu0 %v491_v31 }
  0x12   : > { %212 = vadd.xlane.f32.xlu0 %v211_v6  ;;  %218 = vadd.xlane.f32.xlu1 %v217_v7 }
  0x16   : > { %215 = vadd.xlane.f32.xlu0 %v214_v8  ;;  %221 = vadd.xlane.f32.xlu1 %v220_v9 }
  0x9b   : > { %v213_v10 = vpop.xlane.xlu0 %212  ;;  %v219_v11 = vpop.xlane.xlu1 %218 }
  0x9c   : > { %v224_v12 = vmul.f32 0.03125, %v213_v10  ;;  %v226_v13 = vmul.f32 0.03125, %v219_v11 }
  0x9e   : > { %v228_v14 = vsub.f32 %v463_v2, %v224_v12  ;;  %v230_v15 = vsub.f32 %v467_v3, %v226_v13 }
  0x9f   : > { %v216_v16 = vpop.xlane.xlu0 %215  ;;  %v222_v17 = vpop.xlane.xlu1 %221 }
  0xa0   : > { %v225_v18 = vmul.f32 0.03125, %v216_v16  ;;  %v227_v19 = vmul.f32 0.03125, %v222_v17  ;;  %v232_v20 = vmul.f32 %v228_v14, %v228_v14  ;;  %v234_v21 = vmul.f32 %v230_v15, %v230_v15 }
  0xa2   : > { %v229_v22 = vsub.f32 %v464_v4, %v225_v18  ;;  %v231_v23 = vsub.f32 %v468_v5, %v227_v19  ;;  %v236_v24 = vsel %vm210_vm0, %v232_v20, 0.0  ;;  %v242_v25 = vsel %vm210_vm0, %v234_v21, 0.0 }
  0xa3   : > { %237 = vadd.xlane.f32.xlu0 %v236_v24 }
  0xa4   : > { %v233_v26 = vmul.f32 %v229_v22, %v229_v22  ;;  %v235_v27 = vmul.f32 %v231_v23, %v231_v23 }
  0xa6   : > { %v239_v28 = vsel %vm210_vm0, %v233_v26, 0.0  ;;  %v245_v29 = vsel %vm210_vm0, %v235_v27, 0.0 }
  0xa7   : > { %243 = vadd.xlane.f32.xlu0 %v242_v25  ;;  %240 = vadd.xlane.f32.xlu1 %v239_v28 }
  0xab   : > { %246 = vadd.xlane.f32.xlu1 %v245_v29 }
 0x12c   : > { %v238_v32 = vpop.xlane.xlu0 %237 }
 0x12d   : > { %v248_v33 = vmul.f32 0.03125, %v238_v32 }
 0x12f   : > { %v252_v34 = vadd.f32 1e-05, %v248_v33 }
 0x130   : > { %v241_v35 = vpop.xlane.xlu1 %240  ;;  %v244_v36 = vpop.xlane.xlu0 %243 }
 0x131   : > { %492 = vrsqrt.f32 %v252_v34  ;;  %v249_v37 = vmul.f32 0.03125, %v241_v35  ;;  %v250_v38 = vmul.f32 0.03125, %v244_v36 }
 0x133   : > { %v253_v39 = vadd.f32 1e-05, %v249_v37  ;;  %v254_v40 = vadd.f32 1e-05, %v250_v38 }
 0x134   : > { %v247_v41 = vpop.xlane.xlu1 %246 }
 0x135   : > { %494 = vrsqrt.f32 %v253_v39  ;;  %v251_v42 = vmul.f32 0.03125, %v247_v41 }
 0x136   : > { %496 = vrsqrt.f32 %v254_v40 }
 0x137   : > { %v255_v43 = vadd.f32 1e-05, %v251_v42 }
 0x139   : > { %498 = vrsqrt.f32 %v255_v43 }
 0x13e   : > { %v493_v44 = vpop.eup %492 }
 0x13f   : > { %v260_v45 = vmul.f32 %v493_v44, %v228_v14 }
 0x141   : > { %v271_v50 = vmul.f32 %v445_v46, %v260_v45 }
 0x142   : > { %v495_v47 = vpop.eup %494 }
 0x143   : > { %v497_v48 = vpop.eup %496  ;;  %v261_v49 = vmul.f32 %v495_v47, %v229_v22  ;;  %v282_v55 = vadd.f32 %v446_v51, %v271_v50 }
 0x144   : > { %v262_v52 = vmul.f32 %v497_v48, %v230_v15 }
 0x145   : > { %v272_v53 = vmul.f32 %v445_v46, %v261_v49 }
 0x146   : > { %v499_v54 = vpop.eup %498  ;;  %v273_v58 = vmul.f32 %v445_v46, %v262_v52 }
 0x147   : > { %v283_v56 = vadd.f32 %v446_v51, %v272_v53  ;;  %v263_v57 = vmul.f32 %v499_v54, %v231_v23 }
 0x148   : > { %v284_v61 = vadd.f32 %v446_v51, %v273_v58 }
 0x149   : > { %v286_v59 = vpack.c.bf16 %v283_v56, %v282_v55  ;;  %v274_v60 = vmul.f32 %v445_v46, %v263_v57 }
 0x14b   : > { %478 = vmatprep.mubr.msk.bf16.mxu0 %vm210_vm0, %v286_v59  ;;  %v285_v62 = vadd.f32 %v446_v51, %v274_v60 }
 0x14d   : > { %v287_v63 = vpack.c.bf16 %v285_v62, %v284_v61 }
 0x14f   : > { %479 = vmatmul.mubr.msk.bf16.vlgmr.msra.gmra.mxu0 %vm210_vm0, %v287_v63 }
 0x20f   : > { %v480_v0 = vpop.f32.mrf.mxu0 }
 0x210   : > { %v459_v6 = vpack.c.bf16 %v480_v0, %v480_v0 }
 0x211   : > { %v344_v1 = vpop.f32.mrf.mxu0 }
 0x212   : > { %v457_v2 = vpack.c.bf16 %v344_v1, %v344_v1  ;;  %378 = vst.msk [vmem:[%s199_s6 + $0x8] sm:$0xf] %vm375_vm1, %v459_v6 }
 0x213   : > { %v481_v3 = vpop.f32.mrf.mxu0 }
 0x214   : > { %376 = vst.msk [vmem:[%s199_s6] sm:$0xf] %vm375_vm1, %v457_v2  ;;  %v460_v7 = vpack.c.bf16 %v481_v3, %v481_v3 }
 0x215   : > { %v347_v4 = vpop.f32.mrf.mxu0 }
 0x216   : > { %v458_v5 = vpack.c.bf16 %v347_v4, %v347_v4  ;;  %379 = vst.msk [vmem:[%s199_s6 + $0xc] sm:$0xf] %vm375_vm1, %v460_v7 }
 0x218   : > { %377 = vst.msk [vmem:[%s199_s6 + $0x4] sm:$0xf] %vm375_vm1, %v458_v5 }
 0x219 PF: > { %s14_s15 = sadd.s32 1, %s506_s15  }
 0x21a   : > { %p11_p4 = scmp.ge.s32.totalorder %s14_s15, 4  }
 0x21c   :  { %13 = sbr.rel (!%p11_p4) target bundleno = 1 (0x1), region = 66 }

// kernel: model_forward.15
= control target key start
LH: loop header
LB: loop body
LE: loop exit
PB: predicated region body
PF: predicated region fallthrough
CT: control target
= control target key end

     0   :  { %s429_s12 = smov 0   ;;  %s473_s0 = inlined_call_operand.vmem [shape: bf16[16,128], index: 0, kind: input, shape index: {}]   ;;  %s474_s1 = inlined_call_operand.vmem [shape: bf16[128,16], index: 1, kind: input, shape index: {}]   ;;  %s475_s2 = inlined_call_operand.vmem [shape: f32[1,16], index: 2, kind: input, shape index: {}]   ;;  %s476_s3 = inlined_call_operand.vmem [shape: f32[16,16], index: 3, kind: output, shape index: {}]  }
   0x1 LB: > { %s334_s13 = sadd.s32 4294967295, %s405_s12   ;;  %p338_p0 = scmp.ge.s32.totalorder %s405_s12, 1  ;;  %s405_s12 = sphi %s429_s12, %s13_s12  }
   0x2   : > { %p136_p1 = scmp.lt.s32.totalorder %s405_s12, 3 }
   0x4   : > { %p137_p2 = pnand %p338_p0, %p136_p1 }
   0x5   : > { %p158_p3 = scmp.lt.s32.totalorder (!%p137_p2), %s334_s13, 1 }
   0x6   : > { %140 = sbr.rel (%p137_p2) target bundleno = 243 (0xf3), region = 32 }
   0xb   : > { %v391_v0 = vld [vmem:[%s474_s1 + $0x38] sm:$0xff]   ;;  %v407_v1 = vmov 0.0   ;;  %v392_v2 = vld [vmem:[%s474_s1 + $0x30] sm:$0xff]   ;;  %vm408_vm0 = vmmov 0   ;;  %v393_v3 = vld [vmem:[%s474_s1 + $0x28] sm:$0xff]   ;;  %s478_s13 = smov (!%p158_p3, %s334_s13), 1 }
   0xc   : > { %361 = vmatprep.subr.bf16.mxu0 %v407_v1  ;;  %377 = vmatprep.mubr.msk.bf16.mxu0 %vm408_vm0, %v407_v1  ;;  %v394_v4 = vld [vmem:[%s474_s1 + $0x20] sm:$0xff]   ;;  %v395_v5 = vld [vmem:[%s474_s1 + $0x18] sm:$0xff]   ;;  %v396_v6 = vld [vmem:[%s474_s1 + $0x10] sm:$0xff]   ;;  %s339_s28 = sshll.u32 %s478_s13, 2  ;;  %s340_s7 = sshll.u32 %s478_s13, 3  ;;  %vm279_vm1 = vcmask 130048  }
   0xd   : > { %362 = vmatpush3.bf16.msra.mxu0 %v391_v0  ;;  %v397_v7 = vld [vmem:[%s474_s1 + $0x8] sm:$0xff]   ;;  %v398_v8 = vld [vmem:[%s474_s1] sm:$0xff]   ;;  %s161_s6 = scalar_lea.vmem %s473_s0, %s339_s28  ;;  %s165_s14 = scalar_lea.vmem %s476_s3, %s340_s7 }
   0xe   : > { %363 = vmatprep.subr.bf16.mxu0 %v407_v1  ;;  %v167_v9 = vld [vmem:[%s161_s6] sm:$0xf] }
   0xf   : > { %v341_v10 = vld [vmem:[%s475_s2] ss:$0 sm:$0xff] }
  0x11   : > { %364 = vmatpush3.bf16.msra.mxu0 %v392_v2 }
  0x12   : > { %365 = vmatprep.subr.bf16.mxu0 %v407_v1 }
  0x15   : > { %366 = vmatpush3.bf16.msra.mxu0 %v393_v3 }
  0x16   : > { %367 = vmatprep.subr.bf16.mxu0 %v407_v1 }
  0x19   : > { %368 = vmatpush3.bf16.msra.mxu0 %v394_v4 }
  0x1a   : > { %369 = vmatprep.subr.bf16.mxu0 %v407_v1 }
  0x1d   : > { %370 = vmatpush3.bf16.msra.mxu0 %v395_v5 }
  0x1e   : > { %371 = vmatprep.subr.bf16.mxu0 %v407_v1 }
  0x21   : > { %372 = vmatpush3.bf16.msra.mxu0 %v396_v6 }
  0x22   : > { %373 = vmatprep.subr.bf16.mxu0 %v407_v1 }
  0x25   : > { %374 = vmatpush3.bf16.msra.mxu0 %v397_v7 }
  0x26   : > { %375 = vmatprep.subr.bf16.mxu0 %v407_v1 }
  0x29   : > { %376 = vmatpush3.bf16.msra.mxu0 %v398_v8 }
  0x2c   : > { %378 = vmatmul.mubr.bf16.vlgmr.msra.gmra.mxu0 %v167_v9 }
  0xec   : > { %v273_v11 = vpop.f32.mrf.mxu0 }
  0xed   : > { %v274_v12 = vadd.f32 %v341_v10, %v273_v11 }
  0xee   : > { %v379_v13 = vpop.f32.mrf.mxu0 }
  0xef   : > { %280 = vst.msk [vmem:[%s165_s14] sm:$0xff] %vm279_vm1, %v274_v12 }
  0xf0   : > { %v276_v14 = vpop.f32.mrf.mxu0 }
  0xf2   : > { %v380_v15 = vpop.f32.mrf.mxu0 }
  0xf3 PF: > { %s13_s12 = sadd.s32 1, %s405_s12  }
  0xf4   : > { %p10_p4 = scmp.ge.s32.totalorder %s13_s12, 4  }
  0xf6   :  { %12 = sbr.rel (!%p10_p4) target bundleno = 1 (0x1), region = 62 }

// kernel: model_forward.17
= control target key start
LH: loop header
LB: loop body
LE: loop exit
PB: predicated region body
PF: predicated region fallthrough
CT: control target
= control target key end

     0   :  { %v115_v0 = vmov 0.0   ;;  %vm116_vm0 = vmmov 0   ;;  %vm33_vm1 = vcmask 130048   ;;  %s152_s1 = inlined_call_operand.vmem [shape: bf16[16,128], index: 1, kind: input, shape index: {}]   ;;  %s153_s0 = inlined_call_operand.vmem [shape: f32[16,16], index: 0, kind: input, shape index: {}]   ;;  %s154_s2 = inlined_call_operand.vmem [shape: f32[1,128], index: 2, kind: input, shape index: {}]   ;;  %s155_s3 = inlined_call_operand.vmem [shape: bf16[16,128], index: 3, kind: output, shape index: {}]  }
   0x1   :  { %106 = vmatprep.subr.bf16.mxu0 %v115_v0  ;;  %v114_v1 = vld [vmem:[%s152_s1] sm:$0xff]   ;;  %108 = vmatprep.mubr.msk.bf16.mxu0 %vm116_vm0, %v115_v0  ;;  %v16_v3 = vld [vmem:[%s153_s0 + $0x8] sm:$0xff] }
   0x2   :  { %v15_v2 = vld [vmem:[%s153_s0] sm:$0xff]  ;;  %107 = vmatpush3.bf16.msra.mxu0 %v114_v1 }
   0x3   :  { %v17_v4 = vpack.c.bf16 %v16_v3, %v15_v2  ;;  %v92_v6 = vld [vmem:[%s154_s2] ss:$0 sm:$0xff] }
   0x5   :  { %109 = vmatmul.mubr.msk.bf16.vlgmr.msra.gmra.mxu0 %vm33_vm1, %v17_v4 }
  0xc5   :  { %v71_v5 = vpop.f32.mrf.mxu0 }
  0xc6   :  { %v72_v9 = vadd.f32 %v92_v6, %v71_v5 }
  0xc7   :  { %v110_v7 = vpop.f32.mrf.mxu0 }
  0xc9   :  { %v74_v8 = vpop.f32.mrf.mxu0 }
  0xca   :  { %v75_v10 = vadd.f32 %v92_v6, %v74_v8 }
  0xcb   :  { %v111_v11 = vpop.f32.mrf.mxu0 }
  0xcc   :  { %v102_v12 = vpack.c.bf16 %v75_v10, %v72_v9 }
  0xce   :  { %103 = vst [vmem:[%s155_s3] sm:$0xff] %v102_v12  }

// kernel: model_forward.16
= control target key start
LH: loop header
LB: loop body
LE: loop exit
PB: predicated region body
PF: predicated region fallthrough
CT: control target
= control target key end

     0   :  { %vm23_vm0 = vcmask 130048   ;;  %vm128_vm1 = vcmask 261120   ;;  %v135_v15 = vlaneseq  ;;  %v510_v35 = vmov 0.0   ;;  %s608_s1 = inlined_call_operand.vmem [shape: f32[32,16], index: 1, kind: input, shape index: {}]   ;;  %s609_s0 = inlined_call_operand.vmem [shape: f32[16,16], index: 0, kind: input, shape index: {}]   ;;  %s610_s2 = inlined_call_operand.vmem [shape: f32[1,32], index: 2, kind: input, shape index: {}]   ;;  %s611_s3 = inlined_call_operand.vmem [shape: f32[16,16], index: 3, kind: output, shape index: {0}]   ;;  %s612_s4 = inlined_call_operand.vmem [shape: s32[1,16], index: 4, kind: output, shape index: {1}]   ;;  %s613_s5 = inlined_call_operand.vmem [shape: f32[1,16], index: 5, kind: output, shape index: {2}]  }
   0x1   :  { %v22_v0 = vld [vmem:[%s608_s1 + $0x18] sm:$0xff]  ;;  %v21_v1 = vld [vmem:[%s608_s1 + $0x10] sm:$0xff]  ;;  %v553_v2 = vld [vmem:[%s609_s0] sm:$0xff]  ;;  %vm511_vm8 = vmmov 0   ;;  %v512_v55 = vmov 1.0   ;;  %vm335_vm9 = vcmask 122880  }
   0x2   :  { %469 = vmatprep.subr.msk.mxu0 %vm23_vm0, %v22_v0  ;;  %480 = vmatprep.subr.mxu1 %v22_v0  ;;  %v20_v3 = vld [vmem:[%s608_s1 + $0x8] sm:$0xff]  ;;  %v19_v4 = vld [vmem:[%s608_s1] sm:$0xff]  ;;  %v136_v16 = vand.u32 127, %v135_v15 }
   0x3   :  { %470 = vmatpush3.xpose.msk.msra.mxu0 %vm23_vm0, %v22_v0  ;;  %477 = vmatprep.mubr.msk.f32.mxu0 %vm23_vm0, %v553_v2  ;;  %v573_v5 = vld [vmem:[%s609_s0 + $0x8] sm:$0xff]  ;;  %v440_v10 = vld [vmem:[%s610_s2] ss:$0 sm:$0xff] }
   0x4   :  { %471 = vmatprep.subr.msk.mxu0 %vm23_vm0, %v21_v1  ;;  %481 = vmatpush3.msra.mxu1 %v22_v0  ;;  %v260_v48 = vcvt.s32.f32 %v136_v16 }
   0x5   :  { %482 = vmatprep.subr.mxu1 %v21_v1 }
   0x6   :  { %483 = vmatpush3.msra.mxu1 %v21_v1 }
   0x7   :  { %472 = vmatpush3.xpose.msk.msra.mxu0 %vm23_vm0, %v21_v1  ;;  %484 = vmatprep.subr.mxu1 %v20_v3 }
   0x8   :  { %473 = vmatprep.subr.msk.mxu0 %vm23_vm0, %v20_v3  ;;  %485 = vmatpush3.msra.mxu1 %v20_v3 }
   0x9   :  { %486 = vmatprep.subr.mxu1 %v19_v4 }
   0xa   :  { %487 = vmatpush3.msra.mxu1 %v19_v4 }
   0xb   :  { %474 = vmatpush3.xpose.msk.msra.mxu0 %vm23_vm0, %v20_v3  ;;  %491 = vmatprep.subr.mxu1 %v510_v35 }
   0xc   :  { %475 = vmatprep.subr.msk.mxu0 %vm23_vm0, %v19_v4 }
   0xf   :  { %476 = vmatpush3.xpose.msk.msra.mxu0 %vm23_vm0, %v19_v4 }
  0x10   :  { %498 = vmatprep.subr.mxu0 %v510_v35 }
  0x12   :  { %478 = vmatmul.mubr.msk.f32.vlgmr.msra.gmra.mxu0 %vm23_vm0, %v573_v5 }
  0x13   :  { %502 = vmatprep.mubr.msk.f32.mxu0 %vm511_vm8, %v510_v35 }
  0xd2   :  { %v479_v6 = vpop.f32.mrf.mxu0 }
  0xd3   :  { %v119_v8 = vmul.f32 2.0, %v479_v6 }
  0xd4   :  { %v108_v7 = vpop.f32.mrf.mxu0 }
  0xd5   :  { %v118_v9 = vmul.f32 2.0, %v108_v7  ;;  %v127_v13 = vsub.f32 %v440_v10, %v119_v8 }
  0xd7   :  { %v126_v11 = vsub.f32 %v440_v10, %v118_v9  ;;  %v132_v14 = vsel %vm128_vm1, %v127_v13, inf }
  0xd9   :  { %v129_v12 = vsel %vm128_vm1, %v126_v11, inf }
  0xda   :  { %130 = vmin.xlane.f32.xlu0 %v129_v12 }
  0xde   :  { %133 = vmin.xlane.f32.xlu0 %v132_v14 }
 0x163   :  { %v131_v17 = vpop.xlane.xlu0 %130 }
 0x164   :  { %vm137_vm2 = vcmp.le.f32.partialorder %v126_v11, %v131_v17 }
 0x165   :  { %v139_v18 = vsel %vm137_vm2, %v136_v16, 32 }
 0x166   :  { %v141_v19 = vsel %vm128_vm1, %v139_v18, 2147483647 }
 0x167   :  { %v134_v20 = vpop.xlane.xlu0 %133  ;;  %v143_v21 = vshra.s32 %v141_v19, 16  ;;  %v142_v27 = vand.u32 65535, %v141_v19 }
 0x168   :  { %vm138_vm3 = vcmp.le.f32.partialorder %v127_v13, %v134_v20 }
 0x169   :  { %v140_v22 = vsel %vm138_vm3, %v136_v16, 32  ;;  %v145_v23 = vcvt.s32.f32 %v143_v21  ;;  %v144_v29 = vcvt.s32.f32 %v142_v27 }
 0x16a   :  { %v156_v24 = vsel %vm128_vm1, %v140_v22, 2147483647 }
 0x16b   :  { %146 = vmin.xlane.f32.xlu1 %v145_v23  ;;  %v158_v25 = vshra.s32 %v156_v24, 16  ;;  %v157_v30 = vand.u32 65535, %v156_v24 }
 0x16d   :  { %v160_v26 = vcvt.s32.f32 %v158_v25  ;;  %v159_v33 = vcvt.s32.f32 %v157_v30 }
 0x16f   :  { %161 = vmin.xlane.f32.xlu1 %v160_v26 }
 0x1f4   :  { %v147_v28 = vpop.xlane.xlu1 %146 }
 0x1f5   :  { %vm148_vm4 = vcmp.eq.f32.partialorder %v145_v23, %v147_v28  ;;  %v153_v36 = vcvt.f32.s32 %v147_v28 }
 0x1f6   :  { %v149_v31 = vsel %vm148_vm4, %v144_v29, inf }
 0x1f7   :  { %150 = vmin.xlane.f32.xlu0 %v149_v31  ;;  %v154_v38 = vshll.u32 %v153_v36, 16 }
 0x1f8   :  { %v162_v32 = vpop.xlane.xlu1 %161 }
 0x1f9   :  { %vm163_vm5 = vcmp.eq.f32.partialorder %v160_v26, %v162_v32  ;;  %v168_v39 = vcvt.f32.s32 %v162_v32 }
 0x1fa   :  { %v164_v34 = vsel %vm163_vm5, %v159_v33, inf }
 0x1fb   :  { %165 = vmin.xlane.f32.xlu1 %v164_v34  ;;  %v169_v43 = vshll.u32 %v168_v39, 16 }
 0x280   :  { %v151_v37 = vpop.xlane.xlu0 %150 }
 0x281   :  { %v152_v40 = vcvt.f32.s32 %v151_v37 }
 0x283   :  { %v155_v41 = vadd.s32 %v154_v38, %v152_v40 }
 0x284   :  { %v166_v42 = vpop.xlane.xlu1 %165 }
 0x285   :  { %v167_v44 = vcvt.f32.s32 %v166_v42  ;;  %vm171_vm6 = vcmp.eq.s32.totalorder %v136_v16, %v155_v41 }
 0x286   :  { %v441_v45 = vsel %vm171_vm6, 1.0, %v510_v35 }
 0x287   :  { %v170_v46 = vadd.s32 %v169_v43, %v167_v44  ;;  %488 = vmatprep.mubr.msk.f32.mxu1 %vm128_vm1, %v441_v45 }
 0x289   :  { %vm172_vm7 = vcmp.eq.s32.totalorder %v136_v16, %v170_v46 }
 0x28a   :  { %v442_v47 = vsel %vm172_vm7, 1.0, %v510_v35 }
 0x28b   :  { %489 = vmatmul.mubr.msk.f32.vlgmr.msra.gmra.mxu1 %vm128_vm1, %v442_v47 }
 0x28c   :  { %492 = vmatpush3.xpose.msk.msra.mxu1 %vm128_vm1, %v442_v47  ;;  %495 = vmatprep.mubr.msk.f32.mxu1 %vm511_vm8, %v510_v35 }
 0x28d   :  { %493 = vmatprep.subr.mxu1 %v510_v35 }
 0x290   :  { %494 = vmatpush3.xpose.msk.msra.mxu1 %vm128_vm1, %v441_v45 }
 0x293   :  { %496 = vmatmul.mubr.msk.f32.vlgmr.msra.gmra.mxu1 %vm128_vm1, %v260_v48 }
 0x34b   :  { %v490_v49 = vpop.f32.mrf.mxu1 }
 0x34c   :  { %259 = vst.msk [vmem:[%s611_s3 + $0x8] sm:$0xff] %vm23_vm0, %v490_v49  ;;  %v338_v50 = vsub.f32 %v490_v49, %v573_v5 }
 0x34d   :  { %v249_v51 = vpop.f32.mrf.mxu1 }
 0x34e   :  { %v340_v52 = vmul.f32 %v338_v50, %v338_v50  ;;  %258 = vst.msk [vmem:[%s611_s3] sm:$0xff] %vm23_vm0, %v249_v51  ;;  %v337_v53 = vsub.f32 %v249_v51, %v553_v2 }
 0x350   :  { %499 = vmatpush3.xpose.msk.msra.mxu0 %vm23_vm0, %v340_v52  ;;  %v339_v54 = vmul.f32 %v337_v53, %v337_v53 }
 0x351   :  { %500 = vmatprep.subr.mxu0 %v510_v35 }
 0x353   :  { %v330_v56 = vpop.f32.mrf.mxu1 }
 0x354   :  { %501 = vmatpush3.xpose.msk.msra.mxu0 %vm23_vm0, %v339_v54  ;;  %v505_v57 = vtrunc.f32 %v330_v56 }
 0x355   :  { %v497_v58 = vpop.f32.mrf.mxu1 }
 0x356   :  { %v506_v59 = vcvt.f32.s32 %v505_v57 }
 0x357   :  { %503 = vmatmul.mubr.msk.f32.vlgmr.msra.gmra.mxu0 %vm23_vm0, %v512_v55 }
 0x358   :  { %336 = vst.msk [vmem:[%s612_s4] sm:$0x1] %vm335_vm9, %v506_v59 }
 0x417   :  { %v416_v60 = vpop.f32.mrf.mxu0 }
 0x418   :  { %v420_v61 = vmul.f32 0.125, %v416_v60 }
 0x419   :  { %v504_v62 = vpop.f32.mrf.mxu0 }
 0x41a   :  { %421 = vst.msk [vmem:[%s613_s5] sm:$0x1] %vm335_vm9, %v420_v61 }

// kernel: model_forward.12
= control target key start
LH: loop header
LB: loop body
LE: loop exit
PB: predicated region body
PF: predicated region fallthrough
CT: control target
= control target key end

     0   :  { %s3655_s29 = smov 0   ;;  %s4149_s0 = inlined_call_operand.vmem [shape: bf16[8,8,32], index: 0, kind: input, shape index: {}]   ;;  %s4150_s1 = inlined_call_operand.vmem [shape: f32[8,1,8], index: 1, kind: input, shape index: {}]   ;;  %s4151_s2 = inlined_call_operand.vmem [shape: f32[1,32], index: 2, kind: input, shape index: {}]   ;;  %s4152_s3 = inlined_call_operand.vmem [shape: f32[1,32], index: 3, kind: input, shape index: {}]   ;;  %s4153_s4 = inlined_call_operand.vmem [shape: bf16[32,96], index: 4, kind: input, shape index: {}]   ;;  %s4154_s5 = inlined_call_operand.vmem [shape: f32[1,96], index: 5, kind: input, shape index: {}]   ;;  %s4155_s6 = inlined_call_operand.vmem [shape: bf16[32,32], index: 6, kind: input, shape index: {}]   ;;  %s4156_s7 = inlined_call_operand.vmem [shape: f32[1,32], index: 7, kind: input, shape index: {}]   ;;  %s4157_s8 = inlined_call_operand.vmem [shape: f32[1,32], index: 8, kind: input, shape index: {}]   ;;  %s4158_s9 = inlined_call_operand.vmem [shape: f32[1,32], index: 9, kind: input, shape index: {}]   ;;  %s4159_s10 = inlined_call_operand.vmem [shape: bf16[32,128], index: 10, kind: input, shape index: {}]   ;;  %s4160_s11 = inlined_call_operand.vmem [shape: f32[1,128], index: 11, kind: input, shape index: {}]   ;;  %s4161_s12 = inlined_call_operand.vmem [shape: bf16[128,32], index: 12, kind: input, shape index: {}]   ;;  %s4162_s13 = inlined_call_operand.vmem [shape: f32[1,32], index: 13, kind: input, shape index: {}]   ;;  %s4163_s14 = inlined_call_operand.vmem [shape: bf16[8,8,32], index: 14, kind: output, shape index: {}]  }
   0x1 LB: > { %s2993_s30 = sadd.s32 4294967295, %s3562_s29   ;;  %p2997_p0 = scmp.ge.s32.totalorder %s3562_s29, 1  ;;  %s3562_s29 = sphi %s3655_s29, %s24_s29  }
   0x2   : > { %p423_p1 = scmp.lt.s32.totalorder %s3562_s29, 3 }
   0x4   : > { %p424_p2 = pnand %p2997_p0, %p423_p1 }
   0x5   : > { %s2998_s15 = sshll.u32 (!%p424_p2), %s2993_s30, 2  ;;  %s3566_s17 = smov (!%p424_p2), 96  }
   0x6   : > { %427 = sbr.rel (%p424_p2) target bundleno = 4214 (0x1076), region = 76  ;;  %p474_p3 = scmp.lt.s32.totalorder (!%p424_p2), %s2998_s15, 7 }
   0x7   : > { %s3567_s21 = smov (!%p424_p2), 64   ;;  %s3568_s22 = smov (!%p424_p2), 88  }
   0x8   : > { %s3569_s23 = smov (!%p424_p2), 120   ;;  %s3570_s24 = smov (!%p424_p2), 56  }
   0x9   : > { %s3571_s25 = smov (!%p424_p2), 80   ;;  %s3572_s26 = smov (!%p424_p2), 112  }
   0xa   : > { %s3573_s27 = smov (!%p424_p2), 48   ;;  %s3574_s28 = smov (!%p424_p2), 72  }
   0xb   : > { %s4165_s15 = smov (!%p474_p3, %s2998_s15), 7  ;;  %vm499_vm0 = vcmask 261120   ;;  %v3454_v30 = vld [vmem:[%s4153_s4 + $0x8] sm:$0xff]   ;;  %v3455_v31 = vld [vmem:[%s4153_s4] sm:$0xff]   ;;  %vm3565_vm1 = vmmov 0   ;;  %vm698_vm2 = vcmask 64512  }
   0xc   : > { %s2999_s16 = sshll.u32 %s4165_s15, 2  ;;  %3164 = vmatprep.subr.bf16.mxu0 %v3454_v30  ;;  %v3003_v46 = vld [vmem:[%s4151_s2] ss:$0 sm:$0xff]  ;;  %s482_s20 = scalar_lea.vmem %s4150_s1, %s4165_s15  ;;  %vm945_vm3 = vcmask 1043456   ;;  %vm2509_vm4 = vcmask 130048   ;;  %vm2514_vm5 = vcmask 195584  }
   0xd   : > { %s477_s19 = scalar_lea.vmem %s4149_s0, %s2999_s16  ;;  %3165 = vmatpush3.bf16.msra.mxu0 %v3454_v30  ;;  %v3004_v51 = vld [vmem:[%s4152_s3] ss:$0 sm:$0xff]  ;;  %s3575_s30 = smov 104   ;;  %vm2923_vm6 = vcmask 257024  }
   0xe   : > { %v3070_v0 = vld [vmem:[%s477_s19] sm:$0xff]   ;;  %v3077_v1 = vld [vmem:[%s477_s19 + $0x8] sm:$0xff]   ;;  %3166 = vmatprep.subr.bf16.mxu0 %v3455_v31  ;;  %s3577_s18 = smov 8   ;;  %s3578_s19 = smov 16  }
   0xf   : > { %v3671_v2 = vunpack.c.l.bf16 %v3070_v0  ;;  %v3673_v3 = vunpack.c.l.bf16 %v3077_v1  ;;  %v3675_v4 = vunpack.c.h.bf16 %v3070_v0  ;;  %v3677_v5 = vunpack.c.h.bf16 %v3077_v1 }
  0x10   : > { %v3564_v0 = vmov 0.0  }
  0x11   : > { %v500_v6 = vsel %vm499_vm0, %v3671_v2, 0.0  ;;  %v506_v7 = vsel %vm499_vm0, %v3673_v3, 0.0  ;;  %v503_v8 = vsel %vm499_vm0, %v3675_v4, 0.0  ;;  %v509_v9 = vsel %vm499_vm0, %v3677_v5, 0.0  ;;  %3167 = vmatpush3.bf16.msra.mxu0 %v3455_v31  ;;  %3184 = vmatprep.subr.bf16.mxu1 %v3564_v0 }
  0x12   : > { %501 = vadd.xlane.f32.xlu0 %v500_v6  ;;  %507 = vadd.xlane.f32.xlu1 %v506_v7  ;;  %v3005_v6 = vld [vmem:[%s4154_s5] ss:$0 sm:$0xff] }
  0x13   : > { %3172 = vmatprep.subr.bf16.mxu0 %v3564_v0  ;;  %3186 = vmatprep.mubr.msk.bf16.mxu1 %vm3565_vm1, %v3564_v0 }
  0x16   : > { %504 = vadd.xlane.f32.xlu0 %v503_v8  ;;  %510 = vadd.xlane.f32.xlu1 %v509_v9 }
  0x9b   : > { %v502_v10 = vpop.xlane.xlu0 %501  ;;  %v508_v11 = vpop.xlane.xlu1 %507 }
  0x9c   : > { %v513_v12 = vmul.f32 0.03125, %v502_v10  ;;  %v515_v13 = vmul.f32 0.03125, %v508_v11 }
  0x9e   : > { %v517_v14 = vsub.f32 %v3671_v2, %v513_v12  ;;  %v519_v15 = vsub.f32 %v3673_v3, %v515_v13 }
  0x9f   : > { %v505_v16 = vpop.xlane.xlu0 %504  ;;  %v511_v17 = vpop.xlane.xlu1 %510 }
  0xa0   : > { %v514_v18 = vmul.f32 0.03125, %v505_v16  ;;  %v516_v19 = vmul.f32 0.03125, %v511_v17  ;;  %v521_v20 = vmul.f32 %v517_v14, %v517_v14  ;;  %v523_v21 = vmul.f32 %v519_v15, %v519_v15 }
  0xa2   : > { %v518_v22 = vsub.f32 %v3675_v4, %v514_v18  ;;  %v520_v23 = vsub.f32 %v3677_v5, %v516_v19  ;;  %v525_v24 = vsel %vm499_vm0, %v521_v20, 0.0  ;;  %v531_v25 = vsel %vm499_vm0, %v523_v21, 0.0 }
  0xa3   : > { %526 = vadd.xlane.f32.xlu0 %v525_v24 }
  0xa4   : > { %v522_v26 = vmul.f32 %v518_v22, %v518_v22  ;;  %v524_v27 = vmul.f32 %v520_v23, %v520_v23 }
  0xa6   : > { %v528_v28 = vsel %vm499_vm0, %v522_v26, 0.0  ;;  %v534_v29 = vsel %vm499_vm0, %v524_v27, 0.0 }
  0xa7   : > { %532 = vadd.xlane.f32.xlu0 %v531_v25  ;;  %529 = vadd.xlane.f32.xlu1 %v528_v28 }
  0xab   : > { %535 = vadd.xlane.f32.xlu1 %v534_v29 }
 0x12c   : > { %v527_v32 = vpop.xlane.xlu0 %526 }
 0x12d   : > { %v537_v33 = vmul.f32 0.03125, %v527_v32 }
 0x12f   : > { %v541_v34 = vadd.f32 1e-05, %v537_v33 }
 0x130   : > { %v530_v35 = vpop.xlane.xlu1 %529  ;;  %v533_v36 = vpop.xlane.xlu0 %532 }
 0x131   : > { %3468 = vrsqrt.f32 %v541_v34  ;;  %v538_v37 = vmul.f32 0.03125, %v530_v35  ;;  %v539_v38 = vmul.f32 0.03125, %v533_v36  ;;  %v3766_v34 = vld [vmem:[%s482_s20] ss:$0 sm:$0xff] }
 0x133   : > { %v542_v39 = vadd.f32 1e-05, %v538_v37  ;;  %v543_v40 = vadd.f32 1e-05, %v539_v38 }
 0x134   : > { %v536_v41 = vpop.xlane.xlu1 %535 }
 0x135   : > { %3470 = vrsqrt.f32 %v542_v39  ;;  %v540_v42 = vmul.f32 0.03125, %v536_v41  ;;  %v3770_v41 = vld [vmem:[%s482_s20 + $0x1] ss:$0 sm:$0xff] }
 0x136   : > { %3472 = vrsqrt.f32 %v543_v40 }
 0x137   : > { %v544_v43 = vadd.f32 1e-05, %v540_v42  ;;  %v3772_v42 = vld [vmem:[%s482_s20 + $0x2] ss:$0 sm:$0xff] }
 0x139   : > { %3474 = vrsqrt.f32 %v544_v43 }
 0x13e   : > { %v3469_v44 = vpop.eup %3468 }
 0x13f   : > { %v549_v45 = vmul.f32 %v3469_v44, %v517_v14 }
 0x141   : > { %v560_v50 = vmul.f32 %v3003_v46, %v549_v45 }
 0x142   : > { %v3471_v47 = vpop.eup %3470 }
 0x143   : > { %v3473_v48 = vpop.eup %3472  ;;  %v550_v49 = vmul.f32 %v3471_v47, %v518_v22  ;;  %v571_v55 = vadd.f32 %v3004_v51, %v560_v50 }
 0x144   : > { %v551_v52 = vmul.f32 %v3473_v48, %v519_v15 }
 0x145   : > { %v561_v53 = vmul.f32 %v3003_v46, %v550_v49 }
 0x146   : > { %v3475_v54 = vpop.eup %3474  ;;  %v562_v58 = vmul.f32 %v3003_v46, %v551_v52 }
 0x147   : > { %v572_v56 = vadd.f32 %v3004_v51, %v561_v53  ;;  %v552_v57 = vmul.f32 %v3475_v54, %v520_v23 }
 0x148   : > { %v573_v61 = vadd.f32 %v3004_v51, %v562_v58 }
 0x149   : > { %v575_v59 = vpack.c.bf16 %v572_v56, %v571_v55  ;;  %v563_v60 = vmul.f32 %v3003_v46, %v552_v57  ;;  %v3778_v55 = vld [vmem:[%s482_s20 + $0x3] ss:$0 sm:$0xff] }
 0x14b   : > { %3168 = vmatprep.mubr.msk.bf16.mxu0 %vm499_vm0, %v575_v59  ;;  %v574_v62 = vadd.f32 %v3004_v51, %v563_v60 }
 0x14d   : > { %v576_v63 = vpack.c.bf16 %v574_v62, %v573_v61 }
 0x14f   : > { %3169 = vmatmul.mubr.msk.bf16.vlgmr.msra.gmra.mxu0 %vm499_vm0, %v576_v63 }
 0x150   : > { %3174 = vmatprep.mubr.msk.bf16.mxu0 %vm3565_vm1, %v3564_v0 }
 0x20f   : > { %v3170_v1 = vpop.f32.mrf.mxu0 }
 0x210   : > { %v649_v13 = vadd.f32 %v3170_v1, %v3005_v6 }
 0x211   : > { %v640_v7 = vpop.f32.mrf.mxu0 }
 0x212   : > { %v641_v8 = vadd.f32 %v3005_v6, %v640_v7  ;;  %v3724_v15 = vpack.c.bf16 %v649_v13, %v649_v13  ;;  %v661_v26 = vmul.f32 0.35355338, %v649_v13 }
 0x213   : > { %v3171_v9 = vpop.f32.mrf.mxu0 }
 0x214   : > { %v3718_v10 = vpack.c.bf16 %v641_v8, %v641_v8  ;;  %v652_v16 = vadd.f32 %v3171_v9, %v3005_v6  ;;  %v659_v20 = vmul.f32 0.35355338, %v641_v8  ;;  %v3742_v29 = vpack.c.bf16 %v661_v26, %v661_v26 }
 0x215   : > { %v643_v11 = vpop.f32.mrf.mxu0 }
 0x216   : > { %v644_v12 = vadd.f32 %v3005_v6, %v643_v11  ;;  %696 = vrot.lane.b32.xlu0 %v3718_v10, %s3566_s17  ;;  %v3727_v17 = vpack.c.bf16 %v652_v16, %v652_v16  ;;  %v3732_v22 = vpack.c.bf16 %v659_v20, %v659_v20  ;;  %v662_v32 = vmul.f32 0.35355338, %v652_v16 }
 0x218   : > { %v3721_v14 = vpack.c.bf16 %v644_v12, %v644_v12  ;;  %v660_v27 = vmul.f32 0.35355338, %v644_v12  ;;  %v3756_v33 = vpack.c.bf16 %v662_v32, %v662_v32 }
 0x21a   : > { %746 = vrot.lane.b32.xlu1 %v3721_v14, %s3566_s17  ;;  %v3744_v30 = vpack.c.bf16 %v660_v27, %v660_v27 }
 0x21e   : > { %795 = vrot.lane.b32.xlu1 %v3724_v15, %s3566_s17 }
 0x222   : > { %844 = vrot.lane.b32.xlu1 %v3727_v17, %s3566_s17  ;;  %s3576_s17 = smov 40  }
 0x288   : > { %v697_v18 = vpop.permute.xlu0 %696 }
 0x289   : > { %v703_v19 = vsel %vm698_vm2, %v697_v18, 0 }
 0x28a   : > { %3173 = vmatpush3.bf16.xpose.msra.mxu0 %v703_v19 }
 0x28b   : > { %3178 = vmatprep.subr.bf16.mxu0 %v3564_v0 }
 0x28c   : > { %v747_v21 = vpop.permute.xlu1 %746 }
 0x28d   : > { %v752_v24 = vsel %vm698_vm2, %v747_v21, 0 }
 0x290   : > { %v796_v23 = vpop.permute.xlu1 %795 }
 0x291   : > { %3175 = vmatmul.mubr.msk.bf16.vlgmr.msra.gmra.mxu0 %vm698_vm2, %v3732_v22  ;;  %v801_v25 = vsel %vm698_vm2, %v796_v23, 0 }
 0x292   : > { %3179 = vmatpush3.bf16.xpose.msra.mxu0 %v752_v24  ;;  %3185 = vmatpush3.bf16.xpose.msra.mxu1 %v801_v25 }
 0x293   : > { %3180 = vmatprep.mubr.msk.bf16.mxu0 %vm3565_vm1, %v3564_v0  ;;  %3190 = vmatprep.subr.bf16.mxu0 %v3564_v0 }
 0x294   : > { %3196 = vmatprep.subr.bf16.mxu1 %v3564_v0  ;;  %v845_v28 = vpop.permute.xlu1 %844 }
 0x295   : > { %v850_v31 = vsel %vm698_vm2, %v845_v28, 0 }
 0x299   : > { %3181 = vmatmul.mubr.msk.bf16.vlgmr.msra.gmra.mxu0 %vm698_vm2, %v3744_v30  ;;  %3187 = vmatmul.mubr.msk.bf16.vlgmr.msra.gmra.mxu1 %vm698_vm2, %v3742_v29 }
 0x29a   : > { %3191 = vmatpush3.bf16.xpose.msra.mxu0 %v850_v31  ;;  %3192 = vmatprep.mubr.msk.bf16.mxu0 %vm3565_vm1, %v3564_v0 }
 0x29b   : > { %3202 = vmatprep.subr.bf16.mxu0 %v3564_v0  ;;  %3198 = vmatprep.mubr.msk.bf16.mxu1 %vm3565_vm1, %v3564_v0 }
 0x2a1   : > { %3193 = vmatmul.mubr.msk.bf16.vlgmr.msra.gmra.mxu0 %vm698_vm2, %v3756_v33 }
 0x2a2   : > { %3204 = vmatprep.mubr.msk.bf16.mxu0 %vm3565_vm1, %v3564_v0 }
 0x351   : > { %v739_v35 = vpop.f32.mrf.mxu0 }
 0x352   : > { %v740_v36 = vadd.f32 %v3766_v34, %v739_v35 }
 0x353   : > { %v3176_v37 = vpop.f32.mrf.mxu0 }
 0x354   : > { %v892_v38 = vsel %vm698_vm2, %v740_v36, -inf }
 0x355   : > { %893 = vmax.xlane.f32.xlu0 %v892_v38  ;;  %v742_v39 = vpop.f32.mrf.mxu0 }
 0x357   : > { %v3177_v40 = vpop.f32.mrf.mxu0 }
 0x359   : > { %v788_v43 = vpop.f32.mrf.mxu0  ;;  %v837_v44 = vpop.f32.mrf.mxu1 }
 0x35a   : > { %v789_v45 = vadd.f32 %v3770_v41, %v788_v43  ;;  %v838_v46 = vadd.f32 %v3772_v42, %v837_v44 }
 0x35b   : > { %v3182_v47 = vpop.f32.mrf.mxu0  ;;  %v3188_v48 = vpop.f32.mrf.mxu1 }
 0x35c   : > { %v898_v49 = vsel %vm698_vm2, %v838_v46, -inf  ;;  %v895_v50 = vsel %vm698_vm2, %v789_v45, -inf }
 0x35d   : > { %v840_v51 = vpop.f32.mrf.mxu1  ;;  %899 = vmax.xlane.f32.xlu0 %v898_v49  ;;  %896 = vmax.xlane.f32.xlu1 %v895_v50  ;;  %v791_v52 = vpop.f32.mrf.mxu0 }
 0x35f   : > { %v3183_v53 = vpop.f32.mrf.mxu0  ;;  %v3189_v54 = vpop.f32.mrf.mxu1 }
 0x361   : > { %v886_v56 = vpop.f32.mrf.mxu0 }
 0x362   : > { %v887_v57 = vadd.f32 %v3778_v55, %v886_v56 }
 0x363   : > { %v3194_v58 = vpop.f32.mrf.mxu0 }
 0x364   : > { %v901_v59 = vsel %vm698_vm2, %v887_v57, -inf }
 0x365   : > { %902 = vmax.xlane.f32.xlu0 %v901_v59  ;;  %v889_v60 = vpop.f32.mrf.mxu0 }
 0x367   : > { %v3195_v61 = vpop.f32.mrf.mxu0 }
 0x36e   : > { %989 = vrot.lane.b32.xlu1 %v3721_v14, %s3567_s21 }
 0x372   : > { %1037 = vrot.lane.b32.xlu1 %v3724_v15, %s3567_s21 }
 0x376   : > { %1085 = vrot.lane.b32.xlu1 %v3727_v17, %s3567_s21 }
 0x3de   : > { %v894_v62 = vpop.xlane.xlu0 %893 }
 0x3df   : > { %v904_v63 = vsub.f32 %v740_v36, %v894_v62 }
 0x3e1   : > { %v908_v9 = vmul.f32 1.442695, %v904_v63 }
 0x3e6   : > { %v900_v1 = vpop.xlane.xlu0 %899  ;;  %v897_v6 = vpop.xlane.xlu1 %896 }
 0x3e7   : > { %v906_v7 = vsub.f32 %v838_v46, %v900_v1  ;;  %v905_v8 = vsub.f32 %v789_v45, %v897_v6 }
 0x3e9   : > { %v912_v11 = vmul.f32 1.442695, %v906_v7  ;;  %v910_v12 = vmul.f32 1.442695, %v905_v8 }
 0x3ea   : > { %v990_v13 = vpop.permute.xlu1 %989 }
 0x3eb   : > { %3476 = vpow2.f32 %v912_v11  ;;  %v995_v16 = vsel %vm945_vm3, %v990_v13, 0 }
 0x3ec   : > { %3478 = vpow2.f32 %v910_v12  ;;  %3203 = vmatpush3.bf16.msra.mxu0 %v995_v16 }
 0x3ed   : > { %3480 = vpow2.f32 %v908_v9  ;;  %3214 = vmatprep.subr.bf16.mxu0 %v3564_v0 }
 0x3ee   : > { %v903_v25 = vpop.xlane.xlu0 %902  ;;  %v1038_v32 = vpop.permute.xlu1 %1037 }
 0x3ef   : > { %v907_v26 = vsub.f32 %v887_v57, %v903_v25  ;;  %v1043_v51 = vsel %vm945_vm3, %v1038_v32, 0 }
 0x3f1   : > { %v914_v27 = vmul.f32 1.442695, %v907_v26 }
 0x3f2   : > { %v1086_v35 = vpop.permute.xlu1 %1085 }
 0x3f3   : > { %3482 = vpow2.f32 %v914_v27  ;;  %v1091_v48 = vsel %vm945_vm3, %v1086_v35, 0 }
 0x3f8   : > { %v3477_v18 = vpop.eup %3476 }
 0x3f9   : > { %v3479_v19 = vpop.eup %3478  ;;  %v922_v20 = vsel %vm698_vm2, %v3477_v18, 0.0 }
 0x3fa   : > { %v3481_v21 = vpop.eup %3480  ;;  %v919_v23 = vsel %vm698_vm2, %v3479_v19, 0.0  ;;  %923 = vadd.xlane.f32.xlu0 %v922_v20 }
 0x3fb   : > { %920 = vadd.xlane.f32.xlu1 %v919_v23  ;;  %v916_v24 = vsel %vm698_vm2, %v3481_v21, 0.0 }
 0x3fe   : > { %917 = vadd.xlane.f32.xlu0 %v916_v24 }
 0x400   : > { %v3483_v28 = vpop.eup %3482 }
 0x401   : > { %v925_v31 = vsel %vm698_vm2, %v3483_v28, 0.0 }
 0x40c   : > { %1187 = vrot.lane.b32.xlu1 %v3721_v14, %s3568_s22 }
 0x414   : > { %940 = vrot.lane.b32.xlu0 %v3718_v10, %s3567_s21 }
 0x418   : > { %1136 = vrot.lane.b32.xlu0 %v3718_v10, %s3568_s22 }
 0x41c   : > { %1134 = vrot.lane.b32.xlu0 %v3732_v22, %s3569_s23 }
 0x420   : > { %1238 = vrot.lane.b32.xlu0 %v3724_v15, %s3568_s22 }
 0x424   : > { %1236 = vrot.lane.b32.xlu0 %v3742_v29, %s3569_s23 }
 0x430   : > { %926 = vadd.xlane.f32.xlu1 %v925_v31 }
 0x441   : > { %1185 = vrot.lane.b32.xlu1 %v3744_v30, %s3569_s23 }
 0x445   : > { %1289 = vrot.lane.b32.xlu1 %v3727_v17, %s3568_s22  ;;  %s3579_s22 = smov 24  }
 0x449   : > { %1287 = vrot.lane.b32.xlu1 %v3756_v33, %s3569_s23 }
 0x483   : > { %v924_v36 = vpop.xlane.xlu0 %923 }
 0x484   : > { %v921_v37 = vpop.xlane.xlu1 %920 }
 0x485   : > { %3484 = vrcp.f32 %v921_v37 }
 0x487   : > { %v918_v38 = vpop.xlane.xlu0 %917 }
 0x488   : > { %3486 = vrcp.f32 %v918_v38  ;;  %v1188_v61 = vpop.permute.xlu1 %1187 }
 0x489   : > { %3488 = vrcp.f32 %v924_v36  ;;  %v1193_v8 = vsel %vm698_vm2, %v1188_v61, 0 }
 0x48b   : > { %v941_v39 = vpop.permute.xlu0 %940 }
 0x48c   : > { %v947_v40 = vsel %vm945_vm3, %v941_v39, 0 }
 0x48d   : > { %3197 = vmatpush3.bf16.msra.mxu1 %v947_v40 }
 0x48e   : > { %3208 = vmatprep.subr.bf16.mxu1 %v3564_v0 }
 0x48f   : > { %v1137_v52 = vpop.permute.xlu0 %1136 }
 0x490   : > { %v1142_v57 = vsel %vm698_vm2, %v1137_v52, 0 }
 0x492   : > { %v3485_v43 = vpop.eup %3484 }
 0x493   : > { %v933_v44 = vmul.f32 %v3485_v43, %v3479_v19  ;;  %v1135_v56 = vpop.permute.xlu0 %1134 }
 0x495   : > { %v3487_v45 = vpop.eup %3486  ;;  %v937_v46 = vpack.c.bf16 %v933_v44, %v933_v44 }
 0x496   : > { %v932_v47 = vmul.f32 %v3487_v45, %v3481_v21  ;;  %v3489_v50 = vpop.eup %3488 }
 0x497   : > { %3205 = vmatmul.mubr.msk.bf16.vlgmr.msra.gmra.mxu0 %vm698_vm2, %v937_v46  ;;  %v934_v53 = vmul.f32 %v3489_v50, %v3477_v18  ;;  %v1239_v58 = vpop.permute.xlu0 %1238 }
 0x498   : > { %3215 = vmatpush3.bf16.msra.mxu0 %v1091_v48  ;;  %v936_v49 = vpack.c.bf16 %v932_v47, %v932_v47  ;;  %3216 = vmatprep.mubr.msk.bf16.mxu0 %vm3565_vm1, %v3564_v0  ;;  %v1244_v59 = vsel %vm698_vm2, %v1239_v58, 0 }
 0x499   : > { %3226 = vmatprep.subr.bf16.mxu0 %v3564_v0  ;;  %v938_v54 = vpack.c.bf16 %v934_v53, %v934_v53 }
 0x49a   : > { %3199 = vmatmul.mubr.msk.bf16.vlgmr.msra.gmra.mxu1 %vm698_vm2, %v936_v49 }
 0x49b   : > { %3209 = vmatpush3.bf16.msra.mxu1 %v1043_v51  ;;  %3210 = vmatprep.mubr.msk.bf16.mxu1 %vm3565_vm1, %v3564_v0  ;;  %v1237_v60 = vpop.permute.xlu0 %1236 }
 0x49c   : > { %3220 = vmatprep.subr.bf16.mxu1 %v3564_v0 }
 0x4a2   : > { %3211 = vmatmul.mubr.msk.bf16.vlgmr.msra.gmra.mxu1 %vm698_vm2, %v938_v54 }
 0x4a3   : > { %3221 = vmatpush3.bf16.xpose.msra.mxu1 %v1142_v57  ;;  %3222 = vmatprep.mubr.msk.bf16.mxu1 %vm3565_vm1, %v3564_v0 }
 0x4a4   : > { %3232 = vmatprep.subr.bf16.mxu1 %v3564_v0 }
 0x4aa   : > { %3223 = vmatmul.mubr.msk.bf16.vlgmr.msra.gmra.mxu1 %vm698_vm2, %v1135_v56 }
 0x4ab   : > { %3233 = vmatpush3.bf16.xpose.msra.mxu1 %v1244_v59  ;;  %3234 = vmatprep.mubr.msk.bf16.mxu1 %vm3565_vm1, %v3564_v0 }
 0x4ac   : > { %3244 = vmatprep.subr.bf16.mxu1 %v3564_v0 }
 0x4b2   : > { %3235 = vmatmul.mubr.msk.bf16.vlgmr.msra.gmra.mxu1 %vm698_vm2, %v1237_v60 }
 0x4b3   : > { %3246 = vmatprep.mubr.msk.bf16.mxu1 %vm3565_vm1, %v3564_v0 }
 0x4b9   : > { %v927_v62 = vpop.xlane.xlu1 %926 }
 0x4ba   : > { %3490 = vrcp.f32 %v927_v62 }
 0x4bd   : > { %v1186_v7 = vpop.permute.xlu1 %1185 }
 0x4c1   : > { %v1290_v9 = vpop.permute.xlu1 %1289 }
 0x4c2   : > { %v1295_v11 = vsel %vm698_vm2, %v1290_v9, 0 }
 0x4c5   : > { %v1288_v12 = vpop.permute.xlu1 %1287 }
 0x4c7   : > { %v3491_v63 = vpop.eup %3490 }
 0x4c8   : > { %v935_v1 = vmul.f32 %v3491_v63, %v3483_v28 }
 0x4ca   : > { %v939_v6 = vpack.c.bf16 %v935_v1, %v935_v1 }
 0x4cc   : > { %3217 = vmatmul.mubr.msk.bf16.vlgmr.msra.gmra.mxu0 %vm698_vm2, %v939_v6 }
 0x4cd   : > { %3227 = vmatpush3.bf16.xpose.msra.mxu0 %v1193_v8  ;;  %3228 = vmatprep.mubr.msk.bf16.mxu0 %vm3565_vm1, %v3564_v0 }
 0x4ce   : > { %3238 = vmatprep.subr.bf16.mxu0 %v3564_v0 }
 0x4d4   : > { %3229 = vmatmul.mubr.msk.bf16.vlgmr.msra.gmra.mxu0 %vm698_vm2, %v1186_v7 }
 0x4d5   : > { %3239 = vmatpush3.bf16.xpose.msra.mxu0 %v1295_v11  ;;  %3240 = vmatprep.mubr.msk.bf16.mxu0 %vm3565_vm1, %v3564_v0 }
 0x4d6   : > { %3250 = vmatprep.subr.bf16.mxu0 %v3564_v0 }
 0x4dc   : > { %3241 = vmatmul.mubr.msk.bf16.vlgmr.msra.gmra.mxu0 %vm698_vm2, %v1288_v12 }
 0x4dd   : > { %3252 = vmatprep.mubr.msk.bf16.mxu0 %vm3565_vm1, %v3564_v0 }
 0x557   : > { %v3842_v13 = vpop.f32.mrf.mxu0 }
 0x559   : > { %v3206_v16 = vpop.f32.mrf.mxu0 }
 0x55a   : > { %v3844_v18 = vpop.f32.mrf.mxu1 }
 0x55b   : > { %v1034_v19 = vpop.f32.mrf.mxu0 }
 0x55c   : > { %v3200_v20 = vpop.f32.mrf.mxu1 }
 0x55d   : > { %v3207_v21 = vpop.f32.mrf.mxu0 }
 0x55e   : > { %v986_v23 = vpop.f32.mrf.mxu1 }
 0x560   : > { %v3201_v24 = vpop.f32.mrf.mxu1 }
 0x562   : > { %v3846_v25 = vpop.f32.mrf.mxu1 }
 0x564   : > { %v3212_v26 = vpop.f32.mrf.mxu1 }
 0x566   : > { %v1082_v27 = vpop.f32.mrf.mxu1 }
 0x568   : > { %v3213_v28 = vpop.f32.mrf.mxu1 }
 0x56a   : > { %v1178_v31 = vpop.f32.mrf.mxu1 }
 0x56b   : > { %v1179_v32 = vadd.f32 %v3766_v34, %v1178_v31 }
 0x56c   : > { %v3224_v35 = vpop.f32.mrf.mxu1 }
 0x56d   : > { %v1337_v36 = vsel %vm698_vm2, %v1179_v32, -inf }
 0x56e   : > { %1338 = vmax.xlane.f32.xlu0 %v1337_v36  ;;  %v1181_v37 = vpop.f32.mrf.mxu1 }
 0x570   : > { %v3225_v38 = vpop.f32.mrf.mxu1 }
 0x572   : > { %v1280_v39 = vpop.f32.mrf.mxu1 }
 0x573   : > { %v1281_v40 = vadd.f32 %v3772_v42, %v1280_v39 }
 0x574   : > { %v3236_v43 = vpop.f32.mrf.mxu1 }
 0x575   : > { %v1343_v44 = vsel %vm698_vm2, %v1281_v40, -inf }
 0x576   : > { %1344 = vmax.xlane.f32.xlu0 %v1343_v44  ;;  %v1283_v45 = vpop.f32.mrf.mxu1 }
 0x578   : > { %v3237_v46 = vpop.f32.mrf.mxu1 }
 0x58c   : > { %v3852_v47 = vpop.f32.mrf.mxu0 }
 0x58e   : > { %v3218_v48 = vpop.f32.mrf.mxu0 }
 0x590   : > { %v1130_v49 = vpop.f32.mrf.mxu0 }
 0x592   : > { %v3219_v50 = vpop.f32.mrf.mxu0 }
 0x594   : > { %v1229_v51 = vpop.f32.mrf.mxu0 }
 0x595   : > { %v1230_v52 = vadd.f32 %v3770_v41, %v1229_v51 }
 0x596   : > { %v3230_v53 = vpop.f32.mrf.mxu0 }
 0x597   : > { %v1340_v54 = vsel %vm698_vm2, %v1230_v52, -inf }
 0x598   : > { %1341 = vmax.xlane.f32.xlu1 %v1340_v54  ;;  %v1232_v56 = vpop.f32.mrf.mxu0 }
 0x59a   : > { %v3231_v57 = vpop.f32.mrf.mxu0 }
 0x59c   : > { %v1331_v58 = vpop.f32.mrf.mxu0 }
 0x59d   : > { %v1332_v59 = vadd.f32 %v3778_v55, %v1331_v58 }
 0x59e   : > { %v3242_v60 = vpop.f32.mrf.mxu0 }
 0x59f   : > { %v1346_v61 = vsel %vm698_vm2, %v1332_v59, -inf }
 0x5a0   : > { %1347 = vmax.xlane.f32.xlu0 %v1346_v61  ;;  %v1334_v62 = vpop.f32.mrf.mxu0 }
 0x5a2   : > { %v3243_v63 = vpop.f32.mrf.mxu0 }
 0x5a9   : > { %1433 = vrot.lane.b32.xlu1 %v3721_v14, %s3570_s24 }
 0x5ad   : > { %1481 = vrot.lane.b32.xlu1 %v3724_v15, %s3570_s24 }
 0x5b1   : > { %1529 = vrot.lane.b32.xlu1 %v3727_v17, %s3570_s24 }
 0x5f7   : > { %v1339_v1 = vpop.xlane.xlu0 %1338 }
 0x5f8   : > { %v1349_v6 = vsub.f32 %v1179_v32, %v1339_v1 }
 0x5fa   : > { %v1353_v7 = vmul.f32 1.442695, %v1349_v6 }
 0x5fc   : > { %3492 = vpow2.f32 %v1353_v7 }
 0x5ff   : > { %v1345_v16 = vpop.xlane.xlu0 %1344 }
 0x600   : > { %v1351_v23 = vsub.f32 %v1281_v40, %v1345_v16 }
 0x602   : > { %v1357_v24 = vmul.f32 1.442695, %v1351_v23 }
 0x609   : > { %v3493_v8 = vpop.eup %3492 }
 0x60a   : > { %v1361_v9 = vsel %vm698_vm2, %v3493_v8, 0.0 }
 0x60b   : > { %1362 = vadd.xlane.f32.xlu0 %v1361_v9 }
 0x621   : > { %v1342_v11 = vpop.xlane.xlu1 %1341  ;;  %1385 = vrot.lane.b32.xlu0 %v3718_v10, %s3570_s24 }
 0x622   : > { %v1350_v12 = vsub.f32 %v1230_v52, %v1342_v11 }
 0x624   : > { %v1355_v19 = vmul.f32 1.442695, %v1350_v12 }
 0x625   : > { %v1434_v20 = vpop.permute.xlu1 %1433 }
 0x626   : > { %3494 = vpow2.f32 %v1355_v19  ;;  %v1439_v21 = vsel %vm945_vm3, %v1434_v20, 0 }
 0x627   : > { %3251 = vmatpush3.bf16.msra.mxu0 %v1439_v21  ;;  %3496 = vpow2.f32 %v1357_v24 }
 0x628   : > { %3262 = vmatprep.subr.bf16.mxu0 %v3564_v0 }
 0x629   : > { %v1348_v32 = vpop.xlane.xlu0 %1347  ;;  %v1482_v46 = vpop.permute.xlu1 %1481 }
 0x62a   : > { %v1352_v35 = vsub.f32 %v1332_v59, %v1348_v32  ;;  %v1487_v49 = vsel %vm945_vm3, %v1482_v46, 0 }
 0x62c   : > { %v1359_v36 = vmul.f32 1.442695, %v1352_v35 }
 0x62d   : > { %v1530_v50 = vpop.permute.xlu1 %1529 }
 0x62e   : > { %3498 = vpow2.f32 %v1359_v36  ;;  %v1535_v57 = vsel %vm945_vm3, %v1530_v50, 0 }
 0x633   : > { %v3495_v26 = vpop.eup %3494 }
 0x634   : > { %v1364_v27 = vsel %vm698_vm2, %v3495_v26, 0.0  ;;  %v3497_v28 = vpop.eup %3496 }
 0x635   : > { %1365 = vadd.xlane.f32.xlu1 %v1364_v27  ;;  %v1367_v31 = vsel %vm698_vm2, %v3497_v28, 0.0 }
 0x63b   : > { %v3499_v37 = vpop.eup %3498 }
 0x63c   : > { %v1370_v38 = vsel %vm698_vm2, %v3499_v37, 0.0 }
 0x640   : > { %1368 = vadd.xlane.f32.xlu0 %v1367_v31 }
 0x646   : > { %1629 = vrot.lane.b32.xlu1 %v3721_v14, %s3571_s25 }
 0x656   : > { %1579 = vrot.lane.b32.xlu0 %v3718_v10, %s3571_s25 }
 0x65a   : > { %1577 = vrot.lane.b32.xlu0 %v3732_v22, %s3572_s26 }
 0x65e   : > { %1679 = vrot.lane.b32.xlu0 %v3724_v15, %s3571_s25 }
 0x662   : > { %1677 = vrot.lane.b32.xlu0 %v3742_v29, %s3572_s26 }
 0x66a   : > { %1371 = vadd.xlane.f32.xlu1 %v1370_v38 }
 0x67b   : > { %1627 = vrot.lane.b32.xlu1 %v3744_v30, %s3572_s26 }
 0x67f   : > { %1729 = vrot.lane.b32.xlu1 %v3727_v17, %s3571_s25 }
 0x683   : > { %1727 = vrot.lane.b32.xlu1 %v3756_v33, %s3572_s26 }
 0x694   : > { %v1363_v39 = vpop.xlane.xlu0 %1362 }
 0x695   : > { %3500 = vrcp.f32 %v1363_v39 }
 0x698   : > { %v1386_v40 = vpop.permute.xlu0 %1385 }
 0x699   : > { %v1391_v43 = vsel %vm945_vm3, %v1386_v40, 0 }
 0x69a   : > { %3245 = vmatpush3.bf16.msra.mxu1 %v1391_v43 }
 0x69b   : > { %3256 = vmatprep.subr.bf16.mxu1 %v3564_v0 }
 0x6a2   : > { %v3501_v44 = vpop.eup %3500 }
 0x6a3   : > { %v1377_v45 = vmul.f32 %v3501_v44, %v3493_v8 }
 0x6a5   : > { %v1381_v48 = vpack.c.bf16 %v1377_v45, %v1377_v45 }
 0x6a7   : > { %3247 = vmatmul.mubr.msk.bf16.vlgmr.msra.gmra.mxu1 %vm698_vm2, %v1381_v48 }
 0x6a8   : > { %3257 = vmatpush3.bf16.msra.mxu1 %v1487_v49  ;;  %3258 = vmatprep.mubr.msk.bf16.mxu1 %vm3565_vm1, %v3564_v0 }
 0x6a9   : > { %3268 = vmatprep.subr.bf16.mxu1 %v3564_v0 }
 0x6be   : > { %v1366_v51 = vpop.xlane.xlu1 %1365 }
 0x6bf   : > { %3502 = vrcp.f32 %v1366_v51 }
 0x6c2   : > { %v1630_v8 = vpop.permute.xlu1 %1629 }
 0x6c3   : > { %v1635_v20 = vsel %vm698_vm2, %v1630_v8, 0 }
 0x6c9   : > { %v1369_v52 = vpop.xlane.xlu0 %1368 }
 0x6ca   : > { %3504 = vrcp.f32 %v1369_v52 }
 0x6cc   : > { %v3503_v53 = vpop.eup %3502 }
 0x6cd   : > { %v1378_v54 = vmul.f32 %v3503_v53, %v3495_v26  ;;  %v1580_v58 = vpop.permute.xlu0 %1579 }
 0x6ce   : > { %v1585_v63 = vsel %vm698_vm2, %v1580_v58, 0 }
 0x6cf   : > { %v1382_v56 = vpack.c.bf16 %v1378_v54, %v1378_v54 }
 0x6d1   : > { %3253 = vmatmul.mubr.msk.bf16.vlgmr.msra.gmra.mxu0 %vm698_vm2, %v1382_v56  ;;  %v1578_v62 = vpop.permute.xlu0 %1577 }
 0x6d2   : > { %3263 = vmatpush3.bf16.msra.mxu0 %v1535_v57  ;;  %3264 = vmatprep.mubr.msk.bf16.mxu0 %vm3565_vm1, %v3564_v0 }
 0x6d3   : > { %3274 = vmatprep.subr.bf16.mxu0 %v3564_v0 }
 0x6d5   : > { %v1680_v1 = vpop.permute.xlu0 %1679 }
 0x6d6   : > { %v1685_v6 = vsel %vm698_vm2, %v1680_v1, 0 }
 0x6d7   : > { %v3505_v59 = vpop.eup %3504 }
 0x6d8   : > { %v1379_v60 = vmul.f32 %v3505_v59, %v3497_v28 }
 0x6d9   : > { %v1678_v7 = vpop.permute.xlu0 %1677 }
 0x6da   : > { %v1383_v61 = vpack.c.bf16 %v1379_v60, %v1379_v60 }
 0x6dc   : > { %3259 = vmatmul.mubr.msk.bf16.vlgmr.msra.gmra.mxu1 %vm698_vm2, %v1383_v61 }
 0x6dd   : > { %3269 = vmatpush3.bf16.xpose.msra.mxu1 %v1585_v63  ;;  %3270 = vmatprep.mubr.msk.bf16.mxu1 %vm3565_vm1, %v3564_v0 }
 0x6de   : > { %3280 = vmatprep.subr.bf16.mxu1 %v3564_v0 }
 0x6e4   : > { %3271 = vmatmul.mubr.msk.bf16.vlgmr.msra.gmra.mxu1 %vm698_vm2, %v1578_v62 }
 0x6e5   : > { %3281 = vmatpush3.bf16.xpose.msra.mxu1 %v1685_v6  ;;  %3282 = vmatprep.mubr.msk.bf16.mxu1 %vm3565_vm1, %v3564_v0 }
 0x6e6   : > { %3292 = vmatprep.subr.bf16.mxu1 %v3564_v0 }
 0x6ec   : > { %3283 = vmatmul.mubr.msk.bf16.vlgmr.msra.gmra.mxu1 %vm698_vm2, %v1678_v7 }
 0x6ed   : > { %3294 = vmatprep.mubr.msk.bf16.mxu1 %vm3565_vm1, %v3564_v0 }
 0x6f3   : > { %v1372_v9 = vpop.xlane.xlu1 %1371 }
 0x6f4   : > { %3506 = vrcp.f32 %v1372_v9 }
 0x6f7   : > { %v1628_v19 = vpop.permute.xlu1 %1627 }
 0x6fb   : > { %v1730_v21 = vpop.permute.xlu1 %1729 }
 0x6fc   : > { %v1735_v23 = vsel %vm698_vm2, %v1730_v21, 0 }
 0x6ff   : > { %v1728_v24 = vpop.permute.xlu1 %1727 }
 0x701   : > { %v3507_v11 = vpop.eup %3506 }
 0x702   : > { %v1380_v12 = vmul.f32 %v3507_v11, %v3499_v37 }
 0x704   : > { %v1384_v16 = vpack.c.bf16 %v1380_v12, %v1380_v12 }
 0x706   : > { %3265 = vmatmul.mubr.msk.bf16.vlgmr.msra.gmra.mxu0 %vm698_vm2, %v1384_v16 }
 0x707   : > { %3275 = vmatpush3.bf16.xpose.msra.mxu0 %v1635_v20  ;;  %3276 = vmatprep.mubr.msk.bf16.mxu0 %vm3565_vm1, %v3564_v0 }
 0x708   : > { %3286 = vmatprep.subr.bf16.mxu0 %v3564_v0 }
 0x70e   : > { %3277 = vmatmul.mubr.msk.bf16.vlgmr.msra.gmra.mxu0 %vm698_vm2, %v1628_v19 }
 0x70f   : > { %3287 = vmatpush3.bf16.xpose.msra.mxu0 %v1735_v23  ;;  %3288 = vmatprep.mubr.msk.bf16.mxu0 %vm3565_vm1, %v3564_v0 }
 0x710   : > { %3298 = vmatprep.subr.bf16.mxu0 %v3564_v0 }
 0x716   : > { %3289 = vmatmul.mubr.msk.bf16.vlgmr.msra.gmra.mxu0 %vm698_vm2, %v1728_v24 }
 0x717   : > { %3300 = vmatprep.mubr.msk.bf16.mxu0 %vm3565_vm1, %v3564_v0 }
 0x767   : > { %v3914_v26 = vpop.f32.mrf.mxu1 }
 0x769   : > { %v3248_v27 = vpop.f32.mrf.mxu1 }
 0x76b   : > { %v1430_v28 = vpop.f32.mrf.mxu1 }
 0x76d   : > { %v3249_v31 = vpop.f32.mrf.mxu1 }
 0x791   : > { %v3916_v32 = vpop.f32.mrf.mxu0 }
 0x792   : > { %v3424_v35 = vpack.i.bf16 %v3916_v32, %v3914_v26 }
 0x793   : > { %v3254_v36 = vpop.f32.mrf.mxu0 }
 0x795   : > { %v1478_v37 = vpop.f32.mrf.mxu0 }
 0x797   : > { %v3255_v38 = vpop.f32.mrf.mxu0 }
 0x79c   : > { %v3920_v39 = vpop.f32.mrf.mxu1 }
 0x79e   : > { %v3260_v40 = vpop.f32.mrf.mxu1 }
 0x7a0   : > { %v1526_v43 = vpop.f32.mrf.mxu1 }
 0x7a2   : > { %v3261_v44 = vpop.f32.mrf.mxu1 }
 0x7a4   : > { %v1621_v45 = vpop.f32.mrf.mxu1 }
 0x7a5   : > { %v1622_v46 = vadd.f32 %v3766_v34, %v1621_v45 }
 0x7a6   : > { %v3272_v48 = vpop.f32.mrf.mxu1 }
 0x7a7   : > { %v1777_v49 = vsel %vm698_vm2, %v1622_v46, -inf }
 0x7a8   : > { %1778 = vmax.xlane.f32.xlu0 %v1777_v49  ;;  %v1624_v50 = vpop.f32.mrf.mxu1 }
 0x7aa   : > { %v3273_v51 = vpop.f32.mrf.mxu1 }
 0x7ac   : > { %v1721_v52 = vpop.f32.mrf.mxu1 }
 0x7ad   : > { %v1722_v53 = vadd.f32 %v3772_v42, %v1721_v52 }
 0x7ae   : > { %v3284_v54 = vpop.f32.mrf.mxu1 }
 0x7af   : > { %v1783_v56 = vsel %vm698_vm2, %v1722_v53, -inf }
 0x7b0   : > { %1784 = vmax.xlane.f32.xlu0 %v1783_v56  ;;  %v1724_v57 = vpop.f32.mrf.mxu1 }
 0x7b2   : > { %v3285_v58 = vpop.f32.mrf.mxu1 }
 0x7c6   : > { %v3926_v59 = vpop.f32.mrf.mxu0 }
 0x7c7   : > { %v3429_v60 = vpack.i.bf16 %v3926_v59, %v3920_v39 }
 0x7c8   : > { %v3266_v61 = vpop.f32.mrf.mxu0 }
 0x7ca   : > { %v1574_v62 = vpop.f32.mrf.mxu0 }
 0x7cc   : > { %v3267_v63 = vpop.f32.mrf.mxu0 }
 0x7ce   : > { %v1671_v1 = vpop.f32.mrf.mxu0 }
 0x7cf   : > { %v1672_v6 = vadd.f32 %v3770_v41, %v1671_v1 }
 0x7d0   : > { %v3278_v7 = vpop.f32.mrf.mxu0 }
 0x7d1   : > { %v1780_v8 = vsel %vm698_vm2, %v1672_v6, -inf }
 0x7d2   : > { %1781 = vmax.xlane.f32.xlu1 %v1780_v8  ;;  %v1674_v9 = vpop.f32.mrf.mxu0 }
 0x7d4   : > { %v3279_v11 = vpop.f32.mrf.mxu0 }
 0x7d6   : > { %v1771_v12 = vpop.f32.mrf.mxu0 }
 0x7d7   : > { %v1772_v16 = vadd.f32 %v3778_v55, %v1771_v12 }
 0x7d8   : > { %v3290_v19 = vpop.f32.mrf.mxu0 }
 0x7d9   : > { %v1786_v20 = vsel %vm698_vm2, %v1772_v16, -inf }
 0x7da   : > { %1787 = vmax.xlane.f32.xlu0 %v1786_v20  ;;  %v1774_v21 = vpop.f32.mrf.mxu0 }
 0x7dc   : > { %v3291_v23 = vpop.f32.mrf.mxu0 }
 0x7e3   : > { %1873 = vrot.lane.b32.xlu1 %v3721_v14, %s3573_s27 }
 0x7e7   : > { %1921 = vrot.lane.b32.xlu1 %v3724_v15, %s3573_s27 }
 0x7eb   : > { %1969 = vrot.lane.b32.xlu1 %v3727_v17, %s3573_s27 }
 0x831   : > { %v1779_v24 = vpop.xlane.xlu0 %1778 }
 0x832   : > { %v1789_v27 = vsub.f32 %v1622_v46, %v1779_v24 }
 0x834   : > { %v1793_v28 = vmul.f32 1.442695, %v1789_v27 }
 0x836   : > { %3508 = vpow2.f32 %v1793_v28 }
 0x839   : > { %v1785_v40 = vpop.xlane.xlu0 %1784 }
 0x83a   : > { %v1791_v48 = vsub.f32 %v1722_v53, %v1785_v40 }
 0x83c   : > { %v1797_v46 = vmul.f32 1.442695, %v1791_v48 }
 0x843   : > { %v3509_v31 = vpop.eup %3508 }
 0x844   : > { %v1801_v36 = vsel %vm698_vm2, %v3509_v31, 0.0 }
 0x845   : > { %1802 = vadd.xlane.f32.xlu0 %v1801_v36 }
 0x85b   : > { %v1782_v37 = vpop.xlane.xlu1 %1781  ;;  %1825 = vrot.lane.b32.xlu0 %v3718_v10, %s3573_s27 }
 0x85c   : > { %v1790_v38 = vsub.f32 %v1672_v6, %v1782_v37 }
 0x85e   : > { %v1795_v43 = vmul.f32 1.442695, %v1790_v38 }
 0x85f   : > { %v1874_v44 = vpop.permute.xlu1 %1873 }
 0x860   : > { %3510 = vpow2.f32 %v1795_v43  ;;  %v1879_v45 = vsel %vm945_vm3, %v1874_v44, 0 }
 0x861   : > { %3299 = vmatpush3.bf16.msra.mxu0 %v1879_v45  ;;  %3512 = vpow2.f32 %v1797_v46 }
 0x862   : > { %3310 = vmatprep.subr.bf16.mxu0 %v3564_v0 }
 0x863   : > { %v1788_v54 = vpop.xlane.xlu0 %1787  ;;  %v1922_v1 = vpop.permute.xlu1 %1921 }
 0x864   : > { %v1792_v56 = vsub.f32 %v1772_v16, %v1788_v54  ;;  %v1927_v7 = vsel %vm945_vm3, %v1922_v1, 0 }
 0x866   : > { %v1799_v57 = vmul.f32 1.442695, %v1792_v56 }
 0x868   : > { %3514 = vpow2.f32 %v1799_v57 }
 0x86d   : > { %v3511_v49 = vpop.eup %3510 }
 0x86e   : > { %v1804_v50 = vsel %vm698_vm2, %v3511_v49, 0.0  ;;  %v3513_v51 = vpop.eup %3512 }
 0x86f   : > { %1805 = vadd.xlane.f32.xlu1 %v1804_v50  ;;  %v1807_v52 = vsel %vm698_vm2, %v3513_v51, 0.0 }
 0x875   : > { %v3515_v53 = vpop.eup %3514 }
 0x876   : > { %v1810_v58 = vsel %vm698_vm2, %v3515_v53, 0.0 }
 0x87a   : > { %1808 = vadd.xlane.f32.xlu0 %v1807_v52 }
 0x880   : > { %2069 = vrot.lane.b32.xlu1 %v3721_v14, %s3574_s28 }
 0x890   : > { %2019 = vrot.lane.b32.xlu0 %v3718_v10, %s3574_s28 }
 0x894   : > { %2017 = vrot.lane.b32.xlu0 %v3732_v22, %s3575_s30 }
 0x898   : > { %2119 = vrot.lane.b32.xlu0 %v3724_v15, %s3574_s28 }
 0x89c   : > { %2117 = vrot.lane.b32.xlu0 %v3742_v29, %s3575_s30 }
 0x8a4   : > { %1811 = vadd.xlane.f32.xlu1 %v1810_v58 }
 0x8b5   : > { %2067 = vrot.lane.b32.xlu1 %v3744_v30, %s3575_s30  ;;  %v1970_v30 = vpop.permute.xlu1 %1969 }
 0x8b6   : > { %v1975_v16 = vsel %vm945_vm3, %v1970_v30, 0 }
 0x8b9   : > { %2169 = vrot.lane.b32.xlu1 %v3727_v17, %s3574_s28 }
 0x8bd   : > { %2167 = vrot.lane.b32.xlu1 %v3756_v33, %s3575_s30 }
 0x8ce   : > { %v1803_v61 = vpop.xlane.xlu0 %1802 }
 0x8cf   : > { %3516 = vrcp.f32 %v1803_v61 }
 0x8d2   : > { %v1826_v62 = vpop.permute.xlu0 %1825 }
 0x8d3   : > { %v1831_v63 = vsel %vm945_vm3, %v1826_v62, 0 }
 0x8d4   : > { %3293 = vmatpush3.bf16.msra.mxu1 %v1831_v63 }
 0x8d5   : > { %3304 = vmatprep.subr.bf16.mxu1 %v3564_v0 }
 0x8dc   : > { %v3517_v22 = vpop.eup %3516 }
 0x8dd   : > { %v1817_v29 = vmul.f32 %v3517_v22, %v3509_v31 }
 0x8df   : > { %v1821_v6 = vpack.c.bf16 %v1817_v29, %v1817_v29 }
 0x8e1   : > { %3295 = vmatmul.mubr.msk.bf16.vlgmr.msra.gmra.mxu1 %vm698_vm2, %v1821_v6 }
 0x8e2   : > { %3305 = vmatpush3.bf16.msra.mxu1 %v1927_v7  ;;  %3306 = vmatprep.mubr.msk.bf16.mxu1 %vm3565_vm1, %v3564_v0 }
 0x8e3   : > { %3316 = vmatprep.subr.bf16.mxu1 %v3564_v0 }
 0x8f8   : > { %v1806_v33 = vpop.xlane.xlu1 %1805 }
 0x8f9   : > { %3518 = vrcp.f32 %v1806_v33 }
 0x8fc   : > { %v2070_v37 = vpop.permute.xlu1 %2069 }
 0x8fd   : > { %v2075_v48 = vsel %vm698_vm2, %v2070_v37, 0 }
 0x903   : > { %v1809_v8 = vpop.xlane.xlu0 %1808 }
 0x904   : > { %3520 = vrcp.f32 %v1809_v8 }
 0x906   : > { %v3519_v9 = vpop.eup %3518 }
 0x907   : > { %v1818_v11 = vmul.f32 %v3519_v9, %v3511_v49  ;;  %v2020_v19 = vpop.permute.xlu0 %2019 }
 0x908   : > { %v2025_v27 = vsel %vm698_vm2, %v2020_v19, 0 }
 0x909   : > { %v1822_v12 = vpack.c.bf16 %v1818_v11, %v1818_v11 }
 0x90b   : > { %3301 = vmatmul.mubr.msk.bf16.vlgmr.msra.gmra.mxu0 %vm698_vm2, %v1822_v12  ;;  %v2018_v24 = vpop.permute.xlu0 %2017 }
 0x90c   : > { %3311 = vmatpush3.bf16.msra.mxu0 %v1975_v16  ;;  %3312 = vmatprep.mubr.msk.bf16.mxu0 %vm3565_vm1, %v3564_v0 }
 0x90d   : > { %3322 = vmatprep.subr.bf16.mxu0 %v3564_v0 }
 0x90f   : > { %v2120_v28 = vpop.permute.xlu0 %2119 }
 0x910   : > { %v2125_v31 = vsel %vm698_vm2, %v2120_v28, 0 }
 0x911   : > { %v3521_v20 = vpop.eup %3520 }
 0x912   : > { %v1819_v21 = vmul.f32 %v3521_v20, %v3513_v51 }
 0x913   : > { %v2118_v36 = vpop.permute.xlu0 %2117 }
 0x914   : > { %v1823_v23 = vpack.c.bf16 %v1819_v21, %v1819_v21 }
 0x916   : > { %3307 = vmatmul.mubr.msk.bf16.vlgmr.msra.gmra.mxu1 %vm698_vm2, %v1823_v23 }
 0x917   : > { %3317 = vmatpush3.bf16.xpose.msra.mxu1 %v2025_v27  ;;  %3318 = vmatprep.mubr.msk.bf16.mxu1 %vm3565_vm1, %v3564_v0 }
 0x918   : > { %3328 = vmatprep.subr.bf16.mxu1 %v3564_v0 }
 0x91e   : > { %3319 = vmatmul.mubr.msk.bf16.vlgmr.msra.gmra.mxu1 %vm698_vm2, %v2018_v24 }
 0x91f   : > { %3329 = vmatpush3.bf16.xpose.msra.mxu1 %v2125_v31  ;;  %3330 = vmatprep.mubr.msk.bf16.mxu1 %vm3565_vm1, %v3564_v0 }
 0x920   : > { %3340 = vmatprep.subr.bf16.mxu1 %v3564_v0 }
 0x926   : > { %3331 = vmatmul.mubr.msk.bf16.vlgmr.msra.gmra.mxu1 %vm698_vm2, %v2118_v36 }
 0x927   : > { %3342 = vmatprep.mubr.msk.bf16.mxu1 %vm3565_vm1, %v3564_v0 }
 0x92d   : > { %v1812_v38 = vpop.xlane.xlu1 %1811 }
 0x92e   : > { %3522 = vrcp.f32 %v1812_v38 }
 0x931   : > { %v2068_v45 = vpop.permute.xlu1 %2067 }
 0x935   : > { %v2170_v46 = vpop.permute.xlu1 %2169 }
 0x936   : > { %v2175_v49 = vsel %vm698_vm2, %v2170_v46, 0 }
 0x939   : > { %v2168_v50 = vpop.permute.xlu1 %2167 }
 0x93b   : > { %v3523_v40 = vpop.eup %3522 }
 0x93c   : > { %v1820_v43 = vmul.f32 %v3523_v40, %v3515_v53 }
 0x93e   : > { %v1824_v44 = vpack.c.bf16 %v1820_v43, %v1820_v43 }
 0x940   : > { %3313 = vmatmul.mubr.msk.bf16.vlgmr.msra.gmra.mxu0 %vm698_vm2, %v1824_v44 }
 0x941   : > { %3323 = vmatpush3.bf16.xpose.msra.mxu0 %v2075_v48  ;;  %3324 = vmatprep.mubr.msk.bf16.mxu0 %vm3565_vm1, %v3564_v0 }
 0x942   : > { %3334 = vmatprep.subr.bf16.mxu0 %v3564_v0 }
 0x948   : > { %3325 = vmatmul.mubr.msk.bf16.vlgmr.msra.gmra.mxu0 %vm698_vm2, %v2068_v45 }
 0x949   : > { %3335 = vmatpush3.bf16.xpose.msra.mxu0 %v2175_v49  ;;  %3336 = vmatprep.mubr.msk.bf16.mxu0 %vm3565_vm1, %v3564_v0 }
 0x94a   : > { %3346 = vmatprep.subr.bf16.mxu0 %v3564_v0 }
 0x950   : > { %3337 = vmatmul.mubr.msk.bf16.vlgmr.msra.gmra.mxu0 %vm698_vm2, %v2168_v50 }
 0x951   : > { %3348 = vmatprep.mubr.msk.bf16.mxu0 %vm3565_vm1, %v3564_v0 }
 0x9a1   : > { %v3990_v51 = vpop.f32.mrf.mxu1 }
 0x9a3   : > { %v3296_v52 = vpop.f32.mrf.mxu1 }
 0x9a5   : > { %v1870_v54 = vpop.f32.mrf.mxu1 }
 0x9a7   : > { %v3297_v56 = vpop.f32.mrf.mxu1 }
 0x9cb   : > { %v3992_v57 = vpop.f32.mrf.mxu0 }
 0x9cc   : > { %v3434_v53 = vpack.i.bf16 %v3992_v57, %v3990_v51 }
 0x9cd   : > { %v3302_v58 = vpop.f32.mrf.mxu0 }
 0x9cf   : > { %v1918_v61 = vpop.f32.mrf.mxu0 }
 0x9d1   : > { %v3303_v62 = vpop.f32.mrf.mxu0 }
 0x9d6   : > { %v3996_v63 = vpop.f32.mrf.mxu1 }
 0x9d8   : > { %v3308_v22 = vpop.f32.mrf.mxu1 }
 0x9da   : > { %v1966_v29 = vpop.f32.mrf.mxu1 }
 0x9dc   : > { %v3309_v1 = vpop.f32.mrf.mxu1 }
 0x9de   : > { %v2061_v6 = vpop.f32.mrf.mxu1 }
 0x9df   : > { %v2062_v7 = vadd.f32 %v3766_v34, %v2061_v6 }
 0x9e0   : > { %v3320_v30 = vpop.f32.mrf.mxu1 }
 0x9e1   : > { %v2217_v33 = vsel %vm698_vm2, %v2062_v7, -inf }
 0x9e2   : > { %2218 = vmax.xlane.f32.xlu0 %v2217_v33  ;;  %v2064_v8 = vpop.f32.mrf.mxu1 }
 0x9e4   : > { %v3321_v9 = vpop.f32.mrf.mxu1 }
 0x9e6   : > { %v2161_v11 = vpop.f32.mrf.mxu1 }
 0x9e7   : > { %v2162_v12 = vadd.f32 %v3772_v42, %v2161_v11 }
 0x9e8   : > { %v3332_v16 = vpop.f32.mrf.mxu1 }
 0x9e9   : > { %v2223_v19 = vsel %vm698_vm2, %v2162_v12, -inf }
 0x9ea   : > { %2224 = vmax.xlane.f32.xlu0 %v2223_v19  ;;  %v2164_v20 = vpop.f32.mrf.mxu1 }
 0x9ec   : > { %v3333_v21 = vpop.f32.mrf.mxu1 }
 0xa00   : > { %v2011_v23 = vpop.f32.mrf.mxu0 }
 0xa01   : > { %v3439_v24 = vpack.i.bf16 %v2011_v23, %v3996_v63 }
 0xa02   : > { %v3314_v27 = vpop.f32.mrf.mxu0 }
 0xa04   : > { %v2014_v34 = vpop.f32.mrf.mxu0 }
 0xa06   : > { %v3315_v28 = vpop.f32.mrf.mxu0 }
 0xa08   : > { %v2111_v31 = vpop.f32.mrf.mxu0 }
 0xa09   : > { %v2112_v36 = vadd.f32 %v3770_v41, %v2111_v31 }
 0xa0a   : > { %v3326_v37 = vpop.f32.mrf.mxu0 }
 0xa0b   : > { %v2220_v38 = vsel %vm698_vm2, %v2112_v36, -inf }
 0xa0c   : > { %2221 = vmax.xlane.f32.xlu1 %v2220_v38  ;;  %v2114_v42 = vpop.f32.mrf.mxu0 }
 0xa0e   : > { %v3327_v40 = vpop.f32.mrf.mxu0 }
 0xa10   : > { %v2211_v43 = vpop.f32.mrf.mxu0 }
 0xa11   : > { %v2212_v44 = vadd.f32 %v3778_v55, %v2211_v43 }
 0xa12   : > { %v3338_v45 = vpop.f32.mrf.mxu0 }
 0xa13   : > { %v2226_v48 = vsel %vm698_vm2, %v2212_v44, -inf }
 0xa14   : > { %2227 = vmax.xlane.f32.xlu0 %v2226_v48  ;;  %v2214_v46 = vpop.f32.mrf.mxu0 }
 0xa16   : > { %v3339_v49 = vpop.f32.mrf.mxu0 }
 0xa6b   : > { %v2219_v50 = vpop.xlane.xlu0 %2218 }
 0xa6c   : > { %v2229_v52 = vsub.f32 %v2062_v7, %v2219_v50 }
 0xa6e   : > { %v2233_v54 = vmul.f32 1.442695, %v2229_v52 }
 0xa70   : > { %3524 = vpow2.f32 %v2233_v54  ;;  %v3457_v54 = vld [vmem:[%s4155_s6] sm:$0xff]  }
 0xa73   : > { %v2225_v41 = vpop.xlane.xlu0 %2224 }
 0xa74   : > { %v2231_v56 = vsub.f32 %v2162_v12, %v2225_v41 }
 0xa76   : > { %v2237_v58 = vmul.f32 1.442695, %v2231_v56 }
 0xa78   : > { %3526 = vpow2.f32 %v2237_v58 }
 0xa7d   : > { %v3525_v61 = vpop.eup %3524 }
 0xa7e   : > { %v2241_v62 = vsel %vm698_vm2, %v3525_v61, 0.0 }
 0xa7f   : > { %2242 = vadd.xlane.f32.xlu0 %v2241_v62 }
 0xa85   : > { %v3527_v63 = vpop.eup %3526 }
 0xa86   : > { %v2247_v55 = vsel %vm698_vm2, %v3527_v63, 0.0 }
 0xa87   : > { %2248 = vadd.xlane.f32.xlu0 %v2247_v55 }
 0xa95   : > { %v2222_v22 = vpop.xlane.xlu1 %2221 }
 0xa96   : > { %v2230_v29 = vsub.f32 %v2112_v36, %v2222_v22 }
 0xa98   : > { %v2235_v1 = vmul.f32 1.442695, %v2230_v29 }
 0xa9a   : > { %3528 = vpow2.f32 %v2235_v1 }
 0xa9d   : > { %2265 = vrot.lane.b32.xlu0 %v3718_v10, %s3576_s17  ;;  %v2228_v30 = vpop.xlane.xlu0 %2227 }
 0xa9e   : > { %v2232_v10 = vsub.f32 %v2212_v44, %v2228_v30 }
 0xaa0   : > { %v2239_v33 = vmul.f32 1.442695, %v2232_v10 }
 0xaa1   : > { %3425 = vrot.lane.b32.xlu0 %v3424_v35, %s3577_s18 }
 0xaa2   : > { %3530 = vpow2.f32 %v2239_v33 }
 0xaa5   : > { %3435 = vrot.lane.b32.xlu0 %v3434_v53, %s3578_s19 }
 0xaa7   : > { %v3529_v6 = vpop.eup %3528 }
 0xaa8   : > { %v2244_v7 = vsel %vm698_vm2, %v3529_v6, 0.0 }
 0xaa9   : > { %2245 = vadd.xlane.f32.xlu1 %v2244_v7 }
 0xaaf   : > { %v3531_v8 = vpop.eup %3530 }
 0xab0   : > { %v2250_v26 = vsel %vm698_vm2, %v3531_v8, 0.0 }
 0xaba   : > { %2313 = vrot.lane.b32.xlu1 %v3721_v14, %s3576_s17 }
 0xabe   : > { %2361 = vrot.lane.b32.xlu1 %v3724_v15, %s3576_s17 }
 0xae2   : > { %2251 = vadd.xlane.f32.xlu1 %v2250_v26 }
 0xaf3   : > { %2409 = vrot.lane.b32.xlu1 %v3727_v17, %s3576_s17 }
 0xaf7   : > { %3430 = vrot.lane.b32.xlu1 %v3429_v60, %s3577_s18  ;;  %s488_s18 = scalar_lea.vmem %s4163_s14, %s2999_s16 }
 0xafb   : > { %3440 = vrot.lane.b32.xlu1 %v3439_v24, %s3578_s19 }
 0xb08   : > { %v2243_v32 = vpop.xlane.xlu0 %2242 }
 0xb09   : > { %3532 = vrcp.f32 %v2243_v32 }
 0xb10   : > { %v2249_v14 = vpop.xlane.xlu0 %2248 }
 0xb11   : > { %3534 = vrcp.f32 %v2249_v14 }
 0xb14   : > { %v2266_v35 = vpop.permute.xlu0 %2265 }
 0xb15   : > { %v2271_v15 = vsel %vm945_vm3, %v2266_v35, 0 }
 0xb16   : > { %v3533_v51 = vpop.eup %3532  ;;  %3341 = vmatpush3.bf16.msra.mxu1 %v2271_v15 }
 0xb17   : > { %v2257_v57 = vmul.f32 %v3533_v51, %v3525_v61  ;;  %3352 = vmatprep.subr.bf16.mxu1 %v3564_v0 }
 0xb19   : > { %v2261_v53 = vpack.c.bf16 %v2257_v57, %v2257_v57 }
 0xb1b   : > { %3343 = vmatmul.mubr.msk.bf16.vlgmr.msra.gmra.mxu1 %vm698_vm2, %v2261_v53 }
 0xb1c   : > { %3354 = vmatprep.mubr.msk.bf16.mxu1 %vm3565_vm1, %v3564_v0 }
 0xb1e   : > { %v3535_v39 = vpop.eup %3534 }
 0xb1f   : > { %v2259_v9 = vmul.f32 %v3535_v39, %v3527_v63  ;;  %v3426_v63 = vpop.permute.xlu0 %3425 }
 0xb20   : > { %v3428_v22 = vunpack.i.h.bf16 %v3426_v63  ;;  %v3427_v29 = vunpack.i.l.bf16 %v3426_v63 }
 0xb21   : > { %v2263_v16 = vpack.c.bf16 %v2259_v9, %v2259_v9 }
 0xb22   : > { %v2506_v30 = vsel %vm698_vm2, %v3842_v13, %v3428_v22  ;;  %v2505_v10 = vsel %vm698_vm2, %v3844_v18, %v3427_v29 }
 0xb23   : > { %v3436_v55 = vpop.permute.xlu0 %3435 }
 0xb24   : > { %v3438_v1 = vunpack.i.h.bf16 %v3436_v55 }
 0xb26   : > { %v2511_v32 = vsel %vm2509_vm4, %v2506_v30, %v3438_v1 }
 0xb32   : > { %v2246_v17 = vpop.xlane.xlu1 %2245 }
 0xb33   : > { %3536 = vrcp.f32 %v2246_v17 }
 0xb36   : > { %v2314_v59 = vpop.permute.xlu1 %2313 }
 0xb37   : > { %v2319_v60 = vsel %vm945_vm3, %v2314_v59, 0 }
 0xb38   : > { %3347 = vmatpush3.bf16.msra.mxu0 %v2319_v60 }
 0xb39   : > { %3358 = vmatprep.subr.bf16.mxu0 %v3564_v0 }
 0xb3a   : > { %v2362_v11 = vpop.permute.xlu1 %2361 }
 0xb3b   : > { %v2367_v12 = vsel %vm945_vm3, %v2362_v11, 0 }
 0xb3c   : > { %3353 = vmatpush3.bf16.msra.mxu1 %v2367_v12 }
 0xb3f   : > { %3355 = vmatmul.mubr.msk.bf16.vlgmr.msra.gmra.mxu1 %vm698_vm2, %v2263_v16 }
 0xb40   : > { %v3537_v19 = vpop.eup %3536 }
 0xb41   : > { %v2258_v20 = vmul.f32 %v3537_v19, %v3529_v6  ;;  %v3437_v6 = vunpack.i.l.bf16 %v3436_v55 }
 0xb43   : > { %v2262_v21 = vpack.c.bf16 %v2258_v20, %v2258_v20  ;;  %v2510_v26 = vsel %vm2509_vm4, %v2505_v10, %v3437_v6  ;;  %v3458_v6 = vld [vmem:[%s4159_s10 + $0x8] sm:$0xff]  }
 0xb45   : > { %3349 = vmatmul.mubr.msk.bf16.vlgmr.msra.gmra.mxu0 %vm698_vm2, %v2262_v21 }
 0xb46   : > { %3360 = vmatprep.mubr.msk.bf16.mxu0 %vm3565_vm1, %v3564_v0  ;;  %v3456_v0 = vld [vmem:[%s4155_s6 + $0x8] sm:$0xff]  }
 0xb47   : > { %3364 = vmatprep.subr.bf16.mxu1 %v3456_v0 }
 0xb48   : > { %3365 = vmatpush3.bf16.msra.mxu1 %v3456_v0 }
 0xb49   : > { %3366 = vmatprep.subr.bf16.mxu1 %v3457_v54 }
 0xb4c   : > { %3367 = vmatpush3.bf16.msra.mxu1 %v3457_v54 }
 0xb6b   : > { %v2252_v23 = vpop.xlane.xlu1 %2251 }
 0xb6c   : > { %3538 = vrcp.f32 %v2252_v23 }
 0xb6f   : > { %v2410_v24 = vpop.permute.xlu1 %2409 }
 0xb70   : > { %v2415_v27 = vsel %vm945_vm3, %v2410_v24, 0 }
 0xb71   : > { %3359 = vmatpush3.bf16.msra.mxu0 %v2415_v27 }
 0xb72   : > { %3372 = vmatprep.subr.bf16.mxu0 %v3458_v6 }
 0xb73   : > { %v3431_v51 = vpop.permute.xlu1 %3430 }
 0xb74   : > { %v3433_v53 = vunpack.i.h.bf16 %v3431_v51  ;;  %v3432_v13 = vunpack.i.l.bf16 %v3431_v51 }
 0xb76   : > { %v2508_v59 = vsel %vm698_vm2, %v3852_v47, %v3433_v53  ;;  %v2507_v60 = vsel %vm698_vm2, %v3846_v25, %v3432_v13  ;;  %v3046_v47 = vld [vmem:[%s4156_s7] ss:$0 sm:$0xff] }
 0xb77   : > { %v3441_v57 = vpop.permute.xlu1 %3440 }
 0xb78   : > { %v3443_v17 = vunpack.i.h.bf16 %v3441_v57  ;;  %v3442_v39 = vunpack.i.l.bf16 %v3441_v57 }
 0xb79   : > { %v3539_v34 = vpop.eup %3538 }
 0xb7a   : > { %v2260_v28 = vmul.f32 %v3539_v34, %v3531_v8  ;;  %v2512_v12 = vsel %vm2509_vm4, %v2507_v60, %v3442_v39  ;;  %v2513_v16 = vsel %vm2509_vm4, %v2508_v59, %v3443_v17  ;;  %v3051_v39 = vld [vmem:[%s4157_s8] ss:$0 sm:$0xff] }
 0xb7c   : > { %v2264_v31 = vpack.c.bf16 %v2260_v28, %v2260_v28 }
 0xb7e   : > { %3361 = vmatmul.mubr.msk.bf16.vlgmr.msra.gmra.mxu0 %vm698_vm2, %v2264_v31 }
 0xb7f   : > { %3373 = vmatpush3.bf16.msra.mxu0 %v3458_v6 }
 0xbdb   : > { %v2307_v36 = vpop.f32.mrf.mxu1 }
 0xbdd   : > { %v3344_v37 = vpop.f32.mrf.mxu1 }
 0xbdf   : > { %v2310_v38 = vpop.f32.mrf.mxu1 }
 0xbe1   : > { %v3345_v42 = vpop.f32.mrf.mxu1 }
 0xbff   : > { %v2403_v40 = vpop.f32.mrf.mxu1 }
 0xc01   : > { %v3356_v43 = vpop.f32.mrf.mxu1 }
 0xc03   : > { %v2406_v44 = vpop.f32.mrf.mxu1 }
 0xc05   : > { %v2355_v45 = vpop.f32.mrf.mxu0  ;;  %v3357_v48 = vpop.f32.mrf.mxu1 }
 0xc06   : > { %v3444_v46 = vpack.i.bf16 %v2355_v45, %v2307_v36 }
 0xc07   : > { %v3350_v49 = vpop.f32.mrf.mxu0 }
 0xc08   : > { %3445 = vrot.lane.b32.xlu0 %v3444_v46, %s3579_s22 }
 0xc09   : > { %v2358_v50 = vpop.f32.mrf.mxu0 }
 0xc0b   : > { %v3351_v52 = vpop.f32.mrf.mxu0 }
 0xc3e   : > { %v2451_v41 = vpop.f32.mrf.mxu0 }
 0xc3f   : > { %v3449_v56 = vpack.i.bf16 %v2451_v41, %v2403_v40 }
 0xc40   : > { %v3362_v58 = vpop.f32.mrf.mxu0 }
 0xc41   : > { %3450 = vrot.lane.b32.xlu1 %v3449_v56, %s3579_s22 }
 0xc42   : > { %v2454_v61 = vpop.f32.mrf.mxu0 }
 0xc44   : > { %v3363_v62 = vpop.f32.mrf.mxu0 }
 0xc7a   : > { %v3446_v7 = vpop.permute.xlu0 %3445 }
 0xc7b   : > { %v3448_v33 = vunpack.i.h.bf16 %v3446_v7  ;;  %v3447_v8 = vunpack.i.l.bf16 %v3446_v7  ;;  %v3459_v7 = vld [vmem:[%s4159_s10] sm:$0xff]  }
 0xc7c   : > { %3374 = vmatprep.subr.bf16.mxu0 %v3459_v7 }
 0xc7d   : > { %v2516_v14 = vsel %vm2514_vm5, %v2511_v32, %v3448_v33  ;;  %v2515_v35 = vsel %vm2514_vm5, %v2510_v26, %v3447_v8  ;;  %3375 = vmatpush3.bf16.msra.mxu0 %v3459_v7 }
 0xc7e   : > { %v2519_v15 = vpack.c.bf16 %v2516_v14, %v2515_v35 }
 0xc80   : > { %3368 = vmatprep.mubr.msk.bf16.mxu1 %vm499_vm0, %v2519_v15 }
 0xcb3   : > { %v3451_v18 = vpop.permute.xlu1 %3450 }
 0xcb4   : > { %v3453_v9 = vunpack.i.h.bf16 %v3451_v18  ;;  %v3452_v11 = vunpack.i.l.bf16 %v3451_v18 }
 0xcb6   : > { %v2518_v19 = vsel %vm2514_vm5, %v2513_v16, %v3453_v9  ;;  %v2517_v20 = vsel %vm2514_vm5, %v2512_v12, %v3452_v11  ;;  %v3052_v12 = vld [vmem:[%s4158_s9] ss:$0 sm:$0xff] }
 0xcb7   : > { %v2520_v21 = vpack.c.bf16 %v2518_v19, %v2517_v20 }
 0xcb9   : > { %3369 = vmatmul.mubr.msk.bf16.vlgmr.msra.gmra.mxu1 %vm499_vm0, %v2520_v21 }
 0xd79   : > { %v3370_v23 = vpop.f32.mrf.mxu1 }
 0xd7a   : > { %v2593_v25 = vadd.f32 %v3370_v23, %v3046_v47 }
 0xd7b   : > { %v2584_v24 = vpop.f32.mrf.mxu1 }
 0xd7c   : > { %v2585_v27 = vadd.f32 %v3046_v47, %v2584_v24  ;;  %v4069_v36 = vadd.f32 %v3673_v3, %v2593_v25 }
 0xd7d   : > { %v3371_v34 = vpop.f32.mrf.mxu1 }
 0xd7e   : > { %v4066_v28 = vadd.f32 %v3671_v2, %v2585_v27  ;;  %v2596_v37 = vadd.f32 %v3371_v34, %v3046_v47  ;;  %v2609_v43 = vsel %vm499_vm0, %v4069_v36, 0.0 }
 0xd7f   : > { %v2587_v31 = vpop.f32.mrf.mxu1 }
 0xd80   : > { %v2588_v38 = vadd.f32 %v3046_v47, %v2587_v31  ;;  %v2603_v42 = vsel %vm499_vm0, %v4066_v28, 0.0  ;;  %v4077_v0 = vadd.f32 %v3677_v5, %v2596_v37  ;;  %v3460_v37 = vld [vmem:[%s4161_s12 + $0x38] sm:$0xff]  }
 0xd81   : > { %2604 = vadd.xlane.f32.xlu0 %v2603_v42  ;;  %3380 = vmatprep.subr.bf16.mxu1 %v3460_v37  ;;  %v3462_v42 = vld [vmem:[%s4161_s12 + $0x28] sm:$0xff]  }
 0xd82   : > { %v4074_v40 = vadd.f32 %v3675_v4, %v2588_v38  ;;  %v2612_v3 = vsel %vm499_vm0, %v4077_v0, 0.0  ;;  %3381 = vmatpush3.bf16.msra.mxu1 %v3460_v37  ;;  %v3461_v38 = vld [vmem:[%s4161_s12 + $0x30] sm:$0xff]  }
 0xd83   : > { %3382 = vmatprep.subr.bf16.mxu1 %v3461_v38 }
 0xd84   : > { %v2606_v2 = vsel %vm499_vm0, %v4074_v40, 0.0 }
 0xd85   : > { %2607 = vadd.xlane.f32.xlu1 %v2606_v2  ;;  %2610 = vadd.xlane.f32.xlu0 %v2609_v43  ;;  %v3463_v2 = vld [vmem:[%s4161_s12 + $0x20] sm:$0xff]   ;;  %v3464_v43 = vld [vmem:[%s4161_s12 + $0x18] sm:$0xff]  }
 0xd86   : > { %3383 = vmatpush3.bf16.msra.mxu1 %v3461_v38 }
 0xd87   : > { %3384 = vmatprep.subr.bf16.mxu1 %v3462_v42 }
 0xd89   : > { %2613 = vadd.xlane.f32.xlu0 %v2612_v3  ;;  %v3465_v3 = vld [vmem:[%s4161_s12 + $0x10] sm:$0xff]  }
 0xd8a   : > { %3385 = vmatpush3.bf16.msra.mxu1 %v3462_v42 }
 0xd8b   : > { %3386 = vmatprep.subr.bf16.mxu1 %v3463_v2 }
 0xd8e   : > { %3387 = vmatpush3.bf16.msra.mxu1 %v3463_v2 }
 0xd8f   : > { %3388 = vmatprep.subr.bf16.mxu1 %v3464_v43 }
 0xd92   : > { %3389 = vmatpush3.bf16.msra.mxu1 %v3464_v43 }
 0xd93   : > { %3390 = vmatprep.subr.bf16.mxu1 %v3465_v3 }
 0xd96   : > { %3391 = vmatpush3.bf16.msra.mxu1 %v3465_v3 }
 0xe0a   : > { %v2605_v44 = vpop.xlane.xlu0 %2604 }
 0xe0b   : > { %v2615_v45 = vmul.f32 0.03125, %v2605_v44  ;;  %v3466_v44 = vld [vmem:[%s4161_s12 + $0x8] sm:$0xff]  }
 0xe0c   : > { %3392 = vmatprep.subr.bf16.mxu1 %v3466_v44 }
 0xe0d   : > { %v2619_v4 = vsub.f32 %v4066_v28, %v2615_v45  ;;  %v3467_v45 = vld [vmem:[%s4161_s12] sm:$0xff]   ;;  %3393 = vmatpush3.bf16.msra.mxu1 %v3466_v44 }
 0xe0e   : > { %v2608_v48 = vpop.xlane.xlu1 %2607  ;;  %v2611_v46 = vpop.xlane.xlu0 %2610  ;;  %3394 = vmatprep.subr.bf16.mxu1 %v3467_v45 }
 0xe0f   : > { %v2616_v5 = vmul.f32 0.03125, %v2608_v48  ;;  %v2617_v49 = vmul.f32 0.03125, %v2611_v46  ;;  %v2623_v50 = vmul.f32 %v2619_v4, %v2619_v4 }
 0xe11   : > { %v2620_v52 = vsub.f32 %v4074_v40, %v2616_v5  ;;  %v2621_v54 = vsub.f32 %v4069_v36, %v2617_v49  ;;  %v2627_v41 = vsel %vm499_vm0, %v2623_v50, 0.0  ;;  %3395 = vmatpush3.bf16.msra.mxu1 %v3467_v45 }
 0xe12   : > { %2628 = vadd.xlane.f32.xlu0 %v2627_v41  ;;  %v2614_v56 = vpop.xlane.xlu0 %2613 }
 0xe13   : > { %v2618_v58 = vmul.f32 0.03125, %v2614_v56  ;;  %v2624_v61 = vmul.f32 %v2620_v52, %v2620_v52  ;;  %v2625_v62 = vmul.f32 %v2621_v54, %v2621_v54 }
 0xe15   : > { %v2622_v63 = vsub.f32 %v4077_v0, %v2618_v58  ;;  %v2630_v55 = vsel %vm499_vm0, %v2624_v61, 0.0  ;;  %v2633_v22 = vsel %vm499_vm0, %v2625_v62, 0.0 }
 0xe16   : > { %2631 = vadd.xlane.f32.xlu1 %v2630_v55  ;;  %2634 = vadd.xlane.f32.xlu0 %v2633_v22 }
 0xe17   : > { %v2626_v29 = vmul.f32 %v2622_v63, %v2622_v63 }
 0xe19   : > { %v2636_v1 = vsel %vm499_vm0, %v2626_v29, 0.0 }
 0xe1a   : > { %2637 = vadd.xlane.f32.xlu1 %v2636_v1 }
 0xe9b   : > { %v2629_v30 = vpop.xlane.xlu0 %2628 }
 0xe9c   : > { %v2639_v10 = vmul.f32 0.03125, %v2629_v30 }
 0xe9e   : > { %v2643_v33 = vadd.f32 1e-05, %v2639_v10 }
 0xe9f   : > { %v2632_v8 = vpop.xlane.xlu1 %2631  ;;  %v2635_v26 = vpop.xlane.xlu0 %2634 }
 0xea0   : > { %3540 = vrsqrt.f32 %v2643_v33  ;;  %v2640_v32 = vmul.f32 0.03125, %v2632_v8  ;;  %v2641_v14 = vmul.f32 0.03125, %v2635_v26 }
 0xea2   : > { %v2644_v35 = vadd.f32 1e-05, %v2640_v32  ;;  %v2645_v15 = vadd.f32 1e-05, %v2641_v14 }
 0xea3   : > { %v2638_v51 = vpop.xlane.xlu1 %2637 }
 0xea4   : > { %3542 = vrsqrt.f32 %v2644_v35  ;;  %v2642_v57 = vmul.f32 0.03125, %v2638_v51 }
 0xea5   : > { %3544 = vrsqrt.f32 %v2645_v15 }
 0xea6   : > { %v2646_v53 = vadd.f32 1e-05, %v2642_v57 }
 0xea8   : > { %3546 = vrsqrt.f32 %v2646_v53 }
 0xead   : > { %v3541_v13 = vpop.eup %3540 }
 0xeae   : > { %v2651_v17 = vmul.f32 %v3541_v13, %v2619_v4  ;;  %v3053_v4 = vld [vmem:[%s4160_s11] ss:$0 sm:$0xff] }
 0xeb0   : > { %v2662_v9 = vmul.f32 %v3051_v39, %v2651_v17 }
 0xeb1   : > { %v3543_v18 = vpop.eup %3542 }
 0xeb2   : > { %v3545_v59 = vpop.eup %3544  ;;  %v2652_v60 = vmul.f32 %v3543_v18, %v2620_v52  ;;  %v2673_v21 = vadd.f32 %v3052_v12, %v2662_v9 }
 0xeb3   : > { %v2653_v11 = vmul.f32 %v3545_v59, %v2621_v54 }
 0xeb4   : > { %v2663_v16 = vmul.f32 %v3051_v39, %v2652_v60 }
 0xeb5   : > { %v3547_v19 = vpop.eup %3546  ;;  %v2664_v47 = vmul.f32 %v3051_v39, %v2653_v11 }
 0xeb6   : > { %v2654_v20 = vmul.f32 %v3547_v19, %v2622_v63  ;;  %v2674_v23 = vadd.f32 %v3052_v12, %v2663_v16 }
 0xeb7   : > { %v2675_v27 = vadd.f32 %v3052_v12, %v2664_v47 }
 0xeb8   : > { %v2677_v24 = vpack.c.bf16 %v2674_v23, %v2673_v21  ;;  %v2665_v25 = vmul.f32 %v3051_v39, %v2654_v20 }
 0xeba   : > { %3376 = vmatprep.mubr.msk.bf16.mxu0 %vm499_vm0, %v2677_v24  ;;  %v2676_v34 = vadd.f32 %v3052_v12, %v2665_v25  ;;  %v3058_v25 = vld [vmem:[%s4162_s13] ss:$0 sm:$0xff] }
 0xebc   : > { %v2678_v31 = vpack.c.bf16 %v2676_v34, %v2675_v27 }
 0xebe   : > { %3377 = vmatmul.mubr.msk.bf16.vlgmr.msra.gmra.mxu0 %vm499_vm0, %v2678_v31 }
 0xf7e   : > { %v3378_v48 = vpop.f32.mrf.mxu0 }
 0xf7f   : > { %v2751_v46 = vadd.f32 %v3378_v48, %v3053_v4 }
 0xf80   : > { %v2742_v5 = vpop.f32.mrf.mxu0 }
 0xf81   : > { %v2759_v49 = vmul.f32 %v2751_v46, %v2751_v46  ;;  %v2743_v50 = vadd.f32 %v3053_v4, %v2742_v5 }
 0xf82   : > { %v3379_v52 = vpop.f32.mrf.mxu0 }
 0xf83   : > { %v2763_v54 = vmul.f32 %v2759_v49, %v2751_v46  ;;  %v2757_v41 = vmul.f32 %v2743_v50, %v2743_v50  ;;  %v2754_v56 = vadd.f32 %v3379_v52, %v3053_v4 }
 0xf84   : > { %v2745_v58 = vpop.f32.mrf.mxu0 }
 0xf85   : > { %v2767_v61 = vmul.f32 0.044715, %v2763_v54  ;;  %v2761_v62 = vmul.f32 %v2757_v41, %v2743_v50  ;;  %v2760_v63 = vmul.f32 %v2754_v56, %v2754_v56  ;;  %v2746_v55 = vadd.f32 %v3053_v4, %v2745_v58 }
 0xf87   : > { %v2771_v22 = vadd.f32 %v2767_v61, %v2751_v46  ;;  %v2765_v29 = vmul.f32 0.044715, %v2761_v62  ;;  %v2764_v1 = vmul.f32 %v2760_v63, %v2754_v56  ;;  %v2758_v6 = vmul.f32 %v2746_v55, %v2746_v55 }
 0xf89   : > { %v2775_v7 = vmul.f32 0.7978846, %v2771_v22  ;;  %v2769_v30 = vadd.f32 %v2765_v29, %v2743_v50  ;;  %v2768_v10 = vmul.f32 0.044715, %v2764_v1  ;;  %v2762_v33 = vmul.f32 %v2758_v6, %v2746_v55 }
 0xf8b   : > { %v2773_v8 = vmul.f32 0.7978846, %v2769_v30  ;;  %v2772_v26 = vadd.f32 %v2768_v10, %v2754_v56  ;;  %v2766_v32 = vmul.f32 0.044715, %v2762_v33  ;;  %3548 = vtanh.f32 %v2775_v7 }
 0xf8d   : > { %3550 = vtanh.f32 %v2773_v8  ;;  %v2776_v14 = vmul.f32 0.7978846, %v2772_v26  ;;  %v2770_v35 = vadd.f32 %v2766_v32, %v2746_v55 }
 0xf8f   : > { %3552 = vtanh.f32 %v2776_v14  ;;  %v2774_v15 = vmul.f32 0.7978846, %v2770_v35 }
 0xf91   : > { %3554 = vtanh.f32 %v2774_v15 }
 0xf98   : > { %v3549_v51 = vpop.eup %3548 }
 0xf99   : > { %v2783_v17 = vadd.f32 1.0, %v3549_v51 }
 0xf9a   : > { %v3551_v57 = vpop.eup %3550 }
 0xf9b   : > { %v2781_v53 = vadd.f32 1.0, %v3551_v57  ;;  %v2787_v11 = vmul.f32 0.5, %v2783_v17 }
 0xf9c   : > { %v3553_v13 = vpop.eup %3552 }
 0xf9d   : > { %v2784_v39 = vadd.f32 1.0, %v3553_v13  ;;  %v2785_v9 = vmul.f32 0.5, %v2781_v53  ;;  %v2791_v21 = vmul.f32 %v2787_v11, %v2751_v46 }
 0xf9e   : > { %v3555_v18 = vpop.eup %3554 }
 0xf9f   : > { %v2788_v59 = vmul.f32 0.5, %v2784_v39  ;;  %v2782_v60 = vadd.f32 1.0, %v3555_v18  ;;  %v2789_v19 = vmul.f32 %v2785_v9, %v2743_v50 }
 0xfa1   : > { %v2786_v12 = vmul.f32 0.5, %v2782_v60  ;;  %v2792_v16 = vmul.f32 %v2788_v59, %v2754_v56 }
 0xfa3   : > { %v2790_v20 = vmul.f32 %v2786_v12, %v2746_v55  ;;  %v2794_v47 = vpack.c.bf16 %v2792_v16, %v2791_v21 }
 0xfa5   : > { %v2793_v23 = vpack.c.bf16 %v2790_v20, %v2789_v19 }
 0xfa7   : > { %3396 = vmatprep.mubr.bf16.mxu1 %v2793_v23 }
 0xfa8   : > { %3397 = vmatmul.mubr.bf16.vlgmr.msra.gmra.mxu1 %v2794_v47 }
0x1068   : > { %v3398_v24 = vpop.f32.mrf.mxu1 }
0x1069   : > { %v2909_v31 = vadd.f32 %v3398_v24, %v3058_v25 }
0x106a   : > { %v2900_v27 = vpop.f32.mrf.mxu1 }
0x106b   : > { %v2901_v34 = vadd.f32 %v3058_v25, %v2900_v27  ;;  %v2917_v44 = vadd.f32 %v2909_v31, %v4069_v36 }
0x106c   : > { %v3399_v37 = vpop.f32.mrf.mxu1 }
0x106d   : > { %v2915_v38 = vadd.f32 %v2901_v34, %v4066_v28  ;;  %v2912_v42 = vadd.f32 %v3399_v37, %v3058_v25  ;;  %v2921_v46 = vpack.c.bf16 %v2917_v44, %v2917_v44 }
0x106e   : > { %v2903_v2 = vpop.f32.mrf.mxu1 }
0x106f   : > { %v2919_v43 = vpack.c.bf16 %v2915_v38, %v2915_v38  ;;  %v2904_v3 = vadd.f32 %v3058_v25, %v2903_v2  ;;  %v2918_v45 = vadd.f32 %v2912_v42, %v4077_v0  ;;  %2926 = vst.msk [vmem:[%s488_s18 + $0x8] sm:$0xf] %vm2923_vm6, %v2921_v46 }
0x1071   : > { %2924 = vst.msk [vmem:[%s488_s18] sm:$0xf] %vm2923_vm6, %v2919_v43  ;;  %v2916_v4 = vadd.f32 %v2904_v3, %v4074_v40  ;;  %v2922_v28 = vpack.c.bf16 %v2918_v45, %v2918_v45 }
0x1073   : > { %v2920_v48 = vpack.c.bf16 %v2916_v4, %v2916_v4  ;;  %2927 = vst.msk [vmem:[%s488_s18 + $0xc] sm:$0xf] %vm2923_vm6, %v2922_v28 }
0x1075   : > { %2925 = vst.msk [vmem:[%s488_s18 + $0x4] sm:$0xf] %vm2923_vm6, %v2920_v48 }
0x1076 PF: > { %s24_s29 = sadd.s32 1, %s3562_s29  }
0x1077   : > { %p21_p4 = scmp.ge.s32.totalorder %s24_s29, 4  }
0x1079   :  { %23 = sbr.rel (!%p21_p4) target bundleno = 1 (0x1), region = 109 }

// kernel: model_forward.21
= control target key start
LH: loop header
LB: loop body
LE: loop exit
PB: predicated region body
PF: predicated region fallthrough
CT: control target
= control target key end

     0   :  { %s566_s18 = smov 0   ;;  %s609_s0 = inlined_call_operand.vmem [shape: bf16[64,32], index: 0, kind: input, shape index: {}]   ;;  %s610_s1 = inlined_call_operand.vmem [shape: bf16[32,32], index: 1, kind: input, shape index: {}]   ;;  %s611_s2 = inlined_call_operand.vmem [shape: f32[1,32], index: 2, kind: input, shape index: {}]   ;;  %s612_s3 = inlined_call_operand.vmem [shape: bf16[32,6], index: 3, kind: input, shape index: {}]   ;;  %s613_s4 = inlined_call_operand.vmem [shape: f32[1,6], index: 4, kind: input, shape index: {}]   ;;  %s614_s5 = inlined_call_operand.vmem [shape: f32[64,6], index: 5, kind: output, shape index: {}]  }
   0x1 LB: > { %s467_s19 = sadd.s32 4294967295, %s534_s18   ;;  %p471_p0 = scmp.ge.s32.totalorder %s534_s18, 1  ;;  %s534_s18 = sphi %s566_s18, %s15_s18  }
   0x2   : > { %p188_p1 = scmp.lt.s32.totalorder %s534_s18, 3 }
   0x4   : > { %p189_p2 = pnand %p471_p0, %p188_p1 }
   0x5   : > { %s472_s22 = sshll.u32 (!%p189_p2), %s467_s19, 2 }
   0x6   : > { %192 = sbr.rel (%p189_p2) target bundleno = 428 (0x1ac), region = 40  ;;  %p217_p3 = scmp.lt.s32.totalorder (!%p189_p2), %s472_s22, 7 }
   0xb   : > { %v522_v0 = vld [vmem:[%s610_s1 + $0x8] sm:$0xff]   ;;  %v523_v1 = vld [vmem:[%s610_s1] sm:$0xff]   ;;  %s616_s22 = smov (!%p217_p3, %s472_s22), 7  ;;  %vm266_vm0 = vcmask 261120   ;;  %vm406_vm1 = vcmask 48128  }
   0xc   : > { %498 = vmatprep.subr.bf16.mxu0 %v522_v0  ;;  %s473_s25 = sshll.u32 %s616_s22, 2  ;;  %v526_v4 = vld [vmem:[%s612_s3 + $0x8] sm:$0xff]   ;;  %v527_v5 = vld [vmem:[%s612_s3] sm:$0xff]   ;;  %s475_s10 = sshll.u32 %s616_s22, 3 }
   0xd   : > { %499 = vmatpush3.bf16.msra.mxu0 %v522_v0  ;;  %s220_s28 = scalar_lea.vmem %s609_s0, %s473_s25  ;;  %506 = vmatprep.subr.bf16.mxu1 %v526_v4  ;;  %v476_v8 = vld [vmem:[%s611_s2] ss:$0 sm:$0xff]  ;;  %s226_s15 = scalar_lea.vmem %s614_s5, %s475_s10 }
   0xe   : > { %500 = vmatprep.subr.bf16.mxu0 %v523_v1  ;;  %v524_v2 = vld [vmem:[%s220_s28] sm:$0xff]   ;;  %v525_v3 = vld [vmem:[%s220_s28 + $0x8] sm:$0xff]   ;;  %507 = vmatpush3.bf16.msra.mxu1 %v526_v4 }
   0xf   : > { %502 = vmatprep.mubr.msk.bf16.mxu0 %vm266_vm0, %v524_v2  ;;  %508 = vmatprep.subr.bf16.mxu1 %v527_v5  ;;  %v483_v22 = vld [vmem:[%s613_s4] ss:$0 sm:$0xff] }
  0x11   : > { %501 = vmatpush3.bf16.msra.mxu0 %v523_v1 }
  0x12   : > { %509 = vmatpush3.bf16.msra.mxu1 %v527_v5 }
  0x14   : > { %503 = vmatmul.mubr.msk.bf16.vlgmr.msra.gmra.mxu0 %vm266_vm0, %v525_v3 }
  0xd4   : > { %v504_v6 = vpop.f32.mrf.mxu0 }
  0xd5   : > { %v316_v12 = vadd.f32 %v504_v6, %v476_v8 }
  0xd6   : > { %v307_v7 = vpop.f32.mrf.mxu0 }
  0xd7   : > { %v308_v10 = vadd.f32 %v476_v8, %v307_v7  ;;  %v324_v18 = vmax.f32 %v316_v12, 0.0 }
  0xd8   : > { %v505_v9 = vpop.f32.mrf.mxu0 }
  0xd9   : > { %v319_v11 = vadd.f32 %v505_v9, %v476_v8  ;;  %v322_v16 = vmax.f32 %v308_v10, 0.0 }
  0xda   : > { %v310_v13 = vpop.f32.mrf.mxu0 }
  0xdb   : > { %v311_v14 = vadd.f32 %v476_v8, %v310_v13  ;;  %v325_v15 = vmax.f32 %v319_v11, 0.0 }
  0xdd   : > { %v323_v17 = vmax.f32 %v311_v14, 0.0  ;;  %v327_v20 = vpack.c.bf16 %v325_v15, %v324_v18 }
  0xdf   : > { %v326_v19 = vpack.c.bf16 %v323_v17, %v322_v16 }
  0xe1   : > { %510 = vmatprep.mubr.msk.bf16.mxu1 %vm266_vm0, %v326_v19 }
  0xe2   : > { %511 = vmatmul.mubr.msk.bf16.vlgmr.msra.gmra.mxu1 %vm266_vm0, %v327_v20 }
 0x1a2   : > { %v512_v21 = vpop.f32.mrf.mxu1 }
 0x1a3   : > { %v400_v28 = vadd.f32 %v512_v21, %v483_v22 }
 0x1a4   : > { %v391_v23 = vpop.f32.mrf.mxu1 }
 0x1a5   : > { %v392_v24 = vadd.f32 %v483_v22, %v391_v23  ;;  %409 = vst.msk [vmem:[%s226_s15 + $0x10] sm:$0xff] %vm406_vm1, %v400_v28 }
 0x1a6   : > { %v513_v25 = vpop.f32.mrf.mxu1 }
 0x1a7   : > { %407 = vst.msk [vmem:[%s226_s15] sm:$0xff] %vm406_vm1, %v392_v24  ;;  %v403_v29 = vadd.f32 %v513_v25, %v483_v22 }
 0x1a8   : > { %v394_v26 = vpop.f32.mrf.mxu1 }
 0x1a9   : > { %v395_v27 = vadd.f32 %v483_v22, %v394_v26  ;;  %410 = vst.msk [vmem:[%s226_s15 + $0x18] sm:$0xff] %vm406_vm1, %v403_v29 }
 0x1ab   : > { %408 = vst.msk [vmem:[%s226_s15 + $0x8] sm:$0xff] %vm406_vm1, %v395_v27 }
 0x1ac PF: > { %s15_s18 = sadd.s32 1, %s534_s18  }
 0x1ad   : > { %p12_p4 = scmp.ge.s32.totalorder %s15_s18, 4  }
 0x1af   :  { %14 = sbr.rel (!%p12_p4) target bundleno = 1 (0x1), region = 70 }

</bundles_post_ra>
